<compile_context>
chip_gen: v6e
topology: v6e:2x2x1
jax: 0.10.0
libtpu: 0.0.40
codegen_flags: <defaults>
</compile_context>

<pallas_src>
import functools

import numpy as np
import jax
import jax.numpy as jnp
from jax import lax
from jax.experimental import pallas as pl
from jax.experimental.pallas import tpu as pltpu


def _round_up(x, m):
    return ((x + m - 1) // m) * m


# ------------------------------- Pallas kernel -------------------------------

def _trajrnn_kernel(x_ref, h0_ref, w_emb_ref, b_emb_ref,
                    w_ih_ref, w_hh_ref, b_ih_ref, b_hhn_ref,
                    w_out_ref, b_out_ref,
                    y_ref, hn_ref,
                    xbuf, gxbuf,
                    *, nl, T, Bc, chunk_t, unroll_t, mxu_dtype):
    """Fused TrajRNN forward for one batch tile of Bc (multiple of 8) sequences.

    All feature / gate widths are padded to G (multiple of 128) so every load
    and store is lane-dense; padded lanes stay exactly zero through the GRU.
    """
    f32 = jnp.float32
    G = hn_ref.shape[-1]
    O = y_ref.shape[-1]
    nin = x_ref.shape[-1]
    rows_all = T * Bc

    # ---- embedding + tanh (nn.Dropout(0.2) is identity at inference) ----
    # TODO(synk): training-mode stochastic dropout not implemented (inference path only).
    xb = x_ref[...].reshape(rows_all, nin).astype(mxu_dtype)
    emb = jnp.dot(xb, w_emb_ref[...], preferred_element_type=f32) + b_emb_ref[...]
    xbuf[...] = jnp.tanh(emb).astype(mxu_dtype)

    # ---- GRU layers (static unroll over layers; weights stacked on layer axis) ----
    for l in range(nl):
        # h carried in vregs (f32 for gate math) + an MXU-dtype copy for the
        # recurrent matmul; NO scratch round-trip on the serial path.
        h = h0_ref[l]                                   # (Bc, G) f32
        h_m = h.astype(mxu_dtype)
        # b_hh[n] broadcast hoisted out of the time loop (b_hh[r], b_hh[z] were
        # folded into b_ih at pack time).
        bhn = jnp.broadcast_to(b_hhn_ref[l], (Bc, G))

        def gru_step(chunk_off, seq_off, h, h_m, l=l, bhn=bhn):
            gx = gxbuf[pl.ds(chunk_off, Bc), :]                          # (Bc, 3G) f32
            # W_hh indexed inside the dot (not hoisted as a value).
            gh = jnp.dot(h_m, w_hh_ref[l], preferred_element_type=f32)   # (Bc, 3G) f32
            r = jax.nn.sigmoid(gx[:, 0:G] + gh[:, 0:G])
            z = jax.nn.sigmoid(gx[:, G:2 * G] + gh[:, G:2 * G])
            n = jnp.tanh(gx[:, 2 * G:3 * G] + r * (gh[:, 2 * G:3 * G] + bhn))
            h_new = (1.0 - z) * n + z * h
            h_new_m = h_new.astype(mxu_dtype)
            xbuf[pl.ds(seq_off, Bc), :] = h_new_m       # next layer's input at step t
            return h_new, h_new_m

        # T-chunked: one big input->hidden matmul per chunk keeps the MXU fed
        # while bounding the gx scratch (v7x 64 MiB VMEM).
        for c0 in range(0, T, chunk_t):
            ct = min(chunk_t, T - c0)
            rows = ct * Bc
            r0 = c0 * Bc
            gxbuf[0:rows, :] = (
                jnp.dot(xbuf[r0:r0 + rows, :], w_ih_ref[l],
                        preferred_element_type=f32) + b_ih_ref[l])

            if ct <= unroll_t:
                # short chunk: static unroll (best for small T)
                for t in range(ct):
                    h, h_m = gru_step(t * Bc, r0 + t * Bc, h, h_m)
            else:
                # long chunk: fori_loop keeps instruction memory / vreg live
                # ranges bounded; offsets are 8-aligned via pl.multiple_of.
                def body(t, carry, r0=r0):
                    hh, hhm = carry
                    co = pl.multiple_of(t * Bc, Bc)
                    so = pl.multiple_of(r0 + t * Bc, Bc)
                    return gru_step(co, so, hh, hhm)
                h, h_m = lax.fori_loop(0, ct, body, (h, h_m))

        hn_ref[l] = h                                    # final hidden state, f32

    # ---- output projection + tanh (dropout identity) ----
    out = (jnp.dot(xbuf[...], w_out_ref[...], preferred_element_type=f32)
           + b_out_ref[...])
    y_ref[...] = jnp.tanh(out).reshape(T, Bc, O)


# --------------------------- one-time parameter packing -----------------------

def pack_params(params, mxu_dtype=jnp.bfloat16):
    """Pad / stack / fold parameters ONCE (off the per-call hot path).

    * gate layout: 128-lane slabs [r | z | n] (PyTorch nn.GRU order)
    * b_hh[r], b_hh[z] folded into b_ih (padded lanes stay exactly zero)
    * MXU operands stored in `mxu_dtype` (bf16 -> full-rate MXU, half VMEM);
      biases stay f32 so the serial gate math stays f32 (v5e-safe).
    """
    f32 = np.float32
    w_emb_src = np.asarray(params['w_emb'], f32)
    nin, es = w_emb_src.shape
    hs = int(np.asarray(params['layers'][0]['w_hh']).shape[0])
    nout = int(np.asarray(params['w_out']).shape[1])
    nl = len(params['layers'])
    G = _round_up(max(es, hs), 128)
    O = _round_up(nout, 128)

    w_emb = np.zeros((nin, G), f32); w_emb[:, :es] = w_emb_src
    b_emb = np.zeros((1, G), f32);   b_emb[0, :es] = np.asarray(params['b_emb'], f32)
    w_out = np.zeros((G, O), f32);   w_out[:hs, :nout] = np.asarray(params['w_out'], f32)
    b_out = np.zeros((1, O), f32);   b_out[0, :nout] = np.asarray(params['b_out'], f32)

    w_ih = np.zeros((nl, G, 3 * G), f32)
    w_hh = np.zeros((nl, G, 3 * G), f32)
    b_ih = np.zeros((nl, 1, 3 * G), f32)
    b_hhn = np.zeros((nl, 1, G), f32)
    for l, lp in enumerate(params['layers']):
        wih = np.asarray(lp['w_ih'], f32); whh = np.asarray(lp['w_hh'], f32)
        bih = np.asarray(lp['b_ih'], f32); bhh = np.asarray(lp['b_hh'], f32)
        in_l = wih.shape[0]                 # es for layer 0, hs afterwards
        for g in range(3):                  # gate order [r, z, n]
            w_ih[l, :in_l, g * G:g * G + hs] = wih[:, g * hs:(g + 1) * hs]
            w_hh[l, :hs,   g * G:g * G + hs] = whh[:, g * hs:(g + 1) * hs]
            fold = bih[g * hs:(g + 1) * hs]
            if g < 2:                       # r, z: fold the h-bias into the i-bias
                fold = fold + bhh[g * hs:(g + 1) * hs]
            b_ih[l, 0, g * G:g * G + hs] = fold
        b_hhn[l, 0, :hs] = bhh[2 * hs:3 * hs]   # n: must stay inside r * (.)

    jm = lambda a: jnp.asarray(a, mxu_dtype)
    jf = lambda a: jnp.asarray(a, jnp.float32)
    return dict(
        w_emb=jm(w_emb), b_emb=jf(b_emb),
        w_ih=jm(w_ih), w_hh=jm(w_hh), b_ih=jf(b_ih), b_hhn=jf(b_hhn),
        w_out=jm(w_out), b_out=jf(b_out),
        meta=dict(nin=nin, es=es, hs=hs, nout=nout, nl=nl, G=G, O=O,
                  mxu_dtype=mxu_dtype))


# ------------------------------ Pallas wrapper --------------------------------

def trajrnn_pallas(packed, x, h0=None):
    """x: (B, T, nin) float32. Returns (y (B,T,nout) f32, h_n (nl,B,hs) f32)."""
    f32 = jnp.float32
    m = packed['meta']
    nl, hs, nout, G, O = m['nl'], m['hs'], m['nout'], m['G'], m['O']
    mxu_dtype = m['mxu_dtype']
    B, T, nin = x.shape
    assert nin == m['nin']

    B_pad = _round_up(B, 8)
    # Batch tile: multiple of 8 sublanes; >= 2 tiles when possible so the
    # "parallel" batch grid axis can be split across TensorCores (v7x: 2 TCs).
    if B_pad <= 8:
        Bc = B_pad
    else:
        Bc = max(d for d in (8, 16, 32, 64) if B_pad % d == 0 and B_pad // d >= 2)
    nB = B_pad // Bc

    # Bound the gx scratch (~8 MiB) by chunking the time axis; short chunks are
    # statically unrolled, long ones use lax.fori_loop inside the kernel.
    rows_cap = max(Bc, (8 << 20) // (3 * G * 4))
    chunk_t = max(1, min(T, rows_cap // Bc))
    unroll_t = 16

    # activations: time-major so each timestep is a contiguous 8-aligned row block
    x_p = jnp.zeros((T, B_pad, nin), f32).at[:, :B].set(jnp.transpose(x, (1, 0, 2)))
    h0_p = jnp.zeros((nl, B_pad, G), f32)
    if h0 is not None:
        h0_p = h0_p.at[:, :B, :hs].set(h0.astype(f32))

    kernel = functools.partial(_trajrnn_kernel, nl=nl, T=T, Bc=Bc,
                               chunk_t=chunk_t, unroll_t=unroll_t,
                               mxu_dtype=mxu_dtype)

    # VMEM budget: 2x (double-buffered) input/output blocks + scratch + headroom.
    def nb(shape, dt):
        return int(np.prod(shape)) * np.dtype(dt).itemsize
    block_bytes = (nb((T, Bc, nin), f32) + nb((nl, Bc, G), f32)
                   + nb((T, Bc, O), f32) + nb((nl, Bc, G), f32)
                   + sum(int(packed[k].size) * packed[k].dtype.itemsize
                         for k in ('w_emb', 'b_emb', 'w_ih', 'w_hh',
                                   'b_ih', 'b_hhn', 'w_out', 'b_out')))
    scratch_bytes = nb((T * Bc, G), mxu_dtype) + nb((chunk_t * Bc, 3 * G), f32)
    vmem_limit = int(min(96 << 20,
                         max(32 << 20, 2 * block_bytes + scratch_bytes + (4 << 20))))

    y_p, hn_p = pl.pallas_call(
        kernel,
        out_shape=(jax.ShapeDtypeStruct((T, B_pad, O), f32),
                   jax.ShapeDtypeStruct((nl, B_pad, G), f32)),
        grid=(nB,),
        in_specs=[
            pl.BlockSpec((T, Bc, nin), lambda b: (0, b, 0)),        # x (batch-tiled)
            pl.BlockSpec((nl, Bc, G), lambda b: (0, b, 0)),         # h0 (batch-tiled)
            pl.BlockSpec((nin, G), lambda b: (0, 0)),               # w_emb
            pl.BlockSpec((1, G), lambda b: (0, 0)),                 # b_emb
            pl.BlockSpec((nl, G, 3 * G), lambda b: (0, 0, 0)),      # w_ih
            pl.BlockSpec((nl, G, 3 * G), lambda b: (0, 0, 0)),      # w_hh
            pl.BlockSpec((nl, 1, 3 * G), lambda b: (0, 0, 0)),      # b_ih (+ folded b_hh[r,z])
            pl.BlockSpec((nl, 1, G), lambda b: (0, 0, 0)),          # b_hh[n]
            pl.BlockSpec((G, O), lambda b: (0, 0)),                 # w_out
            pl.BlockSpec((1, O), lambda b: (0, 0)),                 # b_out
        ],
        out_specs=(pl.BlockSpec((T, Bc, O), lambda b: (0, b, 0)),   # y
                   pl.BlockSpec((nl, Bc, G), lambda b: (0, b, 0))), # h_n
        scratch_shapes=[pltpu.VMEM((T * Bc, G), mxu_dtype),         # layer in/out sequence
                        pltpu.VMEM((chunk_t * Bc, 3 * G), f32)],    # chunked input gates
        compiler_params=pltpu.CompilerParams(
            dimension_semantics=("parallel",),
            vmem_limit_bytes=vmem_limit),
    )(x_p, h0_p, packed['w_emb'], packed['b_emb'], packed['w_ih'], packed['w_hh'],
      packed['b_ih'], packed['b_hhn'], packed['w_out'], packed['b_out'])

    y = y_p[:, :B, :nout].transpose(1, 0, 2)                        # (B, T, nout)
    hn = hn_p[:, :B, :hs]                                           # (nl, B, hs)
    return y, hn


# --------------------------- parameter construction ---------------------------

def init_params(key, nin, nout, es, hs, nl):
    """Deterministic PyTorch-style init. GRU weights stored transposed (in, 3*hs),
    gate order [r | z | n] along the last axis (matches nn.GRU row blocks)."""
    ks = jax.random.split(key, 2 + nl)

    def lin(k, fi, fo):
        k1, k2 = jax.random.split(k)
        bd = 1.0 / np.sqrt(fi)
        return (jax.random.uniform(k1, (fi, fo), jnp.float32, -bd, bd),
                jax.random.uniform(k2, (fo,), jnp.float32, -bd, bd))

    w_emb, b_emb = lin(ks[0], nin, es)
    w_out, b_out = lin(ks[1], hs, nout)
    layers = []
    bd = 1.0 / np.sqrt(hs)
    for l in range(nl):
        k = jax.random.split(ks[2 + l], 4)
        in_l = es if l == 0 else hs
        layers.append(dict(
            w_ih=jax.random.uniform(k[0], (in_l, 3 * hs), jnp.float32, -bd, bd),
            w_hh=jax.random.uniform(k[1], (hs, 3 * hs), jnp.float32, -bd, bd),
            b_ih=jax.random.uniform(k[2], (3 * hs,), jnp.float32, -bd, bd),
            b_hh=jax.random.uniform(k[3], (3 * hs,), jnp.float32, -bd, bd)))
    return dict(w_emb=w_emb, b_emb=b_emb, w_out=w_out, b_out=b_out, layers=layers)


# ------------------------------ pure-JAX reference -----------------------------

def trajrnn_reference(params, x, h0=None):
    """Matches the PyTorch module (dropout = identity at inference)."""
    B, T, _ = x.shape
    nl = len(params['layers'])
    hs = params['layers'][0]['w_hh'].shape[0]
    if h0 is None:
        h0 = jnp.zeros((nl, B, hs), jnp.float32)
    dot = lambda a, b: jnp.dot(a, b, precision=jax.lax.Precision.HIGHEST)

    seq = jnp.tanh(dot(x, params['w_emb']) + params['b_emb'])       # (B, T, es)
    hn = []
    for l, lp in enumerate(params['layers']):
        h = h0[l]
        outs = []
        for t in range(T):
            gx = dot(seq[:, t, :], lp['w_ih']) + lp['b_ih']
            gh = dot(h, lp['w_hh']) + lp['b_hh']
            r = jax.nn.sigmoid(gx[:, :hs] + gh[:, :hs])
            z = jax.nn.sigmoid(gx[:, hs:2 * hs] + gh[:, hs:2 * hs])
            n = jnp.tanh(gx[:, 2 * hs:] + r * gh[:, 2 * hs:])
            h = (1.0 - z) * n + z * h
            outs.append(h)
        seq = jnp.stack(outs, axis=1)
        hn.append(h)
    y = jnp.tanh(dot(seq, params['w_out']) + params['b_out'])
    return y, jnp.stack(hn, axis=0)


# ------------------------------------ main ------------------------------------

if __name__ == "__main__":
    # small shapes consistent with the module: trajectories of (x, y) points
    B, T, nin, nout, es, hs, nl = 4, 8, 2, 16, 32, 32, 2

    key = jax.random.PRNGKey(0)
    kp, kx = jax.random.split(key)
    params = init_params(kp, nin, nout, es, hs, nl)
    x = jax.random.normal(kx, (B, T, nin), jnp.float32)

    y_ref, hn_ref = trajrnn_reference(params, x)

    # 1) f32 MXU operands: tight correctness check against the reference.
    packed_f32 = pack_params(params, mxu_dtype=jnp.float32)
    y32, hn32 = trajrnn_pallas(packed_f32, x)          # hidden=None -> zero init
    jax.block_until_ready((y32, hn32))
    np.testing.assert_allclose(np.asarray(y32), np.asarray(y_ref), rtol=2e-3, atol=2e-3)
    np.testing.assert_allclose(np.asarray(hn32), np.asarray(hn_ref), rtol=2e-3, atol=2e-3)

    # 2) bf16 MXU operands (perf configuration for v6e/v7x): looser tolerance
    #    accounts for bf16 rounding of weights / layer activations.
    packed_bf16 = pack_params(params, mxu_dtype=jnp.bfloat16)
    y16, hn16 = trajrnn_pallas(packed_bf16, x)
    jax.block_until_ready((y16, hn16))
    np.testing.assert_allclose(np.asarray(y16), np.asarray(y_ref), rtol=8e-2, atol=8e-2)
    np.testing.assert_allclose(np.asarray(hn16), np.asarray(hn_ref), rtol=8e-2, atol=8e-2)

    assert y16.shape == (B, T, nout) and hn16.shape == (nl, B, hs)
    print("KERNEL_OK")
</pallas_src>

<mosaic_0001>
module attributes {stable_mosaic.version = 11 : i64} {
  func.func @_trajrnn_kernel(%arg0: i32, %arg1: memref<8x8x2xf32, #tpu.memory_space<vmem>>, %arg2: memref<2x8x128xf32, #tpu.memory_space<vmem>>, %arg3: memref<2x128xf32, #tpu.memory_space<vmem>>, %arg4: memref<1x128xf32, #tpu.memory_space<vmem>>, %arg5: memref<2x128x384xf32, #tpu.memory_space<vmem>>, %arg6: memref<2x128x384xf32, #tpu.memory_space<vmem>>, %arg7: memref<2x1x384xf32, #tpu.memory_space<vmem>>, %arg8: memref<2x1x128xf32, #tpu.memory_space<vmem>>, %arg9: memref<128x128xf32, #tpu.memory_space<vmem>>, %arg10: memref<1x128xf32, #tpu.memory_space<vmem>>, %arg11: memref<8x8x128xf32, #tpu.memory_space<vmem>>, %arg12: memref<2x8x128xf32, #tpu.memory_space<vmem>>, %arg13: memref<64x128xf32, #tpu.memory_space<vmem>>, %arg14: memref<64x384xf32, #tpu.memory_space<vmem>>) attributes {dimension_semantics = [#tpu.dimension_semantics<parallel>], iteration_bounds = array<i64: 1>, scalar_prefetch = 0 : i64, scratch_operands = 2 : i64, tpu.core_type = #tpu.core_type<tc>, window_params = [{transform_indices = @transform_0, window_bounds = array<i64: 8, 8, 2>}, {transform_indices = @transform_1, window_bounds = array<i64: 2, 8, 128>}, {pipeline_mode = #tpu.pipeline_mode<synchronous>, transform_indices = @transform_2, window_bounds = array<i64: 2, 128>}, {pipeline_mode = #tpu.pipeline_mode<synchronous>, transform_indices = @transform_3, window_bounds = array<i64: 1, 128>}, {pipeline_mode = #tpu.pipeline_mode<synchronous>, transform_indices = @transform_4, window_bounds = array<i64: 2, 128, 384>}, {pipeline_mode = #tpu.pipeline_mode<synchronous>, transform_indices = @transform_5, window_bounds = array<i64: 2, 128, 384>}, {pipeline_mode = #tpu.pipeline_mode<synchronous>, transform_indices = @transform_6, window_bounds = array<i64: 2, 1, 384>}, {pipeline_mode = #tpu.pipeline_mode<synchronous>, transform_indices = @transform_7, window_bounds = array<i64: 2, 1, 128>}, {pipeline_mode = #tpu.pipeline_mode<synchronous>, transform_indices = @transform_8, window_bounds = array<i64: 128, 128>}, {pipeline_mode = #tpu.pipeline_mode<synchronous>, transform_indices = @transform_9, window_bounds = array<i64: 1, 128>}, {transform_indices = @transform_10, window_bounds = array<i64: 8, 8, 128>}, {transform_indices = @transform_11, window_bounds = array<i64: 2, 8, 128>}]} {
    %c0 = arith.constant 0 : index
    %c0_0 = arith.constant 0 : index
    %c0_1 = arith.constant 0 : index
    %0 = vector.load %arg1[%c0, %c0_0, %c0_1] : memref<8x8x2xf32, #tpu.memory_space<vmem>>, vector<8x8x2xf32>
    %1 = vector.shape_cast %0 : vector<8x8x2xf32> to vector<64x2xf32>
    %c0_2 = arith.constant 0 : index
    %c0_3 = arith.constant 0 : index
    %2 = vector.load %arg3[%c0_2, %c0_3] : memref<2x128xf32, #tpu.memory_space<vmem>>, vector<2x128xf32>
    %cst = arith.constant dense<0.000000e+00> : vector<64x128xf32>
    %3 = tpu.matmul %1, %2, %cst {dimension_numbers = #tpu.dot_dimension_numbers<[1], [0], [0], [1], [0, 0, 1, 1], [], []>} : vector<64x2xf32>, vector<2x128xf32>, vector<64x128xf32> -> vector<64x128xf32>
    %c0_4 = arith.constant 0 : index
    %c0_5 = arith.constant 0 : index
    %4 = vector.load %arg4[%c0_4, %c0_5] : memref<1x128xf32, #tpu.memory_space<vmem>>, vector<1x128xf32>
    %5 = vector.broadcast %4 : vector<1x128xf32> to vector<64x128xf32>
    %6 = arith.addf %3, %5 : vector<64x128xf32>
    %7 = math.tanh %6 : vector<64x128xf32>
    %c0_6 = arith.constant 0 : index
    %c0_7 = arith.constant 0 : index
    %8 = vector.load %arg13[%c0_6, %c0_7] : memref<64x128xf32, #tpu.memory_space<vmem>>, vector<64x128xf32>
    tpu.vector_store %arg13[%c0_6, %c0_7], %7 {strides = array<i32>} : memref<64x128xf32, #tpu.memory_space<vmem>>, vector<64x128xf32>,
    %c0_8 = arith.constant 0 : index
    %c0_9 = arith.constant 0 : index
    %c0_10 = arith.constant 0 : index
    %9 = vector.load %arg2[%c0_8, %c0_9, %c0_10] : memref<2x8x128xf32, #tpu.memory_space<vmem>>, vector<1x8x128xf32>
    %10 = vector.shape_cast %9 : vector<1x8x128xf32> to vector<8x128xf32>
    %c0_11 = arith.constant 0 : index
    %c0_12 = arith.constant 0 : index
    %c0_13 = arith.constant 0 : index
    %11 = vector.load %arg8[%c0_11, %c0_12, %c0_13] : memref<2x1x128xf32, #tpu.memory_space<vmem>>, vector<1x1x128xf32>
    %12 = vector.shape_cast %11 : vector<1x1x128xf32> to vector<1x128xf32>
    %13 = vector.shape_cast %12 : vector<1x128xf32> to vector<1x128xf32>
    %14 = vector.broadcast %13 : vector<1x128xf32> to vector<8x128xf32>
    %c0_14 = arith.constant 0 : index
    %c0_15 = arith.constant 0 : index
    %15 = vector.load %arg13[%c0_14, %c0_15] : memref<64x128xf32, #tpu.memory_space<vmem>>, vector<64x128xf32>
    %c0_16 = arith.constant 0 : index
    %c0_17 = arith.constant 0 : index
    %c0_18 = arith.constant 0 : index
    %16 = vector.load %arg5[%c0_16, %c0_17, %c0_18] : memref<2x128x384xf32, #tpu.memory_space<vmem>>, vector<1x128x384xf32>
    %17 = vector.shape_cast %16 : vector<1x128x384xf32> to vector<128x384xf32>
    %cst_19 = arith.constant dense<0.000000e+00> : vector<64x384xf32>
    %18 = tpu.matmul %15, %17, %cst_19 {dimension_numbers = #tpu.dot_dimension_numbers<[1], [0], [0], [1], [0, 0, 1, 1], [], []>} : vector<64x128xf32>, vector<128x384xf32>, vector<64x384xf32> -> vector<64x384xf32>
    %c0_20 = arith.constant 0 : index
    %c0_21 = arith.constant 0 : index
    %c0_22 = arith.constant 0 : index
    %19 = vector.load %arg7[%c0_20, %c0_21, %c0_22] : memref<2x1x384xf32, #tpu.memory_space<vmem>>, vector<1x1x384xf32>
    %20 = vector.shape_cast %19 : vector<1x1x384xf32> to vector<1x384xf32>
    %21 = vector.broadcast %20 : vector<1x384xf32> to vector<64x384xf32>
    %22 = arith.addf %18, %21 : vector<64x384xf32>
    %c0_23 = arith.constant 0 : index
    %c0_24 = arith.constant 0 : index
    %23 = vector.load %arg14[%c0_23, %c0_24] : memref<64x384xf32, #tpu.memory_space<vmem>>, vector<64x384xf32>
    tpu.vector_store %arg14[%c0_23, %c0_24], %22 {strides = array<i32>} : memref<64x384xf32, #tpu.memory_space<vmem>>, vector<64x384xf32>,
    %c0_25 = arith.constant 0 : index
    %c0_26 = arith.constant 0 : index
    %24 = vector.load %arg14[%c0_25, %c0_26] : memref<64x384xf32, #tpu.memory_space<vmem>>, vector<8x384xf32>
    %c0_27 = arith.constant 0 : index
    %c0_28 = arith.constant 0 : index
    %c0_29 = arith.constant 0 : index
    %25 = vector.load %arg6[%c0_27, %c0_28, %c0_29] : memref<2x128x384xf32, #tpu.memory_space<vmem>>, vector<1x128x384xf32>
    %26 = vector.shape_cast %25 : vector<1x128x384xf32> to vector<128x384xf32>
    %cst_30 = arith.constant dense<0.000000e+00> : vector<8x384xf32>
    %27 = tpu.matmul %10, %26, %cst_30 {dimension_numbers = #tpu.dot_dimension_numbers<[1], [0], [0], [1], [0, 0, 1, 1], [], []>} : vector<8x128xf32>, vector<128x384xf32>, vector<8x384xf32> -> vector<8x384xf32>
    %28 = vector.extract_strided_slice %24 {offsets = [0, 0], sizes = [8, 128], strides = [1, 1]} : vector<8x384xf32> to vector<8x128xf32>
    %29 = vector.extract_strided_slice %27 {offsets = [0, 0], sizes = [8, 128], strides = [1, 1]} : vector<8x384xf32> to vector<8x128xf32>
    %30 = arith.addf %28, %29 : vector<8x128xf32>
    %31 = arith.negf %30 : vector<8x128xf32>
    %32 = math.exp %31 : vector<8x128xf32>
    %cst_31 = arith.constant 1.000000e+00 : f32
    %33 = vector.broadcast %cst_31 : f32 to vector<8x128xf32>
    %34 = arith.addf %33, %32 : vector<8x128xf32>
    %35 = arith.divf %33, %34 : vector<8x128xf32>
    %36 = vector.extract_strided_slice %24 {offsets = [0, 128], sizes = [8, 128], strides = [1, 1]} : vector<8x384xf32> to vector<8x128xf32>
    %37 = vector.extract_strided_slice %27 {offsets = [0, 128], sizes = [8, 128], strides = [1, 1]} : vector<8x384xf32> to vector<8x128xf32>
    %38 = arith.addf %36, %37 : vector<8x128xf32>
    %39 = arith.negf %38 : vector<8x128xf32>
    %40 = math.exp %39 : vector<8x128xf32>
    %cst_32 = arith.constant 1.000000e+00 : f32
    %41 = vector.broadcast %cst_32 : f32 to vector<8x128xf32>
    %42 = arith.addf %41, %40 : vector<8x128xf32>
    %43 = arith.divf %41, %42 : vector<8x128xf32>
    %44 = vector.extract_strided_slice %24 {offsets = [0, 256], sizes = [8, 128], strides = [1, 1]} : vector<8x384xf32> to vector<8x128xf32>
    %45 = vector.extract_strided_slice %27 {offsets = [0, 256], sizes = [8, 128], strides = [1, 1]} : vector<8x384xf32> to vector<8x128xf32>
    %46 = arith.addf %45, %14 : vector<8x128xf32>
    %47 = arith.mulf %35, %46 : vector<8x128xf32>
    %48 = arith.addf %44, %47 : vector<8x128xf32>
    %49 = math.tanh %48 : vector<8x128xf32>
    %cst_33 = arith.constant 1.000000e+00 : f32
    %50 = vector.broadcast %cst_33 : f32 to vector<8x128xf32>
    %51 = arith.subf %50, %43 : vector<8x128xf32>
    %52 = arith.mulf %51, %49 : vector<8x128xf32>
    %53 = arith.mulf %43, %10 : vector<8x128xf32>
    %54 = arith.addf %52, %53 : vector<8x128xf32>
    %c0_34 = arith.constant 0 : index
    %c0_35 = arith.constant 0 : index
    %55 = vector.load %arg13[%c0_34, %c0_35] : memref<64x128xf32, #tpu.memory_space<vmem>>, vector<8x128xf32>
    tpu.vector_store %arg13[%c0_34, %c0_35], %54 {strides = array<i32>} : memref<64x128xf32, #tpu.memory_space<vmem>>, vector<8x128xf32>,
    %c8 = arith.constant 8 : index
    %c0_36 = arith.constant 0 : index
    %56 = vector.load %arg14[%c8, %c0_36] : memref<64x384xf32, #tpu.memory_space<vmem>>, vector<8x384xf32>
    %c0_37 = arith.constant 0 : index
    %c0_38 = arith.constant 0 : index
    %c0_39 = arith.constant 0 : index
    %57 = vector.load %arg6[%c0_37, %c0_38, %c0_39] : memref<2x128x384xf32, #tpu.memory_space<vmem>>, vector<1x128x384xf32>
    %58 = vector.shape_cast %57 : vector<1x128x384xf32> to vector<128x384xf32>
    %cst_40 = arith.constant dense<0.000000e+00> : vector<8x384xf32>
    %59 = tpu.matmul %54, %58, %cst_40 {dimension_numbers = #tpu.dot_dimension_numbers<[1], [0], [0], [1], [0, 0, 1, 1], [], []>} : vector<8x128xf32>, vector<128x384xf32>, vector<8x384xf32> -> vector<8x384xf32>
    %60 = vector.extract_strided_slice %56 {offsets = [0, 0], sizes = [8, 128], strides = [1, 1]} : vector<8x384xf32> to vector<8x128xf32>
    %61 = vector.extract_strided_slice %59 {offsets = [0, 0], sizes = [8, 128], strides = [1, 1]} : vector<8x384xf32> to vector<8x128xf32>
    %62 = arith.addf %60, %61 : vector<8x128xf32>
    %63 = arith.negf %62 : vector<8x128xf32>
    %64 = math.exp %63 : vector<8x128xf32>
    %cst_41 = arith.constant 1.000000e+00 : f32
    %65 = vector.broadcast %cst_41 : f32 to vector<8x128xf32>
    %66 = arith.addf %65, %64 : vector<8x128xf32>
    %67 = arith.divf %65, %66 : vector<8x128xf32>
    %68 = vector.extract_strided_slice %56 {offsets = [0, 128], sizes = [8, 128], strides = [1, 1]} : vector<8x384xf32> to vector<8x128xf32>
    %69 = vector.extract_strided_slice %59 {offsets = [0, 128], sizes = [8, 128], strides = [1, 1]} : vector<8x384xf32> to vector<8x128xf32>
    %70 = arith.addf %68, %69 : vector<8x128xf32>
    %71 = arith.negf %70 : vector<8x128xf32>
    %72 = math.exp %71 : vector<8x128xf32>
    %cst_42 = arith.constant 1.000000e+00 : f32
    %73 = vector.broadcast %cst_42 : f32 to vector<8x128xf32>
    %74 = arith.addf %73, %72 : vector<8x128xf32>
    %75 = arith.divf %73, %74 : vector<8x128xf32>
    %76 = vector.extract_strided_slice %56 {offsets = [0, 256], sizes = [8, 128], strides = [1, 1]} : vector<8x384xf32> to vector<8x128xf32>
    %77 = vector.extract_strided_slice %59 {offsets = [0, 256], sizes = [8, 128], strides = [1, 1]} : vector<8x384xf32> to vector<8x128xf32>
    %78 = arith.addf %77, %14 : vector<8x128xf32>
    %79 = arith.mulf %67, %78 : vector<8x128xf32>
    %80 = arith.addf %76, %79 : vector<8x128xf32>
    %81 = math.tanh %80 : vector<8x128xf32>
    %cst_43 = arith.constant 1.000000e+00 : f32
    %82 = vector.broadcast %cst_43 : f32 to vector<8x128xf32>
    %83 = arith.subf %82, %75 : vector<8x128xf32>
    %84 = arith.mulf %83, %81 : vector<8x128xf32>
    %85 = arith.mulf %75, %54 : vector<8x128xf32>
    %86 = arith.addf %84, %85 : vector<8x128xf32>
    %c8_44 = arith.constant 8 : index
    %c0_45 = arith.constant 0 : index
    %87 = vector.load %arg13[%c8_44, %c0_45] : memref<64x128xf32, #tpu.memory_space<vmem>>, vector<8x128xf32>
    tpu.vector_store %arg13[%c8_44, %c0_45], %86 {strides = array<i32>} : memref<64x128xf32, #tpu.memory_space<vmem>>, vector<8x128xf32>,
    %c16 = arith.constant 16 : index
    %c0_46 = arith.constant 0 : index
    %88 = vector.load %arg14[%c16, %c0_46] : memref<64x384xf32, #tpu.memory_space<vmem>>, vector<8x384xf32>
    %c0_47 = arith.constant 0 : index
    %c0_48 = arith.constant 0 : index
    %c0_49 = arith.constant 0 : index
    %89 = vector.load %arg6[%c0_47, %c0_48, %c0_49] : memref<2x128x384xf32, #tpu.memory_space<vmem>>, vector<1x128x384xf32>
    %90 = vector.shape_cast %89 : vector<1x128x384xf32> to vector<128x384xf32>
    %cst_50 = arith.constant dense<0.000000e+00> : vector<8x384xf32>
    %91 = tpu.matmul %86, %90, %cst_50 {dimension_numbers = #tpu.dot_dimension_numbers<[1], [0], [0], [1], [0, 0, 1, 1], [], []>} : vector<8x128xf32>, vector<128x384xf32>, vector<8x384xf32> -> vector<8x384xf32>
    %92 = vector.extract_strided_slice %88 {offsets = [0, 0], sizes = [8, 128], strides = [1, 1]} : vector<8x384xf32> to vector<8x128xf32>
    %93 = vector.extract_strided_slice %91 {offsets = [0, 0], sizes = [8, 128], strides = [1, 1]} : vector<8x384xf32> to vector<8x128xf32>
    %94 = arith.addf %92, %93 : vector<8x128xf32>
    %95 = arith.negf %94 : vector<8x128xf32>
    %96 = math.exp %95 : vector<8x128xf32>
    %cst_51 = arith.constant 1.000000e+00 : f32
    %97 = vector.broadcast %cst_51 : f32 to vector<8x128xf32>
    %98 = arith.addf %97, %96 : vector<8x128xf32>
    %99 = arith.divf %97, %98 : vector<8x128xf32>
    %100 = vector.extract_strided_slice %88 {offsets = [0, 128], sizes = [8, 128], strides = [1, 1]} : vector<8x384xf32> to vector<8x128xf32>
    %101 = vector.extract_strided_slice %91 {offsets = [0, 128], sizes = [8, 128], strides = [1, 1]} : vector<8x384xf32> to vector<8x128xf32>
    %102 = arith.addf %100, %101 : vector<8x128xf32>
    %103 = arith.negf %102 : vector<8x128xf32>
    %104 = math.exp %103 : vector<8x128xf32>
    %cst_52 = arith.constant 1.000000e+00 : f32
    %105 = vector.broadcast %cst_52 : f32 to vector<8x128xf32>
    %106 = arith.addf %105, %104 : vector<8x128xf32>
    %107 = arith.divf %105, %106 : vector<8x128xf32>
    %108 = vector.extract_strided_slice %88 {offsets = [0, 256], sizes = [8, 128], strides = [1, 1]} : vector<8x384xf32> to vector<8x128xf32>
    %109 = vector.extract_strided_slice %91 {offsets = [0, 256], sizes = [8, 128], strides = [1, 1]} : vector<8x384xf32> to vector<8x128xf32>
    %110 = arith.addf %109, %14 : vector<8x128xf32>
    %111 = arith.mulf %99, %110 : vector<8x128xf32>
    %112 = arith.addf %108, %111 : vector<8x128xf32>
    %113 = math.tanh %112 : vector<8x128xf32>
    %cst_53 = arith.constant 1.000000e+00 : f32
    %114 = vector.broadcast %cst_53 : f32 to vector<8x128xf32>
    %115 = arith.subf %114, %107 : vector<8x128xf32>
    %116 = arith.mulf %115, %113 : vector<8x128xf32>
    %117 = arith.mulf %107, %86 : vector<8x128xf32>
    %118 = arith.addf %116, %117 : vector<8x128xf32>
    %c16_54 = arith.constant 16 : index
    %c0_55 = arith.constant 0 : index
    %119 = vector.load %arg13[%c16_54, %c0_55] : memref<64x128xf32, #tpu.memory_space<vmem>>, vector<8x128xf32>
    tpu.vector_store %arg13[%c16_54, %c0_55], %118 {strides = array<i32>} : memref<64x128xf32, #tpu.memory_space<vmem>>, vector<8x128xf32>,
    %c24 = arith.constant 24 : index
    %c0_56 = arith.constant 0 : index
    %120 = vector.load %arg14[%c24, %c0_56] : memref<64x384xf32, #tpu.memory_space<vmem>>, vector<8x384xf32>
    %c0_57 = arith.constant 0 : index
    %c0_58 = arith.constant 0 : index
    %c0_59 = arith.constant 0 : index
    %121 = vector.load %arg6[%c0_57, %c0_58, %c0_59] : memref<2x128x384xf32, #tpu.memory_space<vmem>>, vector<1x128x384xf32>
    %122 = vector.shape_cast %121 : vector<1x128x384xf32> to vector<128x384xf32>
    %cst_60 = arith.constant dense<0.000000e+00> : vector<8x384xf32>
    %123 = tpu.matmul %118, %122, %cst_60 {dimension_numbers = #tpu.dot_dimension_numbers<[1], [0], [0], [1], [0, 0, 1, 1], [], []>} : vector<8x128xf32>, vector<128x384xf32>, vector<8x384xf32> -> vector<8x384xf32>
    %124 = vector.extract_strided_slice %120 {offsets = [0, 0], sizes = [8, 128], strides = [1, 1]} : vector<8x384xf32> to vector<8x128xf32>
    %125 = vector.extract_strided_slice %123 {offsets = [0, 0], sizes = [8, 128], strides = [1, 1]} : vector<8x384xf32> to vector<8x128xf32>
    %126 = arith.addf %124, %125 : vector<8x128xf32>
    %127 = arith.negf %126 : vector<8x128xf32>
    %128 = math.exp %127 : vector<8x128xf32>
    %cst_61 = arith.constant 1.000000e+00 : f32
    %129 = vector.broadcast %cst_61 : f32 to vector<8x128xf32>
    %130 = arith.addf %129, %128 : vector<8x128xf32>
    %131 = arith.divf %129, %130 : vector<8x128xf32>
    %132 = vector.extract_strided_slice %120 {offsets = [0, 128], sizes = [8, 128], strides = [1, 1]} : vector<8x384xf32> to vector<8x128xf32>
    %133 = vector.extract_strided_slice %123 {offsets = [0, 128], sizes = [8, 128], strides = [1, 1]} : vector<8x384xf32> to vector<8x128xf32>
    %134 = arith.addf %132, %133 : vector<8x128xf32>
    %135 = arith.negf %134 : vector<8x128xf32>
    %136 = math.exp %135 : vector<8x128xf32>
    %cst_62 = arith.constant 1.000000e+00 : f32
    %137 = vector.broadcast %cst_62 : f32 to vector<8x128xf32>
    %138 = arith.addf %137, %136 : vector<8x128xf32>
    %139 = arith.divf %137, %138 : vector<8x128xf32>
    %140 = vector.extract_strided_slice %120 {offsets = [0, 256], sizes = [8, 128], strides = [1, 1]} : vector<8x384xf32> to vector<8x128xf32>
    %141 = vector.extract_strided_slice %123 {offsets = [0, 256], sizes = [8, 128], strides = [1, 1]} : vector<8x384xf32> to vector<8x128xf32>
    %142 = arith.addf %141, %14 : vector<8x128xf32>
    %143 = arith.mulf %131, %142 : vector<8x128xf32>
    %144 = arith.addf %140, %143 : vector<8x128xf32>
    %145 = math.tanh %144 : vector<8x128xf32>
    %cst_63 = arith.constant 1.000000e+00 : f32
    %146 = vector.broadcast %cst_63 : f32 to vector<8x128xf32>
    %147 = arith.subf %146, %139 : vector<8x128xf32>
    %148 = arith.mulf %147, %145 : vector<8x128xf32>
    %149 = arith.mulf %139, %118 : vector<8x128xf32>
    %150 = arith.addf %148, %149 : vector<8x128xf32>
    %c24_64 = arith.constant 24 : index
    %c0_65 = arith.constant 0 : index
    %151 = vector.load %arg13[%c24_64, %c0_65] : memref<64x128xf32, #tpu.memory_space<vmem>>, vector<8x128xf32>
    tpu.vector_store %arg13[%c24_64, %c0_65], %150 {strides = array<i32>} : memref<64x128xf32, #tpu.memory_space<vmem>>, vector<8x128xf32>,
    %c32 = arith.constant 32 : index
    %c0_66 = arith.constant 0 : index
    %152 = vector.load %arg14[%c32, %c0_66] : memref<64x384xf32, #tpu.memory_space<vmem>>, vector<8x384xf32>
    %c0_67 = arith.constant 0 : index
    %c0_68 = arith.constant 0 : index
    %c0_69 = arith.constant 0 : index
    %153 = vector.load %arg6[%c0_67, %c0_68, %c0_69] : memref<2x128x384xf32, #tpu.memory_space<vmem>>, vector<1x128x384xf32>
    %154 = vector.shape_cast %153 : vector<1x128x384xf32> to vector<128x384xf32>
    %cst_70 = arith.constant dense<0.000000e+00> : vector<8x384xf32>
    %155 = tpu.matmul %150, %154, %cst_70 {dimension_numbers = #tpu.dot_dimension_numbers<[1], [0], [0], [1], [0, 0, 1, 1], [], []>} : vector<8x128xf32>, vector<128x384xf32>, vector<8x384xf32> -> vector<8x384xf32>
    %156 = vector.extract_strided_slice %152 {offsets = [0, 0], sizes = [8, 128], strides = [1, 1]} : vector<8x384xf32> to vector<8x128xf32>
    %157 = vector.extract_strided_slice %155 {offsets = [0, 0], sizes = [8, 128], strides = [1, 1]} : vector<8x384xf32> to vector<8x128xf32>
    %158 = arith.addf %156, %157 : vector<8x128xf32>
    %159 = arith.negf %158 : vector<8x128xf32>
    %160 = math.exp %159 : vector<8x128xf32>
    %cst_71 = arith.constant 1.000000e+00 : f32
    %161 = vector.broadcast %cst_71 : f32 to vector<8x128xf32>
    %162 = arith.addf %161, %160 : vector<8x128xf32>
    %163 = arith.divf %161, %162 : vector<8x128xf32>
    %164 = vector.extract_strided_slice %152 {offsets = [0, 128], sizes = [8, 128], strides = [1, 1]} : vector<8x384xf32> to vector<8x128xf32>
    %165 = vector.extract_strided_slice %155 {offsets = [0, 128], sizes = [8, 128], strides = [1, 1]} : vector<8x384xf32> to vector<8x128xf32>
    %166 = arith.addf %164, %165 : vector<8x128xf32>
    %167 = arith.negf %166 : vector<8x128xf32>
    %168 = math.exp %167 : vector<8x128xf32>
    %cst_72 = arith.constant 1.000000e+00 : f32
    %169 = vector.broadcast %cst_72 : f32 to vector<8x128xf32>
    %170 = arith.addf %169, %168 : vector<8x128xf32>
    %171 = arith.divf %169, %170 : vector<8x128xf32>
    %172 = vector.extract_strided_slice %152 {offsets = [0, 256], sizes = [8, 128], strides = [1, 1]} : vector<8x384xf32> to vector<8x128xf32>
    %173 = vector.extract_strided_slice %155 {offsets = [0, 256], sizes = [8, 128], strides = [1, 1]} : vector<8x384xf32> to vector<8x128xf32>
    %174 = arith.addf %173, %14 : vector<8x128xf32>
    %175 = arith.mulf %163, %174 : vector<8x128xf32>
    %176 = arith.addf %172, %175 : vector<8x128xf32>
    %177 = math.tanh %176 : vector<8x128xf32>
    %cst_73 = arith.constant 1.000000e+00 : f32
    %178 = vector.broadcast %cst_73 : f32 to vector<8x128xf32>
    %179 = arith.subf %178, %171 : vector<8x128xf32>
    %180 = arith.mulf %179, %177 : vector<8x128xf32>
    %181 = arith.mulf %171, %150 : vector<8x128xf32>
    %182 = arith.addf %180, %181 : vector<8x128xf32>
    %c32_74 = arith.constant 32 : index
    %c0_75 = arith.constant 0 : index
    %183 = vector.load %arg13[%c32_74, %c0_75] : memref<64x128xf32, #tpu.memory_space<vmem>>, vector<8x128xf32>
    tpu.vector_store %arg13[%c32_74, %c0_75], %182 {strides = array<i32>} : memref<64x128xf32, #tpu.memory_space<vmem>>, vector<8x128xf32>,
    %c40 = arith.constant 40 : index
    %c0_76 = arith.constant 0 : index
    %184 = vector.load %arg14[%c40, %c0_76] : memref<64x384xf32, #tpu.memory_space<vmem>>, vector<8x384xf32>
    %c0_77 = arith.constant 0 : index
    %c0_78 = arith.constant 0 : index
    %c0_79 = arith.constant 0 : index
    %185 = vector.load %arg6[%c0_77, %c0_78, %c0_79] : memref<2x128x384xf32, #tpu.memory_space<vmem>>, vector<1x128x384xf32>
    %186 = vector.shape_cast %185 : vector<1x128x384xf32> to vector<128x384xf32>
    %cst_80 = arith.constant dense<0.000000e+00> : vector<8x384xf32>
    %187 = tpu.matmul %182, %186, %cst_80 {dimension_numbers = #tpu.dot_dimension_numbers<[1], [0], [0], [1], [0, 0, 1, 1], [], []>} : vector<8x128xf32>, vector<128x384xf32>, vector<8x384xf32> -> vector<8x384xf32>
    %188 = vector.extract_strided_slice %184 {offsets = [0, 0], sizes = [8, 128], strides = [1, 1]} : vector<8x384xf32> to vector<8x128xf32>
    %189 = vector.extract_strided_slice %187 {offsets = [0, 0], sizes = [8, 128], strides = [1, 1]} : vector<8x384xf32> to vector<8x128xf32>
    %190 = arith.addf %188, %189 : vector<8x128xf32>
    %191 = arith.negf %190 : vector<8x128xf32>
    %192 = math.exp %191 : vector<8x128xf32>
    %cst_81 = arith.constant 1.000000e+00 : f32
    %193 = vector.broadcast %cst_81 : f32 to vector<8x128xf32>
    %194 = arith.addf %193, %192 : vector<8x128xf32>
    %195 = arith.divf %193, %194 : vector<8x128xf32>
    %196 = vector.extract_strided_slice %184 {offsets = [0, 128], sizes = [8, 128], strides = [1, 1]} : vector<8x384xf32> to vector<8x128xf32>
    %197 = vector.extract_strided_slice %187 {offsets = [0, 128], sizes = [8, 128], strides = [1, 1]} : vector<8x384xf32> to vector<8x128xf32>
    %198 = arith.addf %196, %197 : vector<8x128xf32>
    %199 = arith.negf %198 : vector<8x128xf32>
    %200 = math.exp %199 : vector<8x128xf32>
    %cst_82 = arith.constant 1.000000e+00 : f32
    %201 = vector.broadcast %cst_82 : f32 to vector<8x128xf32>
    %202 = arith.addf %201, %200 : vector<8x128xf32>
    %203 = arith.divf %201, %202 : vector<8x128xf32>
    %204 = vector.extract_strided_slice %184 {offsets = [0, 256], sizes = [8, 128], strides = [1, 1]} : vector<8x384xf32> to vector<8x128xf32>
    %205 = vector.extract_strided_slice %187 {offsets = [0, 256], sizes = [8, 128], strides = [1, 1]} : vector<8x384xf32> to vector<8x128xf32>
    %206 = arith.addf %205, %14 : vector<8x128xf32>
    %207 = arith.mulf %195, %206 : vector<8x128xf32>
    %208 = arith.addf %204, %207 : vector<8x128xf32>
    %209 = math.tanh %208 : vector<8x128xf32>
    %cst_83 = arith.constant 1.000000e+00 : f32
    %210 = vector.broadcast %cst_83 : f32 to vector<8x128xf32>
    %211 = arith.subf %210, %203 : vector<8x128xf32>
    %212 = arith.mulf %211, %209 : vector<8x128xf32>
    %213 = arith.mulf %203, %182 : vector<8x128xf32>
    %214 = arith.addf %212, %213 : vector<8x128xf32>
    %c40_84 = arith.constant 40 : index
    %c0_85 = arith.constant 0 : index
    %215 = vector.load %arg13[%c40_84, %c0_85] : memref<64x128xf32, #tpu.memory_space<vmem>>, vector<8x128xf32>
    tpu.vector_store %arg13[%c40_84, %c0_85], %214 {strides = array<i32>} : memref<64x128xf32, #tpu.memory_space<vmem>>, vector<8x128xf32>,
    %c48 = arith.constant 48 : index
    %c0_86 = arith.constant 0 : index
    %216 = vector.load %arg14[%c48, %c0_86] : memref<64x384xf32, #tpu.memory_space<vmem>>, vector<8x384xf32>
    %c0_87 = arith.constant 0 : index
    %c0_88 = arith.constant 0 : index
    %c0_89 = arith.constant 0 : index
    %217 = vector.load %arg6[%c0_87, %c0_88, %c0_89] : memref<2x128x384xf32, #tpu.memory_space<vmem>>, vector<1x128x384xf32>
    %218 = vector.shape_cast %217 : vector<1x128x384xf32> to vector<128x384xf32>
    %cst_90 = arith.constant dense<0.000000e+00> : vector<8x384xf32>
    %219 = tpu.matmul %214, %218, %cst_90 {dimension_numbers = #tpu.dot_dimension_numbers<[1], [0], [0], [1], [0, 0, 1, 1], [], []>} : vector<8x128xf32>, vector<128x384xf32>, vector<8x384xf32> -> vector<8x384xf32>
    %220 = vector.extract_strided_slice %216 {offsets = [0, 0], sizes = [8, 128], strides = [1, 1]} : vector<8x384xf32> to vector<8x128xf32>
    %221 = vector.extract_strided_slice %219 {offsets = [0, 0], sizes = [8, 128], strides = [1, 1]} : vector<8x384xf32> to vector<8x128xf32>
    %222 = arith.addf %220, %221 : vector<8x128xf32>
    %223 = arith.negf %222 : vector<8x128xf32>
    %224 = math.exp %223 : vector<8x128xf32>
    %cst_91 = arith.constant 1.000000e+00 : f32
    %225 = vector.broadcast %cst_91 : f32 to vector<8x128xf32>
    %226 = arith.addf %225, %224 : vector<8x128xf32>
    %227 = arith.divf %225, %226 : vector<8x128xf32>
    %228 = vector.extract_strided_slice %216 {offsets = [0, 128], sizes = [8, 128], strides = [1, 1]} : vector<8x384xf32> to vector<8x128xf32>
    %229 = vector.extract_strided_slice %219 {offsets = [0, 128], sizes = [8, 128], strides = [1, 1]} : vector<8x384xf32> to vector<8x128xf32>
    %230 = arith.addf %228, %229 : vector<8x128xf32>
    %231 = arith.negf %230 : vector<8x128xf32>
    %232 = math.exp %231 : vector<8x128xf32>
    %cst_92 = arith.constant 1.000000e+00 : f32
    %233 = vector.broadcast %cst_92 : f32 to vector<8x128xf32>
    %234 = arith.addf %233, %232 : vector<8x128xf32>
    %235 = arith.divf %233, %234 : vector<8x128xf32>
    %236 = vector.extract_strided_slice %216 {offsets = [0, 256], sizes = [8, 128], strides = [1, 1]} : vector<8x384xf32> to vector<8x128xf32>
    %237 = vector.extract_strided_slice %219 {offsets = [0, 256], sizes = [8, 128], strides = [1, 1]} : vector<8x384xf32> to vector<8x128xf32>
    %238 = arith.addf %237, %14 : vector<8x128xf32>
    %239 = arith.mulf %227, %238 : vector<8x128xf32>
    %240 = arith.addf %236, %239 : vector<8x128xf32>
    %241 = math.tanh %240 : vector<8x128xf32>
    %cst_93 = arith.constant 1.000000e+00 : f32
    %242 = vector.broadcast %cst_93 : f32 to vector<8x128xf32>
    %243 = arith.subf %242, %235 : vector<8x128xf32>
    %244 = arith.mulf %243, %241 : vector<8x128xf32>
    %245 = arith.mulf %235, %214 : vector<8x128xf32>
    %246 = arith.addf %244, %245 : vector<8x128xf32>
    %c48_94 = arith.constant 48 : index
    %c0_95 = arith.constant 0 : index
    %247 = vector.load %arg13[%c48_94, %c0_95] : memref<64x128xf32, #tpu.memory_space<vmem>>, vector<8x128xf32>
    tpu.vector_store %arg13[%c48_94, %c0_95], %246 {strides = array<i32>} : memref<64x128xf32, #tpu.memory_space<vmem>>, vector<8x128xf32>,
    %c56 = arith.constant 56 : index
    %c0_96 = arith.constant 0 : index
    %248 = vector.load %arg14[%c56, %c0_96] : memref<64x384xf32, #tpu.memory_space<vmem>>, vector<8x384xf32>
    %c0_97 = arith.constant 0 : index
    %c0_98 = arith.constant 0 : index
    %c0_99 = arith.constant 0 : index
    %249 = vector.load %arg6[%c0_97, %c0_98, %c0_99] : memref<2x128x384xf32, #tpu.memory_space<vmem>>, vector<1x128x384xf32>
    %250 = vector.shape_cast %249 : vector<1x128x384xf32> to vector<128x384xf32>
    %cst_100 = arith.constant dense<0.000000e+00> : vector<8x384xf32>
    %251 = tpu.matmul %246, %250, %cst_100 {dimension_numbers = #tpu.dot_dimension_numbers<[1], [0], [0], [1], [0, 0, 1, 1], [], []>} : vector<8x128xf32>, vector<128x384xf32>, vector<8x384xf32> -> vector<8x384xf32>
    %252 = vector.extract_strided_slice %248 {offsets = [0, 0], sizes = [8, 128], strides = [1, 1]} : vector<8x384xf32> to vector<8x128xf32>
    %253 = vector.extract_strided_slice %251 {offsets = [0, 0], sizes = [8, 128], strides = [1, 1]} : vector<8x384xf32> to vector<8x128xf32>
    %254 = arith.addf %252, %253 : vector<8x128xf32>
    %255 = arith.negf %254 : vector<8x128xf32>
    %256 = math.exp %255 : vector<8x128xf32>
    %cst_101 = arith.constant 1.000000e+00 : f32
    %257 = vector.broadcast %cst_101 : f32 to vector<8x128xf32>
    %258 = arith.addf %257, %256 : vector<8x128xf32>
    %259 = arith.divf %257, %258 : vector<8x128xf32>
    %260 = vector.extract_strided_slice %248 {offsets = [0, 128], sizes = [8, 128], strides = [1, 1]} : vector<8x384xf32> to vector<8x128xf32>
    %261 = vector.extract_strided_slice %251 {offsets = [0, 128], sizes = [8, 128], strides = [1, 1]} : vector<8x384xf32> to vector<8x128xf32>
    %262 = arith.addf %260, %261 : vector<8x128xf32>
    %263 = arith.negf %262 : vector<8x128xf32>
    %264 = math.exp %263 : vector<8x128xf32>
    %cst_102 = arith.constant 1.000000e+00 : f32
    %265 = vector.broadcast %cst_102 : f32 to vector<8x128xf32>
    %266 = arith.addf %265, %264 : vector<8x128xf32>
    %267 = arith.divf %265, %266 : vector<8x128xf32>
    %268 = vector.extract_strided_slice %248 {offsets = [0, 256], sizes = [8, 128], strides = [1, 1]} : vector<8x384xf32> to vector<8x128xf32>
    %269 = vector.extract_strided_slice %251 {offsets = [0, 256], sizes = [8, 128], strides = [1, 1]} : vector<8x384xf32> to vector<8x128xf32>
    %270 = arith.addf %269, %14 : vector<8x128xf32>
    %271 = arith.mulf %259, %270 : vector<8x128xf32>
    %272 = arith.addf %268, %271 : vector<8x128xf32>
    %273 = math.tanh %272 : vector<8x128xf32>
    %cst_103 = arith.constant 1.000000e+00 : f32
    %274 = vector.broadcast %cst_103 : f32 to vector<8x128xf32>
    %275 = arith.subf %274, %267 : vector<8x128xf32>
    %276 = arith.mulf %275, %273 : vector<8x128xf32>
    %277 = arith.mulf %267, %246 : vector<8x128xf32>
    %278 = arith.addf %276, %277 : vector<8x128xf32>
    %c56_104 = arith.constant 56 : index
    %c0_105 = arith.constant 0 : index
    %279 = vector.load %arg13[%c56_104, %c0_105] : memref<64x128xf32, #tpu.memory_space<vmem>>, vector<8x128xf32>
    tpu.vector_store %arg13[%c56_104, %c0_105], %278 {strides = array<i32>} : memref<64x128xf32, #tpu.memory_space<vmem>>, vector<8x128xf32>,
    %c0_106 = arith.constant 0 : index
    %c0_107 = arith.constant 0 : index
    %c0_108 = arith.constant 0 : index
    %280 = vector.load %arg12[%c0_106, %c0_107, %c0_108] : memref<2x8x128xf32, #tpu.memory_space<vmem>>, vector<1x8x128xf32>
    %281 = vector.shape_cast %280 : vector<1x8x128xf32> to vector<8x128xf32>
    %282 = vector.shape_cast %278 : vector<8x128xf32> to vector<1x8x128xf32>
    tpu.vector_store %arg12[%c0_106, %c0_107, %c0_108], %282 {strides = array<i32>} : memref<2x8x128xf32, #tpu.memory_space<vmem>>, vector<1x8x128xf32>,
    %c1 = arith.constant 1 : index
    %c0_109 = arith.constant 0 : index
    %c0_110 = arith.constant 0 : index
    %283 = vector.load %arg2[%c1, %c0_109, %c0_110] : memref<2x8x128xf32, #tpu.memory_space<vmem>>, vector<1x8x128xf32>
    %284 = vector.shape_cast %283 : vector<1x8x128xf32> to vector<8x128xf32>
    %c1_111 = arith.constant 1 : index
    %c0_112 = arith.constant 0 : index
    %c0_113 = arith.constant 0 : index
    %285 = vector.load %arg8[%c1_111, %c0_112, %c0_113] : memref<2x1x128xf32, #tpu.memory_space<vmem>>, vector<1x1x128xf32>
    %286 = vector.shape_cast %285 : vector<1x1x128xf32> to vector<1x128xf32>
    %287 = vector.shape_cast %286 : vector<1x128xf32> to vector<1x128xf32>
    %288 = vector.broadcast %287 : vector<1x128xf32> to vector<8x128xf32>
    %c0_114 = arith.constant 0 : index
    %c0_115 = arith.constant 0 : index
    %289 = vector.load %arg13[%c0_114, %c0_115] : memref<64x128xf32, #tpu.memory_space<vmem>>, vector<64x128xf32>
    %c1_116 = arith.constant 1 : index
    %c0_117 = arith.constant 0 : index
    %c0_118 = arith.constant 0 : index
    %290 = vector.load %arg5[%c1_116, %c0_117, %c0_118] : memref<2x128x384xf32, #tpu.memory_space<vmem>>, vector<1x128x384xf32>
    %291 = vector.shape_cast %290 : vector<1x128x384xf32> to vector<128x384xf32>
    %cst_119 = arith.constant dense<0.000000e+00> : vector<64x384xf32>
    %292 = tpu.matmul %289, %291, %cst_119 {dimension_numbers = #tpu.dot_dimension_numbers<[1], [0], [0], [1], [0, 0, 1, 1], [], []>} : vector<64x128xf32>, vector<128x384xf32>, vector<64x384xf32> -> vector<64x384xf32>
    %c1_120 = arith.constant 1 : index
    %c0_121 = arith.constant 0 : index
    %c0_122 = arith.constant 0 : index
    %293 = vector.load %arg7[%c1_120, %c0_121, %c0_122] : memref<2x1x384xf32, #tpu.memory_space<vmem>>, vector<1x1x384xf32>
    %294 = vector.shape_cast %293 : vector<1x1x384xf32> to vector<1x384xf32>
    %295 = vector.broadcast %294 : vector<1x384xf32> to vector<64x384xf32>
    %296 = arith.addf %292, %295 : vector<64x384xf32>
    %c0_123 = arith.constant 0 : index
    %c0_124 = arith.constant 0 : index
    %297 = vector.load %arg14[%c0_123, %c0_124] : memref<64x384xf32, #tpu.memory_space<vmem>>, vector<64x384xf32>
    tpu.vector_store %arg14[%c0_123, %c0_124], %296 {strides = array<i32>} : memref<64x384xf32, #tpu.memory_space<vmem>>, vector<64x384xf32>,
    %c0_125 = arith.constant 0 : index
    %c0_126 = arith.constant 0 : index
    %298 = vector.load %arg14[%c0_125, %c0_126] : memref<64x384xf32, #tpu.memory_space<vmem>>, vector<8x384xf32>
    %c1_127 = arith.constant 1 : index
    %c0_128 = arith.constant 0 : index
    %c0_129 = arith.constant 0 : index
    %299 = vector.load %arg6[%c1_127, %c0_128, %c0_129] : memref<2x128x384xf32, #tpu.memory_space<vmem>>, vector<1x128x384xf32>
    %300 = vector.shape_cast %299 : vector<1x128x384xf32> to vector<128x384xf32>
    %cst_130 = arith.constant dense<0.000000e+00> : vector<8x384xf32>
    %301 = tpu.matmul %284, %300, %cst_130 {dimension_numbers = #tpu.dot_dimension_numbers<[1], [0], [0], [1], [0, 0, 1, 1], [], []>} : vector<8x128xf32>, vector<128x384xf32>, vector<8x384xf32> -> vector<8x384xf32>
    %302 = vector.extract_strided_slice %298 {offsets = [0, 0], sizes = [8, 128], strides = [1, 1]} : vector<8x384xf32> to vector<8x128xf32>
    %303 = vector.extract_strided_slice %301 {offsets = [0, 0], sizes = [8, 128], strides = [1, 1]} : vector<8x384xf32> to vector<8x128xf32>
    %304 = arith.addf %302, %303 : vector<8x128xf32>
    %305 = arith.negf %304 : vector<8x128xf32>
    %306 = math.exp %305 : vector<8x128xf32>
    %cst_131 = arith.constant 1.000000e+00 : f32
    %307 = vector.broadcast %cst_131 : f32 to vector<8x128xf32>
    %308 = arith.addf %307, %306 : vector<8x128xf32>
    %309 = arith.divf %307, %308 : vector<8x128xf32>
    %310 = vector.extract_strided_slice %298 {offsets = [0, 128], sizes = [8, 128], strides = [1, 1]} : vector<8x384xf32> to vector<8x128xf32>
    %311 = vector.extract_strided_slice %301 {offsets = [0, 128], sizes = [8, 128], strides = [1, 1]} : vector<8x384xf32> to vector<8x128xf32>
    %312 = arith.addf %310, %311 : vector<8x128xf32>
    %313 = arith.negf %312 : vector<8x128xf32>
    %314 = math.exp %313 : vector<8x128xf32>
    %cst_132 = arith.constant 1.000000e+00 : f32
    %315 = vector.broadcast %cst_132 : f32 to vector<8x128xf32>
    %316 = arith.addf %315, %314 : vector<8x128xf32>
    %317 = arith.divf %315, %316 : vector<8x128xf32>
    %318 = vector.extract_strided_slice %298 {offsets = [0, 256], sizes = [8, 128], strides = [1, 1]} : vector<8x384xf32> to vector<8x128xf32>
    %319 = vector.extract_strided_slice %301 {offsets = [0, 256], sizes = [8, 128], strides = [1, 1]} : vector<8x384xf32> to vector<8x128xf32>
    %320 = arith.addf %319, %288 : vector<8x128xf32>
    %321 = arith.mulf %309, %320 : vector<8x128xf32>
    %322 = arith.addf %318, %321 : vector<8x128xf32>
    %323 = math.tanh %322 : vector<8x128xf32>
    %cst_133 = arith.constant 1.000000e+00 : f32
    %324 = vector.broadcast %cst_133 : f32 to vector<8x128xf32>
    %325 = arith.subf %324, %317 : vector<8x128xf32>
    %326 = arith.mulf %325, %323 : vector<8x128xf32>
    %327 = arith.mulf %317, %284 : vector<8x128xf32>
    %328 = arith.addf %326, %327 : vector<8x128xf32>
    %c0_134 = arith.constant 0 : index
    %c0_135 = arith.constant 0 : index
    %329 = vector.load %arg13[%c0_134, %c0_135] : memref<64x128xf32, #tpu.memory_space<vmem>>, vector<8x128xf32>
    tpu.vector_store %arg13[%c0_134, %c0_135], %328 {strides = array<i32>} : memref<64x128xf32, #tpu.memory_space<vmem>>, vector<8x128xf32>,
    %c8_136 = arith.constant 8 : index
    %c0_137 = arith.constant 0 : index
    %330 = vector.load %arg14[%c8_136, %c0_137] : memref<64x384xf32, #tpu.memory_space<vmem>>, vector<8x384xf32>
    %c1_138 = arith.constant 1 : index
    %c0_139 = arith.constant 0 : index
    %c0_140 = arith.constant 0 : index
    %331 = vector.load %arg6[%c1_138, %c0_139, %c0_140] : memref<2x128x384xf32, #tpu.memory_space<vmem>>, vector<1x128x384xf32>
    %332 = vector.shape_cast %331 : vector<1x128x384xf32> to vector<128x384xf32>
    %cst_141 = arith.constant dense<0.000000e+00> : vector<8x384xf32>
    %333 = tpu.matmul %328, %332, %cst_141 {dimension_numbers = #tpu.dot_dimension_numbers<[1], [0], [0], [1], [0, 0, 1, 1], [], []>} : vector<8x128xf32>, vector<128x384xf32>, vector<8x384xf32> -> vector<8x384xf32>
    %334 = vector.extract_strided_slice %330 {offsets = [0, 0], sizes = [8, 128], strides = [1, 1]} : vector<8x384xf32> to vector<8x128xf32>
    %335 = vector.extract_strided_slice %333 {offsets = [0, 0], sizes = [8, 128], strides = [1, 1]} : vector<8x384xf32> to vector<8x128xf32>
    %336 = arith.addf %334, %335 : vector<8x128xf32>
    %337 = arith.negf %336 : vector<8x128xf32>
    %338 = math.exp %337 : vector<8x128xf32>
    %cst_142 = arith.constant 1.000000e+00 : f32
    %339 = vector.broadcast %cst_142 : f32 to vector<8x128xf32>
    %340 = arith.addf %339, %338 : vector<8x128xf32>
    %341 = arith.divf %339, %340 : vector<8x128xf32>
    %342 = vector.extract_strided_slice %330 {offsets = [0, 128], sizes = [8, 128], strides = [1, 1]} : vector<8x384xf32> to vector<8x128xf32>
    %343 = vector.extract_strided_slice %333 {offsets = [0, 128], sizes = [8, 128], strides = [1, 1]} : vector<8x384xf32> to vector<8x128xf32>
    %344 = arith.addf %342, %343 : vector<8x128xf32>
    %345 = arith.negf %344 : vector<8x128xf32>
    %346 = math.exp %345 : vector<8x128xf32>
    %cst_143 = arith.constant 1.000000e+00 : f32
    %347 = vector.broadcast %cst_143 : f32 to vector<8x128xf32>
    %348 = arith.addf %347, %346 : vector<8x128xf32>
    %349 = arith.divf %347, %348 : vector<8x128xf32>
    %350 = vector.extract_strided_slice %330 {offsets = [0, 256], sizes = [8, 128], strides = [1, 1]} : vector<8x384xf32> to vector<8x128xf32>
    %351 = vector.extract_strided_slice %333 {offsets = [0, 256], sizes = [8, 128], strides = [1, 1]} : vector<8x384xf32> to vector<8x128xf32>
    %352 = arith.addf %351, %288 : vector<8x128xf32>
    %353 = arith.mulf %341, %352 : vector<8x128xf32>
    %354 = arith.addf %350, %353 : vector<8x128xf32>
    %355 = math.tanh %354 : vector<8x128xf32>
    %cst_144 = arith.constant 1.000000e+00 : f32
    %356 = vector.broadcast %cst_144 : f32 to vector<8x128xf32>
    %357 = arith.subf %356, %349 : vector<8x128xf32>
    %358 = arith.mulf %357, %355 : vector<8x128xf32>
    %359 = arith.mulf %349, %328 : vector<8x128xf32>
    %360 = arith.addf %358, %359 : vector<8x128xf32>
    %c8_145 = arith.constant 8 : index
    %c0_146 = arith.constant 0 : index
    %361 = vector.load %arg13[%c8_145, %c0_146] : memref<64x128xf32, #tpu.memory_space<vmem>>, vector<8x128xf32>
    tpu.vector_store %arg13[%c8_145, %c0_146], %360 {strides = array<i32>} : memref<64x128xf32, #tpu.memory_space<vmem>>, vector<8x128xf32>,
    %c16_147 = arith.constant 16 : index
    %c0_148 = arith.constant 0 : index
    %362 = vector.load %arg14[%c16_147, %c0_148] : memref<64x384xf32, #tpu.memory_space<vmem>>, vector<8x384xf32>
    %c1_149 = arith.constant 1 : index
    %c0_150 = arith.constant 0 : index
    %c0_151 = arith.constant 0 : index
    %363 = vector.load %arg6[%c1_149, %c0_150, %c0_151] : memref<2x128x384xf32, #tpu.memory_space<vmem>>, vector<1x128x384xf32>
    %364 = vector.shape_cast %363 : vector<1x128x384xf32> to vector<128x384xf32>
    %cst_152 = arith.constant dense<0.000000e+00> : vector<8x384xf32>
    %365 = tpu.matmul %360, %364, %cst_152 {dimension_numbers = #tpu.dot_dimension_numbers<[1], [0], [0], [1], [0, 0, 1, 1], [], []>} : vector<8x128xf32>, vector<128x384xf32>, vector<8x384xf32> -> vector<8x384xf32>
    %366 = vector.extract_strided_slice %362 {offsets = [0, 0], sizes = [8, 128], strides = [1, 1]} : vector<8x384xf32> to vector<8x128xf32>
    %367 = vector.extract_strided_slice %365 {offsets = [0, 0], sizes = [8, 128], strides = [1, 1]} : vector<8x384xf32> to vector<8x128xf32>
    %368 = arith.addf %366, %367 : vector<8x128xf32>
    %369 = arith.negf %368 : vector<8x128xf32>
    %370 = math.exp %369 : vector<8x128xf32>
    %cst_153 = arith.constant 1.000000e+00 : f32
    %371 = vector.broadcast %cst_153 : f32 to vector<8x128xf32>
    %372 = arith.addf %371, %370 : vector<8x128xf32>
    %373 = arith.divf %371, %372 : vector<8x128xf32>
    %374 = vector.extract_strided_slice %362 {offsets = [0, 128], sizes = [8, 128], strides = [1, 1]} : vector<8x384xf32> to vector<8x128xf32>
    %375 = vector.extract_strided_slice %365 {offsets = [0, 128], sizes = [8, 128], strides = [1, 1]} : vector<8x384xf32> to vector<8x128xf32>
    %376 = arith.addf %374, %375 : vector<8x128xf32>
    %377 = arith.negf %376 : vector<8x128xf32>
    %378 = math.exp %377 : vector<8x128xf32>
    %cst_154 = arith.constant 1.000000e+00 : f32
    %379 = vector.broadcast %cst_154 : f32 to vector<8x128xf32>
    %380 = arith.addf %379, %378 : vector<8x128xf32>
    %381 = arith.divf %379, %380 : vector<8x128xf32>
    %382 = vector.extract_strided_slice %362 {offsets = [0, 256], sizes = [8, 128], strides = [1, 1]} : vector<8x384xf32> to vector<8x128xf32>
    %383 = vector.extract_strided_slice %365 {offsets = [0, 256], sizes = [8, 128], strides = [1, 1]} : vector<8x384xf32> to vector<8x128xf32>
    %384 = arith.addf %383, %288 : vector<8x128xf32>
    %385 = arith.mulf %373, %384 : vector<8x128xf32>
    %386 = arith.addf %382, %385 : vector<8x128xf32>
    %387 = math.tanh %386 : vector<8x128xf32>
    %cst_155 = arith.constant 1.000000e+00 : f32
    %388 = vector.broadcast %cst_155 : f32 to vector<8x128xf32>
    %389 = arith.subf %388, %381 : vector<8x128xf32>
    %390 = arith.mulf %389, %387 : vector<8x128xf32>
    %391 = arith.mulf %381, %360 : vector<8x128xf32>
    %392 = arith.addf %390, %391 : vector<8x128xf32>
    %c16_156 = arith.constant 16 : index
    %c0_157 = arith.constant 0 : index
    %393 = vector.load %arg13[%c16_156, %c0_157] : memref<64x128xf32, #tpu.memory_space<vmem>>, vector<8x128xf32>
    tpu.vector_store %arg13[%c16_156, %c0_157], %392 {strides = array<i32>} : memref<64x128xf32, #tpu.memory_space<vmem>>, vector<8x128xf32>,
    %c24_158 = arith.constant 24 : index
    %c0_159 = arith.constant 0 : index
    %394 = vector.load %arg14[%c24_158, %c0_159] : memref<64x384xf32, #tpu.memory_space<vmem>>, vector<8x384xf32>
    %c1_160 = arith.constant 1 : index
    %c0_161 = arith.constant 0 : index
    %c0_162 = arith.constant 0 : index
    %395 = vector.load %arg6[%c1_160, %c0_161, %c0_162] : memref<2x128x384xf32, #tpu.memory_space<vmem>>, vector<1x128x384xf32>
    %396 = vector.shape_cast %395 : vector<1x128x384xf32> to vector<128x384xf32>
    %cst_163 = arith.constant dense<0.000000e+00> : vector<8x384xf32>
    %397 = tpu.matmul %392, %396, %cst_163 {dimension_numbers = #tpu.dot_dimension_numbers<[1], [0], [0], [1], [0, 0, 1, 1], [], []>} : vector<8x128xf32>, vector<128x384xf32>, vector<8x384xf32> -> vector<8x384xf32>
    %398 = vector.extract_strided_slice %394 {offsets = [0, 0], sizes = [8, 128], strides = [1, 1]} : vector<8x384xf32> to vector<8x128xf32>
    %399 = vector.extract_strided_slice %397 {offsets = [0, 0], sizes = [8, 128], strides = [1, 1]} : vector<8x384xf32> to vector<8x128xf32>
    %400 = arith.addf %398, %399 : vector<8x128xf32>
    %401 = arith.negf %400 : vector<8x128xf32>
    %402 = math.exp %401 : vector<8x128xf32>
    %cst_164 = arith.constant 1.000000e+00 : f32
    %403 = vector.broadcast %cst_164 : f32 to vector<8x128xf32>
    %404 = arith.addf %403, %402 : vector<8x128xf32>
    %405 = arith.divf %403, %404 : vector<8x128xf32>
    %406 = vector.extract_strided_slice %394 {offsets = [0, 128], sizes = [8, 128], strides = [1, 1]} : vector<8x384xf32> to vector<8x128xf32>
    %407 = vector.extract_strided_slice %397 {offsets = [0, 128], sizes = [8, 128], strides = [1, 1]} : vector<8x384xf32> to vector<8x128xf32>
    %408 = arith.addf %406, %407 : vector<8x128xf32>
    %409 = arith.negf %408 : vector<8x128xf32>
    %410 = math.exp %409 : vector<8x128xf32>
    %cst_165 = arith.constant 1.000000e+00 : f32
    %411 = vector.broadcast %cst_165 : f32 to vector<8x128xf32>
    %412 = arith.addf %411, %410 : vector<8x128xf32>
    %413 = arith.divf %411, %412 : vector<8x128xf32>
    %414 = vector.extract_strided_slice %394 {offsets = [0, 256], sizes = [8, 128], strides = [1, 1]} : vector<8x384xf32> to vector<8x128xf32>
    %415 = vector.extract_strided_slice %397 {offsets = [0, 256], sizes = [8, 128], strides = [1, 1]} : vector<8x384xf32> to vector<8x128xf32>
    %416 = arith.addf %415, %288 : vector<8x128xf32>
    %417 = arith.mulf %405, %416 : vector<8x128xf32>
    %418 = arith.addf %414, %417 : vector<8x128xf32>
    %419 = math.tanh %418 : vector<8x128xf32>
    %cst_166 = arith.constant 1.000000e+00 : f32
    %420 = vector.broadcast %cst_166 : f32 to vector<8x128xf32>
    %421 = arith.subf %420, %413 : vector<8x128xf32>
    %422 = arith.mulf %421, %419 : vector<8x128xf32>
    %423 = arith.mulf %413, %392 : vector<8x128xf32>
    %424 = arith.addf %422, %423 : vector<8x128xf32>
    %c24_167 = arith.constant 24 : index
    %c0_168 = arith.constant 0 : index
    %425 = vector.load %arg13[%c24_167, %c0_168] : memref<64x128xf32, #tpu.memory_space<vmem>>, vector<8x128xf32>
    tpu.vector_store %arg13[%c24_167, %c0_168], %424 {strides = array<i32>} : memref<64x128xf32, #tpu.memory_space<vmem>>, vector<8x128xf32>,
    %c32_169 = arith.constant 32 : index
    %c0_170 = arith.constant 0 : index
    %426 = vector.load %arg14[%c32_169, %c0_170] : memref<64x384xf32, #tpu.memory_space<vmem>>, vector<8x384xf32>
    %c1_171 = arith.constant 1 : index
    %c0_172 = arith.constant 0 : index
    %c0_173 = arith.constant 0 : index
    %427 = vector.load %arg6[%c1_171, %c0_172, %c0_173] : memref<2x128x384xf32, #tpu.memory_space<vmem>>, vector<1x128x384xf32>
    %428 = vector.shape_cast %427 : vector<1x128x384xf32> to vector<128x384xf32>
    %cst_174 = arith.constant dense<0.000000e+00> : vector<8x384xf32>
    %429 = tpu.matmul %424, %428, %cst_174 {dimension_numbers = #tpu.dot_dimension_numbers<[1], [0], [0], [1], [0, 0, 1, 1], [], []>} : vector<8x128xf32>, vector<128x384xf32>, vector<8x384xf32> -> vector<8x384xf32>
    %430 = vector.extract_strided_slice %426 {offsets = [0, 0], sizes = [8, 128], strides = [1, 1]} : vector<8x384xf32> to vector<8x128xf32>
    %431 = vector.extract_strided_slice %429 {offsets = [0, 0], sizes = [8, 128], strides = [1, 1]} : vector<8x384xf32> to vector<8x128xf32>
    %432 = arith.addf %430, %431 : vector<8x128xf32>
    %433 = arith.negf %432 : vector<8x128xf32>
    %434 = math.exp %433 : vector<8x128xf32>
    %cst_175 = arith.constant 1.000000e+00 : f32
    %435 = vector.broadcast %cst_175 : f32 to vector<8x128xf32>
    %436 = arith.addf %435, %434 : vector<8x128xf32>
    %437 = arith.divf %435, %436 : vector<8x128xf32>
    %438 = vector.extract_strided_slice %426 {offsets = [0, 128], sizes = [8, 128], strides = [1, 1]} : vector<8x384xf32> to vector<8x128xf32>
    %439 = vector.extract_strided_slice %429 {offsets = [0, 128], sizes = [8, 128], strides = [1, 1]} : vector<8x384xf32> to vector<8x128xf32>
    %440 = arith.addf %438, %439 : vector<8x128xf32>
    %441 = arith.negf %440 : vector<8x128xf32>
    %442 = math.exp %441 : vector<8x128xf32>
    %cst_176 = arith.constant 1.000000e+00 : f32
    %443 = vector.broadcast %cst_176 : f32 to vector<8x128xf32>
    %444 = arith.addf %443, %442 : vector<8x128xf32>
    %445 = arith.divf %443, %444 : vector<8x128xf32>
    %446 = vector.extract_strided_slice %426 {offsets = [0, 256], sizes = [8, 128], strides = [1, 1]} : vector<8x384xf32> to vector<8x128xf32>
    %447 = vector.extract_strided_slice %429 {offsets = [0, 256], sizes = [8, 128], strides = [1, 1]} : vector<8x384xf32> to vector<8x128xf32>
    %448 = arith.addf %447, %288 : vector<8x128xf32>
    %449 = arith.mulf %437, %448 : vector<8x128xf32>
    %450 = arith.addf %446, %449 : vector<8x128xf32>
    %451 = math.tanh %450 : vector<8x128xf32>
    %cst_177 = arith.constant 1.000000e+00 : f32
    %452 = vector.broadcast %cst_177 : f32 to vector<8x128xf32>
    %453 = arith.subf %452, %445 : vector<8x128xf32>
    %454 = arith.mulf %453, %451 : vector<8x128xf32>
    %455 = arith.mulf %445, %424 : vector<8x128xf32>
    %456 = arith.addf %454, %455 : vector<8x128xf32>
    %c32_178 = arith.constant 32 : index
    %c0_179 = arith.constant 0 : index
    %457 = vector.load %arg13[%c32_178, %c0_179] : memref<64x128xf32, #tpu.memory_space<vmem>>, vector<8x128xf32>
    tpu.vector_store %arg13[%c32_178, %c0_179], %456 {strides = array<i32>} : memref<64x128xf32, #tpu.memory_space<vmem>>, vector<8x128xf32>,
    %c40_180 = arith.constant 40 : index
    %c0_181 = arith.constant 0 : index
    %458 = vector.load %arg14[%c40_180, %c0_181] : memref<64x384xf32, #tpu.memory_space<vmem>>, vector<8x384xf32>
    %c1_182 = arith.constant 1 : index
    %c0_183 = arith.constant 0 : index
    %c0_184 = arith.constant 0 : index
    %459 = vector.load %arg6[%c1_182, %c0_183, %c0_184] : memref<2x128x384xf32, #tpu.memory_space<vmem>>, vector<1x128x384xf32>
    %460 = vector.shape_cast %459 : vector<1x128x384xf32> to vector<128x384xf32>
    %cst_185 = arith.constant dense<0.000000e+00> : vector<8x384xf32>
    %461 = tpu.matmul %456, %460, %cst_185 {dimension_numbers = #tpu.dot_dimension_numbers<[1], [0], [0], [1], [0, 0, 1, 1], [], []>} : vector<8x128xf32>, vector<128x384xf32>, vector<8x384xf32> -> vector<8x384xf32>
    %462 = vector.extract_strided_slice %458 {offsets = [0, 0], sizes = [8, 128], strides = [1, 1]} : vector<8x384xf32> to vector<8x128xf32>
    %463 = vector.extract_strided_slice %461 {offsets = [0, 0], sizes = [8, 128], strides = [1, 1]} : vector<8x384xf32> to vector<8x128xf32>
    %464 = arith.addf %462, %463 : vector<8x128xf32>
    %465 = arith.negf %464 : vector<8x128xf32>
    %466 = math.exp %465 : vector<8x128xf32>
    %cst_186 = arith.constant 1.000000e+00 : f32
    %467 = vector.broadcast %cst_186 : f32 to vector<8x128xf32>
    %468 = arith.addf %467, %466 : vector<8x128xf32>
    %469 = arith.divf %467, %468 : vector<8x128xf32>
    %470 = vector.extract_strided_slice %458 {offsets = [0, 128], sizes = [8, 128], strides = [1, 1]} : vector<8x384xf32> to vector<8x128xf32>
    %471 = vector.extract_strided_slice %461 {offsets = [0, 128], sizes = [8, 128], strides = [1, 1]} : vector<8x384xf32> to vector<8x128xf32>
    %472 = arith.addf %470, %471 : vector<8x128xf32>
    %473 = arith.negf %472 : vector<8x128xf32>
    %474 = math.exp %473 : vector<8x128xf32>
    %cst_187 = arith.constant 1.000000e+00 : f32
    %475 = vector.broadcast %cst_187 : f32 to vector<8x128xf32>
    %476 = arith.addf %475, %474 : vector<8x128xf32>
    %477 = arith.divf %475, %476 : vector<8x128xf32>
    %478 = vector.extract_strided_slice %458 {offsets = [0, 256], sizes = [8, 128], strides = [1, 1]} : vector<8x384xf32> to vector<8x128xf32>
    %479 = vector.extract_strided_slice %461 {offsets = [0, 256], sizes = [8, 128], strides = [1, 1]} : vector<8x384xf32> to vector<8x128xf32>
    %480 = arith.addf %479, %288 : vector<8x128xf32>
    %481 = arith.mulf %469, %480 : vector<8x128xf32>
    %482 = arith.addf %478, %481 : vector<8x128xf32>
    %483 = math.tanh %482 : vector<8x128xf32>
    %cst_188 = arith.constant 1.000000e+00 : f32
    %484 = vector.broadcast %cst_188 : f32 to vector<8x128xf32>
    %485 = arith.subf %484, %477 : vector<8x128xf32>
    %486 = arith.mulf %485, %483 : vector<8x128xf32>
    %487 = arith.mulf %477, %456 : vector<8x128xf32>
    %488 = arith.addf %486, %487 : vector<8x128xf32>
    %c40_189 = arith.constant 40 : index
    %c0_190 = arith.constant 0 : index
    %489 = vector.load %arg13[%c40_189, %c0_190] : memref<64x128xf32, #tpu.memory_space<vmem>>, vector<8x128xf32>
    tpu.vector_store %arg13[%c40_189, %c0_190], %488 {strides = array<i32>} : memref<64x128xf32, #tpu.memory_space<vmem>>, vector<8x128xf32>,
    %c48_191 = arith.constant 48 : index
    %c0_192 = arith.constant 0 : index
    %490 = vector.load %arg14[%c48_191, %c0_192] : memref<64x384xf32, #tpu.memory_space<vmem>>, vector<8x384xf32>
    %c1_193 = arith.constant 1 : index
    %c0_194 = arith.constant 0 : index
    %c0_195 = arith.constant 0 : index
    %491 = vector.load %arg6[%c1_193, %c0_194, %c0_195] : memref<2x128x384xf32, #tpu.memory_space<vmem>>, vector<1x128x384xf32>
    %492 = vector.shape_cast %491 : vector<1x128x384xf32> to vector<128x384xf32>
    %cst_196 = arith.constant dense<0.000000e+00> : vector<8x384xf32>
    %493 = tpu.matmul %488, %492, %cst_196 {dimension_numbers = #tpu.dot_dimension_numbers<[1], [0], [0], [1], [0, 0, 1, 1], [], []>} : vector<8x128xf32>, vector<128x384xf32>, vector<8x384xf32> -> vector<8x384xf32>
    %494 = vector.extract_strided_slice %490 {offsets = [0, 0], sizes = [8, 128], strides = [1, 1]} : vector<8x384xf32> to vector<8x128xf32>
    %495 = vector.extract_strided_slice %493 {offsets = [0, 0], sizes = [8, 128], strides = [1, 1]} : vector<8x384xf32> to vector<8x128xf32>
    %496 = arith.addf %494, %495 : vector<8x128xf32>
    %497 = arith.negf %496 : vector<8x128xf32>
    %498 = math.exp %497 : vector<8x128xf32>
    %cst_197 = arith.constant 1.000000e+00 : f32
    %499 = vector.broadcast %cst_197 : f32 to vector<8x128xf32>
    %500 = arith.addf %499, %498 : vector<8x128xf32>
    %501 = arith.divf %499, %500 : vector<8x128xf32>
    %502 = vector.extract_strided_slice %490 {offsets = [0, 128], sizes = [8, 128], strides = [1, 1]} : vector<8x384xf32> to vector<8x128xf32>
    %503 = vector.extract_strided_slice %493 {offsets = [0, 128], sizes = [8, 128], strides = [1, 1]} : vector<8x384xf32> to vector<8x128xf32>
    %504 = arith.addf %502, %503 : vector<8x128xf32>
    %505 = arith.negf %504 : vector<8x128xf32>
    %506 = math.exp %505 : vector<8x128xf32>
    %cst_198 = arith.constant 1.000000e+00 : f32
    %507 = vector.broadcast %cst_198 : f32 to vector<8x128xf32>
    %508 = arith.addf %507, %506 : vector<8x128xf32>
    %509 = arith.divf %507, %508 : vector<8x128xf32>
    %510 = vector.extract_strided_slice %490 {offsets = [0, 256], sizes = [8, 128], strides = [1, 1]} : vector<8x384xf32> to vector<8x128xf32>
    %511 = vector.extract_strided_slice %493 {offsets = [0, 256], sizes = [8, 128], strides = [1, 1]} : vector<8x384xf32> to vector<8x128xf32>
    %512 = arith.addf %511, %288 : vector<8x128xf32>
    %513 = arith.mulf %501, %512 : vector<8x128xf32>
    %514 = arith.addf %510, %513 : vector<8x128xf32>
    %515 = math.tanh %514 : vector<8x128xf32>
    %cst_199 = arith.constant 1.000000e+00 : f32
    %516 = vector.broadcast %cst_199 : f32 to vector<8x128xf32>
    %517 = arith.subf %516, %509 : vector<8x128xf32>
    %518 = arith.mulf %517, %515 : vector<8x128xf32>
    %519 = arith.mulf %509, %488 : vector<8x128xf32>
    %520 = arith.addf %518, %519 : vector<8x128xf32>
    %c48_200 = arith.constant 48 : index
    %c0_201 = arith.constant 0 : index
    %521 = vector.load %arg13[%c48_200, %c0_201] : memref<64x128xf32, #tpu.memory_space<vmem>>, vector<8x128xf32>
    tpu.vector_store %arg13[%c48_200, %c0_201], %520 {strides = array<i32>} : memref<64x128xf32, #tpu.memory_space<vmem>>, vector<8x128xf32>,
    %c56_202 = arith.constant 56 : index
    %c0_203 = arith.constant 0 : index
    %522 = vector.load %arg14[%c56_202, %c0_203] : memref<64x384xf32, #tpu.memory_space<vmem>>, vector<8x384xf32>
    %c1_204 = arith.constant 1 : index
    %c0_205 = arith.constant 0 : index
    %c0_206 = arith.constant 0 : index
    %523 = vector.load %arg6[%c1_204, %c0_205, %c0_206] : memref<2x128x384xf32, #tpu.memory_space<vmem>>, vector<1x128x384xf32>
    %524 = vector.shape_cast %523 : vector<1x128x384xf32> to vector<128x384xf32>
    %cst_207 = arith.constant dense<0.000000e+00> : vector<8x384xf32>
    %525 = tpu.matmul %520, %524, %cst_207 {dimension_numbers = #tpu.dot_dimension_numbers<[1], [0], [0], [1], [0, 0, 1, 1], [], []>} : vector<8x128xf32>, vector<128x384xf32>, vector<8x384xf32> -> vector<8x384xf32>
    %526 = vector.extract_strided_slice %522 {offsets = [0, 0], sizes = [8, 128], strides = [1, 1]} : vector<8x384xf32> to vector<8x128xf32>
    %527 = vector.extract_strided_slice %525 {offsets = [0, 0], sizes = [8, 128], strides = [1, 1]} : vector<8x384xf32> to vector<8x128xf32>
    %528 = arith.addf %526, %527 : vector<8x128xf32>
    %529 = arith.negf %528 : vector<8x128xf32>
    %530 = math.exp %529 : vector<8x128xf32>
    %cst_208 = arith.constant 1.000000e+00 : f32
    %531 = vector.broadcast %cst_208 : f32 to vector<8x128xf32>
    %532 = arith.addf %531, %530 : vector<8x128xf32>
    %533 = arith.divf %531, %532 : vector<8x128xf32>
    %534 = vector.extract_strided_slice %522 {offsets = [0, 128], sizes = [8, 128], strides = [1, 1]} : vector<8x384xf32> to vector<8x128xf32>
    %535 = vector.extract_strided_slice %525 {offsets = [0, 128], sizes = [8, 128], strides = [1, 1]} : vector<8x384xf32> to vector<8x128xf32>
    %536 = arith.addf %534, %535 : vector<8x128xf32>
    %537 = arith.negf %536 : vector<8x128xf32>
    %538 = math.exp %537 : vector<8x128xf32>
    %cst_209 = arith.constant 1.000000e+00 : f32
    %539 = vector.broadcast %cst_209 : f32 to vector<8x128xf32>
    %540 = arith.addf %539, %538 : vector<8x128xf32>
    %541 = arith.divf %539, %540 : vector<8x128xf32>
    %542 = vector.extract_strided_slice %522 {offsets = [0, 256], sizes = [8, 128], strides = [1, 1]} : vector<8x384xf32> to vector<8x128xf32>
    %543 = vector.extract_strided_slice %525 {offsets = [0, 256], sizes = [8, 128], strides = [1, 1]} : vector<8x384xf32> to vector<8x128xf32>
    %544 = arith.addf %543, %288 : vector<8x128xf32>
    %545 = arith.mulf %533, %544 : vector<8x128xf32>
    %546 = arith.addf %542, %545 : vector<8x128xf32>
    %547 = math.tanh %546 : vector<8x128xf32>
    %cst_210 = arith.constant 1.000000e+00 : f32
    %548 = vector.broadcast %cst_210 : f32 to vector<8x128xf32>
    %549 = arith.subf %548, %541 : vector<8x128xf32>
    %550 = arith.mulf %549, %547 : vector<8x128xf32>
    %551 = arith.mulf %541, %520 : vector<8x128xf32>
    %552 = arith.addf %550, %551 : vector<8x128xf32>
    %c56_211 = arith.constant 56 : index
    %c0_212 = arith.constant 0 : index
    %553 = vector.load %arg13[%c56_211, %c0_212] : memref<64x128xf32, #tpu.memory_space<vmem>>, vector<8x128xf32>
    tpu.vector_store %arg13[%c56_211, %c0_212], %552 {strides = array<i32>} : memref<64x128xf32, #tpu.memory_space<vmem>>, vector<8x128xf32>,
    %c1_213 = arith.constant 1 : index
    %c0_214 = arith.constant 0 : index
    %c0_215 = arith.constant 0 : index
    %554 = vector.load %arg12[%c1_213, %c0_214, %c0_215] : memref<2x8x128xf32, #tpu.memory_space<vmem>>, vector<1x8x128xf32>
    %555 = vector.shape_cast %554 : vector<1x8x128xf32> to vector<8x128xf32>
    %556 = vector.shape_cast %552 : vector<8x128xf32> to vector<1x8x128xf32>
    tpu.vector_store %arg12[%c1_213, %c0_214, %c0_215], %556 {strides = array<i32>} : memref<2x8x128xf32, #tpu.memory_space<vmem>>, vector<1x8x128xf32>,
    %c0_216 = arith.constant 0 : index
    %c0_217 = arith.constant 0 : index
    %557 = vector.load %arg13[%c0_216, %c0_217] : memref<64x128xf32, #tpu.memory_space<vmem>>, vector<64x128xf32>
    %c0_218 = arith.constant 0 : index
    %c0_219 = arith.constant 0 : index
    %558 = vector.load %arg9[%c0_218, %c0_219] : memref<128x128xf32, #tpu.memory_space<vmem>>, vector<128x128xf32>
    %cst_220 = arith.constant dense<0.000000e+00> : vector<64x128xf32>
    %559 = tpu.matmul %557, %558, %cst_220 {dimension_numbers = #tpu.dot_dimension_numbers<[1], [0], [0], [1], [0, 0, 1, 1], [], []>} : vector<64x128xf32>, vector<128x128xf32>, vector<64x128xf32> -> vector<64x128xf32>
    %c0_221 = arith.constant 0 : index
    %c0_222 = arith.constant 0 : index
    %560 = vector.load %arg10[%c0_221, %c0_222] : memref<1x128xf32, #tpu.memory_space<vmem>>, vector<1x128xf32>
    %561 = vector.broadcast %560 : vector<1x128xf32> to vector<64x128xf32>
    %562 = arith.addf %559, %561 : vector<64x128xf32>
    %563 = math.tanh %562 : vector<64x128xf32>
    %564 = vector.shape_cast %563 : vector<64x128xf32> to vector<8x8x128xf32>
    %c0_223 = arith.constant 0 : index
    %c0_224 = arith.constant 0 : index
    %c0_225 = arith.constant 0 : index
    %565 = vector.load %arg11[%c0_223, %c0_224, %c0_225] : memref<8x8x128xf32, #tpu.memory_space<vmem>>, vector<8x8x128xf32>
    tpu.vector_store %arg11[%c0_223, %c0_224, %c0_225], %564 {strides = array<i32>} : memref<8x8x128xf32, #tpu.memory_space<vmem>>, vector<8x8x128xf32>,
    return
  }
  func.func @transform_0(%arg0: i32) -> (i32, i32, i32) {
    %c0_i32 = arith.constant 0 : i32
    %c0_i32_0 = arith.constant 0 : i32
    %c0_i32_1 = arith.constant 0 : i32
    return %c0_i32, %arg0, %c0_i32_0 : i32, i32, i32
  }
  func.func @transform_1(%arg0: i32) -> (i32, i32, i32) {
    %c0_i32 = arith.constant 0 : i32
    %c0_i32_0 = arith.constant 0 : i32
    %c0_i32_1 = arith.constant 0 : i32
    return %c0_i32, %arg0, %c0_i32_0 : i32, i32, i32
  }
  func.func @transform_2(%arg0: i32) -> (i32, i32) {
    %c0_i32 = arith.constant 0 : i32
    %c0_i32_0 = arith.constant 0 : i32
    %c0_i32_1 = arith.constant 0 : i32
    return %c0_i32, %c0_i32_0 : i32, i32
  }
  func.func @transform_3(%arg0: i32) -> (i32, i32) {
    %c0_i32 = arith.constant 0 : i32
    %c0_i32_0 = arith.constant 0 : i32
    %c0_i32_1 = arith.constant 0 : i32
    return %c0_i32, %c0_i32_0 : i32, i32
  }
  func.func @transform_4(%arg0: i32) -> (i32, i32, i32) {
    %c0_i32 = arith.constant 0 : i32
    %c0_i32_0 = arith.constant 0 : i32
    %c0_i32_1 = arith.constant 0 : i32
    %c0_i32_2 = arith.constant 0 : i32
    return %c0_i32, %c0_i32_0, %c0_i32_1 : i32, i32, i32
  }
  func.func @transform_5(%arg0: i32) -> (i32, i32, i32) {
    %c0_i32 = arith.constant 0 : i32
    %c0_i32_0 = arith.constant 0 : i32
    %c0_i32_1 = arith.constant 0 : i32
    %c0_i32_2 = arith.constant 0 : i32
    return %c0_i32, %c0_i32_0, %c0_i32_1 : i32, i32, i32
  }
  func.func @transform_6(%arg0: i32) -> (i32, i32, i32) {
    %c0_i32 = arith.constant 0 : i32
    %c0_i32_0 = arith.constant 0 : i32
    %c0_i32_1 = arith.constant 0 : i32
    %c0_i32_2 = arith.constant 0 : i32
    return %c0_i32, %c0_i32_0, %c0_i32_1 : i32, i32, i32
  }
  func.func @transform_7(%arg0: i32) -> (i32, i32, i32) {
    %c0_i32 = arith.constant 0 : i32
    %c0_i32_0 = arith.constant 0 : i32
    %c0_i32_1 = arith.constant 0 : i32
    %c0_i32_2 = arith.constant 0 : i32
    return %c0_i32, %c0_i32_0, %c0_i32_1 : i32, i32, i32
  }
  func.func @transform_8(%arg0: i32) -> (i32, i32) {
    %c0_i32 = arith.constant 0 : i32
    %c0_i32_0 = arith.constant 0 : i32
    %c0_i32_1 = arith.constant 0 : i32
    return %c0_i32, %c0_i32_0 : i32, i32
  }
  func.func @transform_9(%arg0: i32) -> (i32, i32) {
    %c0_i32 = arith.constant 0 : i32
    %c0_i32_0 = arith.constant 0 : i32
    %c0_i32_1 = arith.constant 0 : i32
    return %c0_i32, %c0_i32_0 : i32, i32
  }
  func.func @transform_10(%arg0: i32) -> (i32, i32, i32) {
    %c0_i32 = arith.constant 0 : i32
    %c0_i32_0 = arith.constant 0 : i32
    %c0_i32_1 = arith.constant 0 : i32
    return %c0_i32, %arg0, %c0_i32_0 : i32, i32, i32
  }
  func.func @transform_11(%arg0: i32) -> (i32, i32, i32) {
    %c0_i32 = arith.constant 0 : i32
    %c0_i32_0 = arith.constant 0 : i32
    %c0_i32_1 = arith.constant 0 : i32
    return %c0_i32, %arg0, %c0_i32_0 : i32, i32, i32
  }
}

</mosaic_0001>

<bundles_post_ra>
// kernel: tpu_custom_call.1
= control target key start
LH: loop header
LB: loop body
LE: loop exit
PB: predicated region body
PF: predicated region fallthrough
CT: control target
= control target key end

     0   :  { %17 = vsyncpa [#allocation5], 0  ;;  %s7856_s0 = inlined_call_operand.vmem [shape: f32[8,8,2], index: 0, kind: input, shape index: {}]   ;;  %s7857_s1 = inlined_call_operand.vmem [shape: f32[2,8,128], index: 1, kind: input, shape index: {}]   ;;  %s7858_s2 = inlined_call_operand.vmem [shape: f32[2,128], index: 2, kind: input, shape index: {}]   ;;  %s7859_s3 = inlined_call_operand.vmem [shape: f32[1,128], index: 3, kind: input, shape index: {}]   ;;  %s7860_s4 = inlined_call_operand.hbm [shape: f32[2,128,384], index: 4, kind: input, shape index: {}]   ;;  %s7861_s5 = inlined_call_operand.hbm [shape: f32[2,128,384], index: 5, kind: input, shape index: {}]   ;;  %s7862_s6 = inlined_call_operand.vmem [shape: f32[2,1,384], index: 6, kind: input, shape index: {}]   ;;  %s7863_s7 = inlined_call_operand.vmem [shape: f32[2,1,128], index: 7, kind: input, shape index: {}]   ;;  %s7864_s8 = inlined_call_operand.hbm [shape: f32[128,128], index: 8, kind: input, shape index: {}]   ;;  %s7865_s9 = inlined_call_operand.vmem [shape: f32[1,128], index: 9, kind: input, shape index: {}]   ;;  %s7866_s10 = inlined_call_operand.hbm [shape: f32[8,8,128], index: 10, kind: output, shape index: {0}]   ;;  %s7867_s11 = inlined_call_operand.hbm [shape: f32[2,8,128], index: 11, kind: output, shape index: {1}]  }
   0x1   :  { %18 = vsyncpa [#allocation8], 0 }
   0x2   :  { %19 = vsyncpa [#allocation6], 0 }
   0x3   :  { %20 = vsyncpa [#allocation12], 0  ;;  %s5946_s17 = smov [#allocation7]   ;;  %s5947_s19 = smov [#allocation4]  }
   0x4   :  { %s46_s18 = sshll.u32 %s5946_s17, 4  ;;  %s34_s20 = sshll.u32 %s5947_s19, 4  ;;  %s47_s18 = int_to_ptr.vmem [resolvable:$true] %s46_s18  ;;  %s35_s20 = int_to_ptr.vmem [resolvable:$true] %s34_s20 }
   0x5   :  { %s5846_s21 = scalar_lea.vmem %s47_s18, 12288  ;;  %p5851_p1 = scmp.lt.s32.totalorder %s47_s18, %s47_s18 }
   0x6   :  { %p5847_p0 = scmp.ne.s32.totalorder %s47_s18, %s5846_s21  ;;  %p5852_p2 = scmp.lt.s32.totalorder %s5846_s21, %s5846_s21 }
   0x8   :  { %p5853_p3 = por %p5852_p2, %p5851_p1 }
   0xa   :  { %p5854_p4 = pnand %p5853_p3, %p5847_p0 }
   0xc   :  { %5857 = shalt.err (!%p5854_p4)
}
   0xd   :  { %s5948_s22 = smov 384   ;;  %s5949_s23 = smov 24  }
   0xe   :  { %52 = dma.hbm_to_vmem [thread:$0]  %s7861_s5, 12288, %s47_s18, [#allocation8], %s5948_s22, %s5948_s22, %s5949_s23  }
   0xf   :  { %s5866_s26 = scalar_lea.vmem %s35_s20, 12288  ;;  %p5871_p6 = scmp.lt.s32.totalorder %s35_s20, %s35_s20 }
  0x10   :  { %p5867_p5 = scmp.ne.s32.totalorder %s35_s20, %s5866_s26  ;;  %p5872_p7 = scmp.lt.s32.totalorder %s5866_s26, %s5866_s26 }
  0x12   :  { %p5873_p8 = por %p5872_p7, %p5871_p6 }
  0x14   :  { %p5874_p9 = pnand %p5873_p8, %p5867_p5 }
  0x16   :  { %5877 = shalt.err (!%p5874_p9)
}
  0x17   :  { %40 = dma.hbm_to_vmem [thread:$0]  %s7860_s4, 12288, %s35_s20, [#allocation5], %s5948_s22, %s5948_s22, %s5949_s23  }
  0x18   :  { %s5950_s29 = smov [#allocation9]  }
  0x19   :  { %s62_s30 = sshll.u32 %s5950_s29, 4  ;;  %s63_s30 = int_to_ptr.vmem [resolvable:$true] %s62_s30 }
  0x1a   :  { %s5886_s12 = scalar_lea.vmem %s63_s30, 2048  ;;  %p5891_p11 = scmp.lt.s32.totalorder %s63_s30, %s63_s30 }
  0x1b   :  { %p5887_p10 = scmp.ne.s32.totalorder %s63_s30, %s5886_s12  ;;  %p5892_p12 = scmp.lt.s32.totalorder %s5886_s12, %s5886_s12 }
  0x1d   :  { %p5893_p13 = por %p5892_p12, %p5891_p11 }
  0x1f   :  { %p5894_p0 = pnand %p5893_p13, %p5887_p10 }
  0x21   :  { %5897 = shalt.err (!%p5894_p0)
}
  0x22   :  { %s5951_s5 = smov 128   ;;  %s5952_s13 = smov 8  }
  0x23   :  { %68 = dma.hbm_to_vmem [thread:$0]  %s7864_s8, 2048, %s63_s30, [#allocation8], %s5951_s5, %s5951_s5, %s5952_s13  }
  0x24   :  { %5938 = dma.done.wait [#allocation5], 12288  }
  0x25   :  { %5939 = vsyncadd [#allocation5], 4294955008 }
  0x26   :  { %5940 = dma.done.wait [#allocation8], 14336  }
  0x27   :  { %5941 = vsyncadd [#allocation8], 4294952960  ;;  %vm121_vm0 = vcmask 1041408   ;;  %vm96_vm1 = vcmask 15360   ;;  %v88_v0 = vld [vmem:[%s7858_s2] sm:$0x3] }
  0x28   :  { %v80_v1 = vld [vmem:[%s7856_s0] sm:$0xff]  ;;  %v81_v2 = vld [vmem:[%s7856_s0 + $0x8] sm:$0xff]  ;;  %4927 = vmatprep.subr.msk.mxu1 %vm121_vm0, %v88_v0  ;;  %v82_v3 = vld [vmem:[%s7856_s0 + $0x10] sm:$0xff]  ;;  %vm5954_vm2 = vmmov 0  }
  0x29   :  { %4929 = vmatprep.mubr.msk.f32.mxu1 %vm96_vm1, %v80_v1  ;;  %4928 = vmatpush3.msk.msra.mxu1 %vm121_vm0, %v88_v0  ;;  %v308_v4 = vld [vmem:[#allocation4 + $0x170] sm:$0xff]  ;;  %v307_v5 = vld [vmem:[#allocation4 + $0x168] sm:$0xff]  ;;  %v305_v6 = vld [vmem:[#allocation4 + $0x158] sm:$0xff] }
  0x2a   :  { %4930 = vmatmul.mubr.msk.f32.vlgmr.msra.gmra.mxu1 %vm96_vm1, %v81_v2  ;;  %v83_v7 = vld [vmem:[%s7856_s0 + $0x18] sm:$0xff]  ;;  %327 = vmatprep.subr.mxu0 %v308_v4  ;;  %v304_v8 = vld [vmem:[#allocation4 + $0x150] sm:$0xff]  ;;  %v84_v10 = vld [vmem:[%s7856_s0 + $0x20] sm:$0xff] }
  0x2b   :  { %4932 = vmatprep.mubr.msk.f32.mxu1 %vm96_vm1, %v82_v3  ;;  %v6047_v9 = vld [vmem:[#allocation7 + $0x170] sm:$0xff]  ;;  %328 = vmatpush1.msra.mxu0 %v307_v5  ;;  %v302_v11 = vld [vmem:[#allocation4 + $0x140] sm:$0xff]  ;;  %v6053_v12 = vld [vmem:[#allocation7 + $0x168] sm:$0xff] }
  0x2c   :  { %620 = vmatprep.subr.mxu1 %v6047_v9  ;;  %329 = vmatprep.subr.mxu0 %v305_v6  ;;  %v301_v13 = vld [vmem:[#allocation4 + $0x138] sm:$0xff]  ;;  %v299_v15 = vld [vmem:[#allocation4 + $0x128] sm:$0xff]  ;;  %v6059_v16 = vld [vmem:[#allocation7 + $0x150] sm:$0xff] }
  0x2d   :  { %621 = vmatpush1.msra.mxu1 %v6053_v12  ;;  %v6056_v14 = vld [vmem:[#allocation7 + $0x158] sm:$0xff]  ;;  %330 = vmatpush1.msra.mxu0 %v304_v8  ;;  %v85_v17 = vld [vmem:[%s7856_s0 + $0x28] sm:$0xff]  ;;  %v298_v18 = vld [vmem:[#allocation4 + $0x120] sm:$0xff]  ;;  %v7868_v8 = vmov 0.0  }
  0x2e   :  { %4933 = vmatmul.mubr.msk.f32.gmra.mxu1 %vm96_vm1, %v83_v7  ;;  %331 = vmatprep.subr.mxu0 %v302_v11  ;;  %v86_v19 = vld [vmem:[%s7856_s0 + $0x30] sm:$0xff]  ;;  %v6069_v20 = vld [vmem:[#allocation7 + $0x140] sm:$0xff]  ;;  %v6072_v22 = vld [vmem:[#allocation7 + $0x138] sm:$0xff] }
  0x2f   :  { %4935 = vmatprep.mubr.msk.f32.mxu1 %vm96_vm1, %v84_v10  ;;  %332 = vmatpush1.msra.mxu0 %v301_v13  ;;  %v296_v21 = vld [vmem:[#allocation4 + $0x110] sm:$0xff]  ;;  %v295_v23 = vld [vmem:[#allocation4 + $0x108] sm:$0xff]  ;;  %v87_v25 = vld [vmem:[%s7856_s0 + $0x38] sm:$0xff] }
  0x30   :  { %622 = vmatprep.subr.mxu1 %v6056_v14  ;;  %333 = vmatprep.subr.mxu0 %v299_v15  ;;  %v6075_v24 = vld [vmem:[#allocation7 + $0x128] sm:$0xff]  ;;  %v293_v26 = vld [vmem:[#allocation4 + $0xf8] sm:$0xff]  ;;  %v6083_v27 = vld [vmem:[#allocation7 + $0x120] sm:$0xff] }
  0x31   :  { %623 = vmatpush1.msra.mxu1 %v6059_v16  ;;  %334 = vmatpush1.msra.mxu0 %v298_v18  ;;  %v292_v28 = vld [vmem:[#allocation4 + $0xf0] sm:$0xff]  ;;  %v290_v30 = vld [vmem:[#allocation4 + $0xe0] sm:$0xff]  ;;  %v6089_v31 = vld [vmem:[#allocation7 + $0x108] sm:$0xff] }
  0x32   :  { %4936 = vmatmul.mubr.msk.f32.gmra.mxu1 %vm96_vm1, %v85_v17  ;;  %624 = vmatprep.subr.mxu1 %v6069_v20  ;;  %v6086_v29 = vld [vmem:[#allocation7 + $0x110] sm:$0xff]  ;;  %v289_v32 = vld [vmem:[#allocation4 + $0xd8] sm:$0xff]  ;;  %v287_v34 = vld [vmem:[#allocation4 + $0xc8] sm:$0xff] }
  0x33   :  { %4938 = vmatprep.mubr.msk.f32.mxu1 %vm96_vm1, %v86_v19  ;;  %335 = vmatprep.subr.mxu0 %v296_v21  ;;  %v6092_v33 = vld [vmem:[#allocation7 + $0xf8] sm:$0xff]  ;;  %v6097_v35 = vld [vmem:[#allocation7 + $0xf0] sm:$0xff]  ;;  %v286_v36 = vld [vmem:[#allocation4 + $0xc0] sm:$0xff] }
  0x34   :  { %625 = vmatpush1.msra.mxu1 %v6072_v22  ;;  %336 = vmatpush1.msra.mxu0 %v295_v23  ;;  %v6100_v37 = vld [vmem:[#allocation7 + $0xe0] sm:$0xff]  ;;  %v284_v38 = vld [vmem:[#allocation4 + $0xb0] sm:$0xff]  ;;  %v6103_v39 = vld [vmem:[#allocation7 + $0xd8] sm:$0xff] }
  0x35   :  { %626 = vmatprep.subr.mxu1 %v6075_v24  ;;  %337 = vmatprep.subr.mxu0 %v293_v26  ;;  %v283_v40 = vld [vmem:[#allocation4 + $0xa8] sm:$0xff]  ;;  %v281_v42 = vld [vmem:[#allocation4 + $0x98] sm:$0xff]  ;;  %v6109_v43 = vld [vmem:[#allocation7 + $0xc0] sm:$0xff] }
  0x36   :  { %4939 = vmatmul.mubr.msk.f32.gmra.mxu1 %vm96_vm1, %v87_v25  ;;  %338 = vmatpush1.msra.mxu0 %v292_v28  ;;  %v6106_v41 = vld [vmem:[#allocation7 + $0xc8] sm:$0xff]  ;;  %v280_v44 = vld [vmem:[#allocation4 + $0x90] sm:$0xff]  ;;  %v278_v46 = vld [vmem:[#allocation4 + $0x80] sm:$0xff] }
  0x37   :  { %627 = vmatpush1.msra.mxu1 %v6083_v27  ;;  %339 = vmatprep.subr.mxu0 %v290_v30  ;;  %v6112_v45 = vld [vmem:[#allocation7 + $0xb0] sm:$0xff]  ;;  %v6115_v47 = vld [vmem:[#allocation7 + $0xa8] sm:$0xff]  ;;  %v277_v48 = vld [vmem:[#allocation4 + $0x78] sm:$0xff] }
  0x38   :  { %628 = vmatprep.subr.mxu1 %v6086_v29  ;;  %340 = vmatpush1.msra.mxu0 %v289_v32  ;;  %v6118_v49 = vld [vmem:[#allocation7 + $0x98] sm:$0xff]  ;;  %v275_v50 = vld [vmem:[#allocation4 + $0x68] sm:$0xff]  ;;  %v6121_v51 = vld [vmem:[#allocation7 + $0x90] sm:$0xff] }
  0x39   :  { %629 = vmatpush1.msra.mxu1 %v6089_v31  ;;  %341 = vmatprep.subr.mxu0 %v287_v34  ;;  %v274_v52 = vld [vmem:[#allocation4 + $0x60] sm:$0xff]  ;;  %v272_v54 = vld [vmem:[#allocation4 + $0x50] sm:$0xff]  ;;  %v6127_v55 = vld [vmem:[#allocation7 + $0x78] sm:$0xff] }
  0x3a   :  { %630 = vmatprep.subr.mxu1 %v6092_v33  ;;  %342 = vmatpush1.msra.mxu0 %v286_v36  ;;  %v6124_v53 = vld [vmem:[#allocation7 + $0x80] sm:$0xff]  ;;  %v271_v56 = vld [vmem:[#allocation4 + $0x48] sm:$0xff]  ;;  %v269_v58 = vld [vmem:[#allocation4 + $0x38] sm:$0xff] }
  0x3b   :  { %631 = vmatpush1.msra.mxu1 %v6097_v35  ;;  %343 = vmatprep.subr.mxu0 %v284_v38  ;;  %v6130_v57 = vld [vmem:[#allocation7 + $0x68] sm:$0xff]  ;;  %v6132_v59 = vld [vmem:[#allocation7 + $0x60] sm:$0xff]  ;;  %v268_v60 = vld [vmem:[#allocation4 + $0x30] sm:$0xff] }
  0x3c   :  { %632 = vmatprep.subr.mxu1 %v6100_v37  ;;  %344 = vmatpush1.msra.mxu0 %v283_v40  ;;  %v6135_v61 = vld [vmem:[#allocation7 + $0x50] sm:$0xff]  ;;  %v266_v62 = vld [vmem:[#allocation4 + $0x20] sm:$0xff]  ;;  %v6138_v63 = vld [vmem:[#allocation7 + $0x48] sm:$0xff] }
  0x3d   :  { %633 = vmatpush1.msra.mxu1 %v6103_v39  ;;  %345 = vmatprep.subr.mxu0 %v281_v42  ;;  %v265_v0 = vld [vmem:[#allocation4 + $0x18] sm:$0xff]  ;;  %v263_v2 = vld [vmem:[#allocation4 + $0x8] sm:$0xff]  ;;  %v6143_v3 = vld [vmem:[#allocation7 + $0x30] sm:$0xff] }
  0x3e   :  { %634 = vmatprep.subr.mxu1 %v6106_v41  ;;  %346 = vmatpush1.msra.mxu0 %v280_v44  ;;  %v6140_v1 = vld [vmem:[#allocation7 + $0x38] sm:$0xff]  ;;  %v262_v4 = vld [vmem:[#allocation4] sm:$0xff]  ;;  %v6158_v10 = vld [vmem:[#allocation7 + $0x8] sm:$0xff] }
  0x3f   :  { %635 = vmatpush1.msra.mxu1 %v6109_v43  ;;  %347 = vmatprep.subr.mxu0 %v278_v46  ;;  %v6146_v5 = vld [vmem:[#allocation7 + $0x20] sm:$0xff]  ;;  %v6149_v6 = vld [vmem:[#allocation4 + $0x178] sm:$0xff]  ;;  %7928 = vst [vmem:[#allocation18_spill] sm:$0xff] %v6158_v10  ;;  %v303_v40 = vld [vmem:[#allocation4 + $0x148] sm:$0xff] }
  0x40   :  { %636 = vmatprep.subr.mxu1 %v6112_v45  ;;  %348 = vmatpush1.msra.mxu0 %v277_v48  ;;  %v6152_v7 = vld [vmem:[#allocation7 + $0x18] sm:$0xff]  ;;  %v6162_v11 = vld [vmem:[#allocation7] sm:$0xff]  ;;  %v300_v48 = vld [vmem:[#allocation4 + $0x130] sm:$0xff] }
  0x41   :  { %637 = vmatpush1.msra.mxu1 %v6115_v47  ;;  %349 = vmatprep.subr.mxu0 %v275_v50  ;;  %7927 = vst [vmem:[#allocation17_spill] sm:$0xff] %v6152_v7  ;;  %7929 = vst [vmem:[#allocation19_spill] sm:$0xff] %v6162_v11  ;;  %v6168_v13 = vld [vmem:[%s7857_s1] sm:$0xff]  ;;  %v297_v50 = vld [vmem:[#allocation4 + $0x118] sm:$0xff] }
  0x42   :  { %638 = vmatprep.subr.mxu1 %v6118_v49  ;;  %350 = vmatpush1.msra.mxu0 %v274_v52  ;;  %v4526_v17 = vld [vmem:[%s7859_s3] ss:$0 sm:$0xff] }
  0x43   :  { %639 = vmatpush1.msra.mxu1 %v6121_v51  ;;  %351 = vmatprep.subr.mxu0 %v272_v54  ;;  %v306_v36 = vld [vmem:[#allocation4 + $0x160] sm:$0xff] }
  0x44   :  { %640 = vmatprep.subr.mxu1 %v6124_v53  ;;  %352 = vmatpush1.msra.mxu0 %v271_v56  ;;  %v294_v56 = vld [vmem:[#allocation4 + $0x100] sm:$0xff] }
  0x45   :  { %641 = vmatpush1.msra.mxu1 %v6127_v55  ;;  %353 = vmatprep.subr.mxu0 %v269_v58  ;;  %v291_v58 = vld [vmem:[#allocation4 + $0xe8] sm:$0xff] }
  0x46   :  { %642 = vmatprep.subr.mxu1 %v6130_v57  ;;  %354 = vmatpush1.msra.mxu0 %v268_v60 }
  0x47   :  { %643 = vmatpush1.msra.mxu1 %v6132_v59  ;;  %355 = vmatprep.subr.mxu0 %v266_v62 }
  0x48   :  { %644 = vmatprep.subr.mxu1 %v6135_v61  ;;  %356 = vmatpush1.msra.mxu0 %v265_v0  ;;  %v288_v0 = vld [vmem:[#allocation4 + $0xd0] sm:$0xff] }
  0x49   :  { %645 = vmatpush1.msra.mxu1 %v6138_v63  ;;  %357 = vmatprep.subr.mxu0 %v263_v2  ;;  %v285_v2 = vld [vmem:[#allocation4 + $0xb8] sm:$0xff] }
  0x4a   :  { %646 = vmatprep.subr.mxu1 %v6140_v1  ;;  %358 = vmatpush1.msra.mxu0 %v262_v4 }
  0x4b   :  { %647 = vmatpush1.msra.mxu1 %v6143_v3  ;;  %391 = vmatprep.mubr.f32.mxu0 %v7868_v8 }
  0x4c   :  { %648 = vmatprep.subr.mxu1 %v6146_v5  ;;  %4941 = vmatprep.subr.mxu0 %v6149_v6 }
  0x4d   :  { %649 = vmatpush1.msra.mxu1 %v6152_v7  ;;  %684 = vmatprep.mubr.f32.mxu1 %v7868_v8 }
  0x4e   :  { %650 = vmatprep.subr.mxu1 %v6158_v10 }
  0x4f   :  { %651 = vmatpush1.msra.mxu1 %v6162_v11 }
  0x50   :  { %685 = vmatmul.mubr.f32.vlgmr.msra.gmra.mxu1 %v6168_v13  ;;  %835 = vmatprep.subr.mxu1 %v6047_v9 }
  0x51   :  { %836 = vmatpush1.msra.mxu1 %v6053_v12  ;;  %899 = vmatprep.mubr.f32.mxu1 %v7868_v8 }
  0x52   :  { %837 = vmatprep.subr.mxu1 %v6056_v14 }
  0x53   :  { %838 = vmatpush1.msra.mxu1 %v6059_v16 }
  0x54   :  { %839 = vmatprep.subr.mxu1 %v6069_v20 }
  0x55   :  { %840 = vmatpush1.msra.mxu1 %v6072_v22 }
  0x56   :  { %841 = vmatprep.subr.mxu1 %v6075_v24 }
  0x57   :  { %842 = vmatpush1.msra.mxu1 %v6083_v27 }
  0x58   :  { %843 = vmatprep.subr.mxu1 %v6086_v29 }
  0x59   :  { %844 = vmatpush1.msra.mxu1 %v6089_v31 }
  0x5a   :  { %845 = vmatprep.subr.mxu1 %v6092_v33 }
  0x5b   :  { %846 = vmatpush1.msra.mxu1 %v6097_v35 }
  0x5c   :  { %847 = vmatprep.subr.mxu1 %v6100_v37 }
  0x5d   :  { %848 = vmatpush1.msra.mxu1 %v6103_v39 }
  0x5e   :  { %849 = vmatprep.subr.mxu1 %v6106_v41 }
  0x5f   :  { %850 = vmatpush1.msra.mxu1 %v6109_v43 }
  0x60   :  { %851 = vmatprep.subr.mxu1 %v6112_v45 }
  0x61   :  { %852 = vmatpush1.msra.mxu1 %v6115_v47 }
  0x62   :  { %853 = vmatprep.subr.mxu1 %v6118_v49 }
  0x63   :  { %854 = vmatpush1.msra.mxu1 %v6121_v51 }
  0x64   :  { %855 = vmatprep.subr.mxu1 %v6124_v53 }
  0x65   :  { %856 = vmatpush1.msra.mxu1 %v6127_v55 }
  0x66   :  { %857 = vmatprep.subr.mxu1 %v6130_v57 }
  0x67   :  { %858 = vmatpush1.msra.mxu1 %v6132_v59 }
  0x68   :  { %859 = vmatprep.subr.mxu1 %v6135_v61 }
  0x69   :  { %860 = vmatpush1.msra.mxu1 %v6138_v63 }
  0x6a   :  { %861 = vmatprep.subr.mxu1 %v6140_v1 }
  0x6b   :  { %862 = vmatpush1.msra.mxu1 %v6143_v3 }
  0x6c   :  { %863 = vmatprep.subr.mxu1 %v6146_v5 }
  0x6d   :  { %864 = vmatpush1.msra.mxu1 %v6152_v7 }
  0x6e   :  { %865 = vmatprep.subr.mxu1 %v6158_v10 }
  0x6f   :  { %866 = vmatpush1.msra.mxu1 %v6162_v11 }
  0x70   :  { %1050 = vmatprep.subr.mxu1 %v6047_v9 }
  0xea   :  { %v4931_v15 = vpop.f32.mrf.mxu1 }
  0xeb   :  { %v197_v23 = vadd.f32 %v4931_v15, %v4526_v17  ;;  %v279_v15 = vld [vmem:[#allocation4 + $0x88] sm:$0xff] }
  0xec   :  { %v191_v18 = vpop.f32.mrf.mxu1 }
  0xed   :  { %v192_v19 = vadd.f32 %v4526_v17, %v191_v18  ;;  %v276_v18 = vld [vmem:[#allocation4 + $0x70] sm:$0xff] }
  0xee   :  { %v4934_v21 = vpop.f32.mrf.mxu1 }
  0xef   :  { %5644 = vtanh.f32 %v192_v19  ;;  %v207_v30 = vadd.f32 %v4934_v21, %v4526_v17  ;;  %v273_v19 = vld [vmem:[#allocation4 + $0x58] sm:$0xff] }
  0xf0   :  { %v201_v25 = vpop.f32.mrf.mxu1  ;;  %5646 = vtanh.f32 %v197_v23  ;;  %v270_v23 = vld [vmem:[#allocation4 + $0x40] sm:$0xff] }
  0xf1   :  { %v202_v26 = vadd.f32 %v4526_v17, %v201_v25  ;;  %v267_v25 = vld [vmem:[#allocation4 + $0x28] sm:$0xff] }
  0xf2   :  { %v4937_v28 = vpop.f32.mrf.mxu1 }
  0xf3   :  { %5648 = vtanh.f32 %v202_v26  ;;  %v217_v42 = vadd.f32 %v4937_v28, %v4526_v17  ;;  %v264_v28 = vld [vmem:[#allocation4 + $0x10] sm:$0xff] }
  0xf4   :  { %v211_v32 = vpop.f32.mrf.mxu1  ;;  %5650 = vtanh.f32 %v207_v30  ;;  %v6223_v30 = vld [vmem:[#allocation7 + $0x178] sm:$0xff] }
  0xf5   :  { %v212_v34 = vadd.f32 %v4526_v17, %v211_v32  ;;  %v6227_v32 = vld [vmem:[#allocation7 + $0x160] sm:$0xff] }
  0xf6   :  { %v4940_v38 = vpop.f32.mrf.mxu1 }
  0xf7   :  { %5652 = vtanh.f32 %v212_v34  ;;  %v227_v60 = vadd.f32 %v4940_v38, %v4526_v17  ;;  %v6231_v34 = vld [vmem:[#allocation7 + $0x148] sm:$0xff]  ;;  %v6243_v38 = vld [vmem:[#allocation7 + $0x100] sm:$0xff] }
  0xf8   :  { %v221_v46 = vpop.f32.mrf.mxu1  ;;  %5654 = vtanh.f32 %v217_v42  ;;  %v6251_v42 = vld [vmem:[#allocation7 + $0xd0] sm:$0xff] }
  0xf9   :  { %v222_v52 = vadd.f32 %v4526_v17, %v221_v46  ;;  %v6261_v46 = vld [vmem:[#allocation7 + $0xa0] sm:$0xff] }
  0xfb   :  { %5656 = vtanh.f32 %v222_v52  ;;  %v6273_v52 = vld [vmem:[#allocation7 + $0x58] sm:$0xff] }
  0xfc   :  { %v6208_v9 = vpop.eup %5644  ;;  %5658 = vtanh.f32 %v227_v60  ;;  %v312_v60 = vlaneseq }
  0xfd   :  { %392 = vmatmul.mubr.f32.vlgmr.msra.gmra.mxu0 %v6208_v9  ;;  %v6213_v44 = vpop.eup %5646 }
  0xfe   :  { %4942 = vmatpush3.msra.mxu0 %v6149_v6  ;;  %397 = vmatprep.mubr.f32.mxu0 %v7868_v8  ;;  %v282_v6 = vld [vmem:[#allocation4 + $0xa0] sm:$0xff] }
  0xff   :  { %4943 = vmatprep.subr.mxu0 %v306_v36 }
 0x100   :  { %4944 = vmatpush3.msra.mxu0 %v306_v36  ;;  %v5649_v54 = vpop.eup %5648  ;;  %v6239_v36 = vld [vmem:[#allocation7 + $0x118] sm:$0xff] }
 0x101   :  { %4945 = vmatprep.subr.mxu0 %v303_v40  ;;  %398 = vmatmul.mubr.f32.gmra.mxu0 %v6213_v44  ;;  %v5651_v62 = vpop.eup %5650 }
 0x102   :  { %4946 = vmatpush3.msra.mxu0 %v303_v40  ;;  %403 = vmatprep.mubr.f32.mxu0 %v7868_v8  ;;  %v6247_v40 = vld [vmem:[#allocation7 + $0xe8] sm:$0xff] }
 0x103   :  { %4947 = vmatprep.subr.mxu0 %v300_v48 }
 0x104   :  { %4948 = vmatpush3.msra.mxu0 %v300_v48  ;;  %v5653_v4 = vpop.eup %5652  ;;  %v6265_v48 = vld [vmem:[#allocation7 + $0x88] sm:$0xff] }
 0x105   :  { %4949 = vmatprep.subr.mxu0 %v297_v50  ;;  %404 = vmatmul.mubr.f32.gmra.mxu0 %v5649_v54  ;;  %v5655_v17 = vpop.eup %5654 }
 0x106   :  { %4950 = vmatpush3.msra.mxu0 %v297_v50  ;;  %409 = vmatprep.mubr.f32.mxu0 %v7868_v8  ;;  %v6269_v50 = vld [vmem:[#allocation7 + $0x70] sm:$0xff] }
 0x107   :  { %4951 = vmatprep.subr.mxu0 %v294_v56 }
 0x108   :  { %4952 = vmatpush3.msra.mxu0 %v294_v56  ;;  %v5657_v21 = vpop.eup %5656  ;;  %v6281_v56 = vld [vmem:[#allocation7 + $0x28] sm:$0xff] }
 0x109   :  { %4953 = vmatprep.subr.mxu0 %v291_v58  ;;  %410 = vmatmul.mubr.f32.gmra.mxu0 %v5651_v62  ;;  %v5659_v26 = vpop.eup %5658  ;;  %7930 = vst [vmem:[#allocation20_spill] sm:$0xff] %v6281_v56 }
 0x10a   :  { %4954 = vmatpush3.msra.mxu0 %v291_v58  ;;  %415 = vmatprep.mubr.f32.mxu0 %v7868_v8  ;;  %v6285_v58 = vld [vmem:[#allocation7 + $0x10] sm:$0xff] }
 0x10b   :  { %4955 = vmatprep.subr.mxu0 %v288_v0  ;;  %7931 = vst [vmem:[#allocation21_spill] sm:$0xff] %v6285_v58 }
 0x10c   :  { %4956 = vmatpush3.msra.mxu0 %v288_v0 }
 0x10d   :  { %4957 = vmatprep.subr.mxu0 %v285_v2  ;;  %416 = vmatmul.mubr.f32.gmra.mxu0 %v5653_v4 }
 0x10e   :  { %4958 = vmatpush3.msra.mxu0 %v285_v2  ;;  %421 = vmatprep.mubr.f32.mxu0 %v7868_v8  ;;  %v310_v2 = vld [vmem:[%s7862_s6] sm:$0x7] }
 0x10f   :  { %4959 = vmatprep.subr.mxu0 %v282_v6 }
 0x110   :  { %4960 = vmatpush3.msra.mxu0 %v282_v6 }
 0x111   :  { %4961 = vmatprep.subr.mxu0 %v279_v15  ;;  %422 = vmatmul.mubr.f32.gmra.mxu0 %v5655_v17 }
 0x112   :  { %4962 = vmatpush3.msra.mxu0 %v279_v15  ;;  %427 = vmatprep.mubr.f32.mxu0 %v7868_v8 }
 0x113   :  { %4963 = vmatprep.subr.mxu0 %v276_v18 }
 0x114   :  { %4964 = vmatpush3.msra.mxu0 %v276_v18 }
 0x115   :  { %4965 = vmatprep.subr.mxu0 %v273_v19  ;;  %428 = vmatmul.mubr.f32.gmra.mxu0 %v5657_v21 }
 0x116   :  { %4966 = vmatpush3.msra.mxu0 %v273_v19  ;;  %433 = vmatprep.mubr.f32.mxu0 %v7868_v8 }
 0x117   :  { %4967 = vmatprep.subr.mxu0 %v270_v23 }
 0x118   :  { %4968 = vmatpush3.msra.mxu0 %v270_v23 }
 0x119   :  { %4969 = vmatprep.subr.mxu0 %v267_v25  ;;  %434 = vmatmul.mubr.f32.gmra.mxu0 %v5659_v26 }
 0x11a   :  { %4970 = vmatpush3.msra.mxu0 %v267_v25  ;;  %4973 = vmatprep.mubr.f32.mxu0 %v6208_v9  ;;  %v6235_v9 = vld [vmem:[#allocation7 + $0x130] sm:$0xff] }
 0x11b   :  { %4971 = vmatprep.subr.mxu0 %v264_v28 }
 0x11c   :  { %4972 = vmatpush3.msra.mxu0 %v264_v28 }
 0x11d   :  { %4985 = vmatprep.subr.mxu0 %v7868_v8  ;;  %4974 = vmatmul.mubr.f32.vlgmr.msra.gmra.mxu0 %v6213_v44  ;;  %v6257_v44 = vld [vmem:[#allocation7 + $0xb8] sm:$0xff] }
 0x11e   :  { %4986 = vmatpush3.msra.mxu0 %v6223_v30  ;;  %4976 = vmatprep.mubr.f32.mxu0 %v5649_v54  ;;  %v6277_v54 = vld [vmem:[#allocation7 + $0x40] sm:$0xff] }
 0x11f   :  { %4987 = vmatprep.subr.mxu0 %v7868_v8 }
 0x120   :  { %4988 = vmatpush3.msra.mxu0 %v6227_v32 }
 0x121   :  { %4989 = vmatprep.subr.mxu0 %v7868_v8  ;;  %4977 = vmatmul.mubr.f32.gmra.mxu0 %v5651_v62  ;;  %v6326_v62 = vshrl.u32 %v312_v60, 7 }
 0x122   :  { %4990 = vmatpush3.msra.mxu0 %v6231_v34  ;;  %4979 = vmatprep.mubr.f32.mxu0 %v5653_v4 }
 0x123   :  { %4991 = vmatprep.subr.mxu0 %v7868_v8  ;;  %7932 = vst [vmem:[#allocation22_spill] sm:$0xff] %v6326_v62  ;;  %v7874_v0 = vsub.s32 0, %v6326_v62  ;;  %v7878_v6 = vsub.s32 1, %v6326_v62 }
 0x124   :  { %4992 = vmatpush3.msra.mxu0 %v6235_v9 }
 0x125   :  { %4993 = vmatprep.subr.mxu0 %v7868_v8  ;;  %4980 = vmatmul.mubr.f32.gmra.mxu0 %v5655_v17  ;;  %v315_v17 = vrot.slane %v310_v2, %v7874_v0  ;;  %v319_v19 = vrot.slane %v310_v2, %v7878_v6 }
 0x126   :  { %4994 = vmatpush3.msra.mxu0 %v6239_v36  ;;  %4982 = vmatprep.mubr.f32.mxu0 %v5657_v21 }
 0x127   :  { %4995 = vmatprep.subr.mxu0 %v7868_v8 }
 0x128   :  { %4996 = vmatpush3.msra.mxu0 %v6243_v38 }
 0x129   :  { %4997 = vmatprep.subr.mxu0 %v7868_v8  ;;  %4983 = vmatmul.mubr.f32.gmra.mxu0 %v5659_v26 }
 0x12a   :  { %4998 = vmatpush3.msra.mxu0 %v6247_v40  ;;  %5017 = vmatprep.mubr.msk.f32.mxu0 %vm5954_vm2, %v7868_v8 }
 0x12b   :  { %4999 = vmatprep.subr.mxu0 %v7868_v8 }
 0x12c   :  { %5000 = vmatpush3.msra.mxu0 %v6251_v42 }
 0x12d   :  { %5001 = vmatprep.subr.mxu0 %v7868_v8 }
 0x12e   :  { %5002 = vmatpush3.msra.mxu0 %v6257_v44 }
 0x12f   :  { %5003 = vmatprep.subr.mxu0 %v7868_v8 }
 0x130   :  { %5004 = vmatpush3.msra.mxu0 %v6261_v46 }
 0x131   :  { %5005 = vmatprep.subr.mxu0 %v7868_v8 }
 0x132   :  { %5006 = vmatpush3.msra.mxu0 %v6265_v48 }
 0x133   :  { %5007 = vmatprep.subr.mxu0 %v7868_v8 }
 0x134   :  { %5008 = vmatpush3.msra.mxu0 %v6269_v50 }
 0x135   :  { %5009 = vmatprep.subr.mxu0 %v7868_v8 }
 0x136   :  { %5010 = vmatpush3.msra.mxu0 %v6273_v52 }
 0x137   :  { %5011 = vmatprep.subr.mxu0 %v7868_v8 }
 0x138   :  { %5012 = vmatpush3.msra.mxu0 %v6277_v54 }
 0x139   :  { %5013 = vmatprep.subr.mxu0 %v7868_v8 }
 0x13a   :  { %5014 = vmatpush3.msra.mxu0 %v6281_v56 }
 0x13b   :  { %5015 = vmatprep.subr.mxu0 %v7868_v8 }
 0x13c   :  { %5016 = vmatpush3.msra.mxu0 %v6285_v58 }
 0x13d   :  { %5018 = vmatmul.mubr.f32.vlgmr.msra.gmra.mxu0 %v6168_v13  ;;  %5020 = vmatprep.subr.mxu0 %v7868_v8 }
 0x13e   :  { %5021 = vmatpush3.msra.mxu0 %v6223_v30  ;;  %5052 = vmatprep.mubr.msk.f32.mxu0 %vm5954_vm2, %v7868_v8 }
 0x13f   :  { %5022 = vmatprep.subr.mxu0 %v7868_v8 }
 0x140   :  { %5023 = vmatpush3.msra.mxu0 %v6227_v32 }
 0x141   :  { %5024 = vmatprep.subr.mxu0 %v7868_v8 }
 0x142   :  { %5025 = vmatpush3.msra.mxu0 %v6231_v34 }
 0x143   :  { %5026 = vmatprep.subr.mxu0 %v7868_v8 }
 0x144   :  { %5027 = vmatpush3.msra.mxu0 %v6235_v9 }
 0x145   :  { %5028 = vmatprep.subr.mxu0 %v7868_v8 }
 0x146   :  { %5029 = vmatpush3.msra.mxu0 %v6239_v36 }
 0x147   :  { %5030 = vmatprep.subr.mxu0 %v7868_v8 }
 0x148   :  { %5031 = vmatpush3.msra.mxu0 %v6243_v38 }
 0x149   :  { %5032 = vmatprep.subr.mxu0 %v7868_v8 }
 0x14a   :  { %5033 = vmatpush3.msra.mxu0 %v6247_v40 }
 0x14b   :  { %5034 = vmatprep.subr.mxu0 %v7868_v8 }
 0x14c   :  { %5035 = vmatpush3.msra.mxu0 %v6251_v42 }
 0x14d   :  { %5036 = vmatprep.subr.mxu0 %v7868_v8 }
 0x14e   :  { %5037 = vmatpush3.msra.mxu0 %v6257_v44 }
 0x14f   :  { %5038 = vmatprep.subr.mxu0 %v7868_v8 }
 0x150   :  { %5039 = vmatpush3.msra.mxu0 %v6261_v46 }
 0x151   :  { %5040 = vmatprep.subr.mxu0 %v7868_v8 }
 0x152   :  { %5041 = vmatpush3.msra.mxu0 %v6265_v48 }
 0x153   :  { %5042 = vmatprep.subr.mxu0 %v7868_v8 }
 0x154   :  { %5043 = vmatpush3.msra.mxu0 %v6269_v50 }
 0x155   :  { %5044 = vmatprep.subr.mxu0 %v7868_v8 }
 0x156   :  { %5045 = vmatpush3.msra.mxu0 %v6273_v52 }
 0x157   :  { %5046 = vmatprep.subr.mxu0 %v7868_v8 }
 0x158   :  { %5047 = vmatpush3.msra.mxu0 %v6277_v54 }
 0x159   :  { %5048 = vmatprep.subr.mxu0 %v7868_v8 }
 0x15a   :  { %5049 = vmatpush3.msra.mxu0 %v6281_v56 }
 0x15b   :  { %5050 = vmatprep.subr.mxu0 %v7868_v8 }
 0x15c   :  { %5051 = vmatpush3.msra.mxu0 %v6285_v58 }
 0x15d   :  { %5055 = vmatprep.subr.mxu0 %v7868_v8 }
 0x1bd   :  { %v393_v4 = vpop.f32.mrf.mxu0 }
 0x1bf   :  { %v395_v15 = vpop.f32.mrf.mxu0 }
 0x1c1   :  { %v399_v18 = vpop.f32.mrf.mxu0 }
 0x1c2   :  { %v6337_v21 = vadd.f32 %v399_v18, %v315_v17 }
 0x1c3   :  { %v401_v23 = vpop.f32.mrf.mxu0 }
 0x1c4   :  { %7933 = vst [vmem:[#allocation23_spill] sm:$0xff] %v6337_v21  ;;  %v6339_v25 = vadd.f32 %v401_v23, %v319_v19 }
 0x1c5   :  { %v405_v26 = vpop.f32.mrf.mxu0 }
 0x1c6   :  { %7934 = vst [vmem:[#allocation24_spill] sm:$0xff] %v6339_v25  ;;  %v6341_v28 = vadd.f32 %v405_v26, %v315_v17  ;;  %v394_v25 = vadd.f32 %v393_v4, %v315_v17  ;;  %v686_v26 = vpop.f32.mrf.mxu1 }
 0x1c7   :  { %v407_v60 = vpop.f32.mrf.mxu0 }
 0x1c8   :  { %7935 = vst [vmem:[#allocation25_spill] sm:$0xff] %v6341_v28  ;;  %v6343_v8 = vadd.f32 %v407_v60, %v319_v19 }
 0x1c9   :  { %v411_v58 = vpop.f32.mrf.mxu0 }
 0x1ca   :  { %7936 = vst [vmem:[#allocation26_spill] sm:$0xff] %v6343_v8  ;;  %v6345_v11 = vadd.f32 %v411_v58, %v315_v17  ;;  %v761_v58 = vadd.f32 %v686_v26, %v394_v25  ;;  %v396_v26 = vadd.f32 %v395_v15, %v319_v19 }
 0x1cb   :  { %v413_v10 = vpop.f32.mrf.mxu0 }
 0x1cc   :  { %7937 = vst [vmem:[#allocation27_spill] sm:$0xff] %v6345_v11  ;;  %v6347_v0 = vadd.f32 %v413_v10, %v319_v19  ;;  %v7881_v10 = vsub.s32 2, %v6326_v62 }
 0x1cd   :  { %v417_v56 = vpop.f32.mrf.mxu0 }
 0x1ce   :  { %7938 = vst [vmem:[#allocation28_spill] sm:$0xff] %v6347_v0  ;;  %v6349_v7 = vadd.f32 %v417_v56, %v315_v17  ;;  %v323_v4 = vrot.slane %v310_v2, %v7881_v10 }
 0x1cf   :  { %v419_v18 = vpop.f32.mrf.mxu0 }
 0x1d0   :  { %7939 = vst [vmem:[#allocation29_spill] sm:$0xff] %v6349_v7  ;;  %v6351_v6 = vadd.f32 %v419_v18, %v319_v19  ;;  %v4537_v18 = vmul.f32 -1.442695, %v761_v58 }
 0x1d1   :  { %v423_v23 = vpop.f32.mrf.mxu0 }
 0x1d2   :  { %7940 = vst [vmem:[#allocation30_spill] sm:$0xff] %v6351_v6  ;;  %v6353_v21 = vadd.f32 %v423_v23, %v315_v17  ;;  %5660 = vpow2.f32 %v4537_v18 }
 0x1d3   :  { %v425_v28 = vpop.f32.mrf.mxu0 }
 0x1d4   :  { %7941 = vst [vmem:[#allocation31_spill] sm:$0xff] %v6353_v21  ;;  %v6355_v60 = vadd.f32 %v425_v28, %v319_v19 }
 0x1d5   :  { %v429_v8 = vpop.f32.mrf.mxu0 }
 0x1d6   :  { %7942 = vst [vmem:[#allocation32_spill] sm:$0xff] %v6355_v60  ;;  %v6357_v11 = vadd.f32 %v429_v8, %v315_v17 }
 0x1d7   :  { %v431_v0 = vpop.f32.mrf.mxu0 }
 0x1d8   :  { %7943 = vst [vmem:[#allocation33_spill] sm:$0xff] %v6357_v11  ;;  %v6360_v56 = vadd.f32 %v431_v0, %v319_v19  ;;  %v688_v11 = vpop.f32.mrf.mxu1 }
 0x1d9   :  { %v435_v7 = vpop.f32.mrf.mxu0  ;;  %v768_v58 = vadd.f32 %v688_v11, %v396_v26 }
 0x1da   :  { %7944 = vst [vmem:[#allocation34_spill] sm:$0xff] %v6360_v56  ;;  %v6362_v6 = vadd.f32 %v435_v7, %v315_v17 }
 0x1db   :  { %v437_v23 = vpop.f32.mrf.mxu0 }
 0x1dc   :  { %7945 = vst [vmem:[#allocation35_spill] sm:$0xff] %v6362_v6  ;;  %v6366_v21 = vadd.f32 %v437_v23, %v319_v19  ;;  %v4538_v23 = vmul.f32 -1.442695, %v768_v58 }
 0x1dd   :  { %v4975_v28 = vpop.f32.mrf.mxu0 }
 0x1de   :  { %7946 = vst [vmem:[#allocation36_spill] sm:$0xff] %v6366_v21  ;;  %v6368_v25 = vadd.f32 %v4975_v28, %v323_v4  ;;  %5662 = vpow2.f32 %v4538_v23 }
 0x1df   :  { %v506_v8 = vpop.f32.mrf.mxu0  ;;  %v5661_v21 = vpop.eup %5660 }
 0x1e1   :  { %v4978_v60 = vpop.f32.mrf.mxu0 }
 0x1e2   :  { %v6370_v0 = vadd.f32 %v4978_v60, %v323_v4  ;;  %v765_v60 = vadd.f32 1.0, %v5661_v21 }
 0x1e3   :  { %v516_v56 = vpop.f32.mrf.mxu0 }
 0x1e4   :  { %v6372_v7 = vadd.f32 %v516_v56, %v323_v4  ;;  %5664 = vrcp.f32 %v765_v60  ;;  %v6385_v56 = vld [vmem:[%s7863_s7] ss:$0 sm:$0xff] }
 0x1e5   :  { %v4981_v17 = vpop.f32.mrf.mxu0 }
 0x1e6   :  { %v6374_v62 = vadd.f32 %v4981_v17, %v323_v4 }
 0x1e7   :  { %v526_v2 = vpop.f32.mrf.mxu0 }
 0x1e8   :  { %7947 = vst [vmem:[#allocation37_spill] sm:$0xff] %v6374_v62  ;;  %v6376_v10 = vadd.f32 %v526_v2, %v323_v4 }
 0x1e9   :  { %v4984_v18 = vpop.f32.mrf.mxu0 }
 0x1ea   :  { %7948 = vst [vmem:[#allocation38_spill] sm:$0xff] %v6376_v10  ;;  %v6378_v28 = vadd.f32 %v4984_v18, %v323_v4 }
 0x1eb   :  { %v536_v15 = vpop.f32.mrf.mxu0  ;;  %v5663_v11 = vpop.eup %5662 }
 0x1ec   :  { %7949 = vst [vmem:[#allocation39_spill] sm:$0xff] %v6378_v28  ;;  %v6380_v19 = vadd.f32 %v536_v15, %v323_v4  ;;  %v772_v26 = vadd.f32 1.0, %v5663_v11  ;;  %v507_v28 = vadd.f32 %v506_v8, %v323_v4  ;;  %v6548_v4 = vld [vmem:[#allocation7 + $0xc0] sm:$0xff]  ;;  %v6552_v8 = vld [vmem:[#allocation7 + $0xa8] sm:$0xff] }
 0x1ed   :  { %v6561_v11 = vld [vmem:[#allocation7 + $0x80] sm:$0xff] }
 0x1ee   :  { %7950 = vst [vmem:[#allocation40_spill] sm:$0xff] %v6380_v19  ;;  %5666 = vrcp.f32 %v772_v26  ;;  %v6564_v26 = vld [vmem:[#allocation7 + $0x78] sm:$0xff] }
 0x1f1   :  { %v5665_v2 = vpop.eup %5664 }
 0x1fb   :  { %v5667_v15 = vpop.eup %5666 }
 0x1fc   :  { %v779_v21 = vsub.f32 1.0, %v5667_v15  ;;  %v781_v62 = vmul.f32 %v5667_v15, %v6168_v13  ;;  %v6582_v15 = vld [vmem:[#allocation7 + $0x30] sm:$0xff] }
 0x1fd   :  { %v757_v58 = vpop.f32.mrf.mxu0 }
 0x1fe   :  { %v775_v17 = vadd.f32 %v6385_v56, %v757_v58  ;;  %v6567_v58 = vld [vmem:[#allocation7 + $0x68] sm:$0xff] }
 0x1ff   :  { %v5019_v18 = vpop.f32.mrf.mxu0 }
 0x200   :  { %v776_v6 = vmul.f32 %v5665_v2, %v775_v17  ;;  %v6570_v17 = vld [vmem:[#allocation7 + $0x60] sm:$0xff]  ;;  %v6573_v2 = vld [vmem:[#allocation7 + $0x50] sm:$0xff]  ;;  %v6576_v18 = vld [vmem:[#allocation7 + $0x48] sm:$0xff] }
 0x202   :  { %v777_v23 = vadd.f32 %v776_v6, %v507_v28  ;;  %v7952_v6 = vmov 0.0   ;;  %v6555_v28 = vld [vmem:[#allocation7 + $0x98] sm:$0xff] }
 0x204   :  { %5668 = vtanh.f32 %v777_v23  ;;  %v6579_v23 = vld [vmem:[#allocation7 + $0x38] sm:$0xff] }
 0x211   :  { %v5669_v60 = vpop.eup %5668 }
 0x212   :  { %v780_v19 = vmul.f32 %v5669_v60, %v779_v21  ;;  %v6585_v21 = vld [vmem:[#allocation7 + $0x20] sm:$0xff]  ;;  %v6588_v60 = vld [vmem:[#allocation7 + $0x18] sm:$0xff] }
 0x214   :  { %v6389_v10 = vadd.f32 %v781_v62, %v780_v19  ;;  %v6545_v62 = vld [vmem:[#allocation7 + $0xc8] sm:$0xff]  ;;  %v6558_v19 = vld [vmem:[#allocation7 + $0x90] sm:$0xff] }
 0x216   :  { %7951 = vst [vmem:[#allocation41_spill] sm:$0xff] %v6389_v10  ;;  %900 = vmatmul.mubr.f32.vlgmr.msra.gmra.mxu1 %v6389_v10  ;;  %5053 = vmatmul.mubr.f32.vlgmr.msra.gmra.mxu0 %v6389_v10 }
 0x217   :  { %1051 = vmatpush1.msra.mxu1 %v6053_v12  ;;  %5056 = vmatpush3.msra.mxu0 %v6223_v30  ;;  %v7953_v12 = vld [vmem:[#allocation17_spill] sm:$0xff] }
 0x218   :  { %1052 = vmatprep.subr.mxu1 %v6056_v14  ;;  %5057 = vmatprep.subr.mxu0 %v7952_v6  ;;  %v7954_v14 = vld [vmem:[#allocation20_spill] sm:$0xff] }
 0x219   :  { %1053 = vmatpush1.msra.mxu1 %v6059_v16  ;;  %5058 = vmatpush3.msra.mxu0 %v6227_v32  ;;  %v7955_v16 = vld [vmem:[#allocation18_spill] sm:$0xff] }
 0x21a   :  { %1054 = vmatprep.subr.mxu1 %v6069_v20  ;;  %5059 = vmatprep.subr.mxu0 %v7952_v6  ;;  %v7956_v20 = vld [vmem:[#allocation19_spill] sm:$0xff] }
 0x21b   :  { %1055 = vmatpush1.msra.mxu1 %v6072_v22  ;;  %5060 = vmatpush3.msra.mxu0 %v6231_v34  ;;  %v7957_v22 = vld [vmem:[#allocation21_spill] sm:$0xff] }
 0x21c   :  { %1056 = vmatprep.subr.mxu1 %v6075_v24  ;;  %5061 = vmatprep.subr.mxu0 %v7952_v6 }
 0x21d   :  { %1057 = vmatpush1.msra.mxu1 %v6083_v27  ;;  %5062 = vmatpush3.msra.mxu0 %v6235_v9 }
 0x21e   :  { %1058 = vmatprep.subr.mxu1 %v6086_v29  ;;  %5063 = vmatprep.subr.mxu0 %v7952_v6  ;;  %v7958_v29 = vld [vmem:[#allocation23_spill] sm:$0xff] }
 0x21f   :  { %1059 = vmatpush1.msra.mxu1 %v6089_v31  ;;  %5064 = vmatpush3.msra.mxu0 %v6239_v36 }
 0x220   :  { %1060 = vmatprep.subr.mxu1 %v6092_v33  ;;  %5065 = vmatprep.subr.mxu0 %v7952_v6 }
 0x221   :  { %1061 = vmatpush1.msra.mxu1 %v6097_v35  ;;  %5066 = vmatpush3.msra.mxu0 %v6243_v38 }
 0x222   :  { %1062 = vmatprep.subr.mxu1 %v6100_v37  ;;  %5067 = vmatprep.subr.mxu0 %v7952_v6 }
 0x223   :  { %1063 = vmatpush1.msra.mxu1 %v6103_v39  ;;  %5068 = vmatpush3.msra.mxu0 %v6247_v40  ;;  %v7959_v39 = vld [vmem:[#allocation24_spill] sm:$0xff] }
 0x224   :  { %1064 = vmatprep.subr.mxu1 %v6106_v41  ;;  %5069 = vmatprep.subr.mxu0 %v7952_v6 }
 0x225   :  { %1065 = vmatpush1.msra.mxu1 %v6109_v43  ;;  %5070 = vmatpush3.msra.mxu0 %v6251_v42 }
 0x226   :  { %1066 = vmatprep.subr.mxu1 %v6112_v45  ;;  %5071 = vmatprep.subr.mxu0 %v7952_v6 }
 0x227   :  { %1067 = vmatpush1.msra.mxu1 %v6115_v47  ;;  %5072 = vmatpush3.msra.mxu0 %v6257_v44 }
 0x228   :  { %1068 = vmatprep.subr.mxu1 %v6118_v49  ;;  %5073 = vmatprep.subr.mxu0 %v7952_v6 }
 0x229   :  { %1069 = vmatpush1.msra.mxu1 %v6121_v51  ;;  %5074 = vmatpush3.msra.mxu0 %v6261_v46 }
 0x22a   :  { %1070 = vmatprep.subr.mxu1 %v6124_v53  ;;  %5075 = vmatprep.subr.mxu0 %v7952_v6 }
 0x22b   :  { %1071 = vmatpush1.msra.mxu1 %v6127_v55  ;;  %5076 = vmatpush3.msra.mxu0 %v6265_v48 }
 0x22c   :  { %1072 = vmatprep.subr.mxu1 %v6130_v57  ;;  %5077 = vmatprep.subr.mxu0 %v7952_v6 }
 0x22d   :  { %1073 = vmatpush1.msra.mxu1 %v6132_v59  ;;  %5078 = vmatpush3.msra.mxu0 %v6269_v50 }
 0x22e   :  { %1074 = vmatprep.subr.mxu1 %v6135_v61  ;;  %5079 = vmatprep.subr.mxu0 %v7952_v6 }
 0x22f   :  { %1075 = vmatpush1.msra.mxu1 %v6138_v63  ;;  %5080 = vmatpush3.msra.mxu0 %v6273_v52 }
 0x230   :  { %1076 = vmatprep.subr.mxu1 %v6140_v1  ;;  %5081 = vmatprep.subr.mxu0 %v7952_v6 }
 0x231   :  { %1077 = vmatpush1.msra.mxu1 %v6143_v3  ;;  %5082 = vmatpush3.msra.mxu0 %v6277_v54 }
 0x232   :  { %1078 = vmatprep.subr.mxu1 %v6146_v5  ;;  %5083 = vmatprep.subr.mxu0 %v7952_v6 }
 0x233   :  { %1079 = vmatpush1.msra.mxu1 %v7953_v12  ;;  %5084 = vmatpush3.msra.mxu0 %v7954_v14  ;;  %v6591_v12 = vld [vmem:[#allocation7 + $0x8] sm:$0xff] }
 0x234   :  { %1080 = vmatprep.subr.mxu1 %v7955_v16  ;;  %5085 = vmatprep.subr.mxu0 %v7952_v6  ;;  %7962 = vst [vmem:[#allocation18_spill] sm:$0xff] %v6591_v12 }
 0x235   :  { %1081 = vmatpush1.msra.mxu1 %v7956_v20  ;;  %1114 = vmatprep.mubr.f32.mxu1 %v7952_v6 }
 0x236   :  { %5086 = vmatpush3.msra.mxu0 %v7957_v22  ;;  %5087 = vmatprep.mubr.msk.f32.mxu0 %vm5954_vm2, %v7952_v6 }
 0x237   :  { %5090 = vmatprep.subr.mxu0 %v7952_v6 }
 0x2d6   :  { %v901_v24 = vpop.f32.mrf.mxu1  ;;  %v972_v27 = vpop.f32.mrf.mxu0 }
 0x2d7   :  { %v976_v31 = vadd.f32 %v901_v24, %v7958_v29  ;;  %v990_v53 = vadd.f32 %v6385_v56, %v972_v27 }
 0x2d8   :  { %v5054_v33 = vpop.f32.mrf.mxu0  ;;  %v903_v37 = vpop.f32.mrf.mxu1 }
 0x2d9   :  { %v4539_v35 = vmul.f32 -1.442695, %v976_v31  ;;  %v983_v41 = vadd.f32 %v903_v37, %v7959_v39  ;;  %v7965_v33 = vld [vmem:[#allocation26_spill] sm:$0xff] }
 0x2db   :  { %5670 = vpow2.f32 %v4539_v35  ;;  %v4540_v43 = vmul.f32 -1.442695, %v983_v41 }
 0x2dd   :  { %5672 = vpow2.f32 %v4540_v43 }
 0x2e8   :  { %v5671_v45 = vpop.eup %5670 }
 0x2e9   :  { %v980_v47 = vadd.f32 1.0, %v5671_v45 }
 0x2ea   :  { %v5673_v49 = vpop.eup %5672 }
 0x2eb   :  { %5674 = vrcp.f32 %v980_v47  ;;  %v987_v51 = vadd.f32 1.0, %v5673_v49 }
 0x2ed   :  { %5676 = vrcp.f32 %v987_v51 }
 0x2f8   :  { %v5675_v55 = vpop.eup %5674 }
 0x2f9   :  { %v991_v57 = vmul.f32 %v5675_v55, %v990_v53 }
 0x2fa   :  { %v5677_v61 = vpop.eup %5676 }
 0x2fb   :  { %v992_v59 = vadd.f32 %v991_v57, %v6368_v25  ;;  %v994_v63 = vsub.f32 1.0, %v5677_v61  ;;  %v996_v5 = vmul.f32 %v5677_v61, %v6389_v10  ;;  %v6550_v25 = vld [vmem:[#allocation7 + $0xb0] sm:$0xff] }
 0x2fd   :  { %5678 = vtanh.f32 %v992_v59 }
 0x30a   :  { %v5679_v1 = vpop.eup %5678 }
 0x30b   :  { %v995_v3 = vmul.f32 %v5679_v1, %v994_v63 }
 0x30d   :  { %v6464_v13 = vadd.f32 %v996_v5, %v995_v3  ;;  %v6648_v3 = vld [vmem:[#allocation7 + $0x160] sm:$0xff]  ;;  %v6652_v5 = vld [vmem:[#allocation7 + $0x148] sm:$0xff] }
 0x30f   :  { %7960 = vst [vmem:[#allocation17_spill] sm:$0xff] %v6464_v13  ;;  %1115 = vmatmul.mubr.f32.vlgmr.msra.gmra.mxu1 %v6464_v13  ;;  %5088 = vmatmul.mubr.f32.vlgmr.msra.gmra.mxu0 %v6464_v13 }
 0x310   :  { %5091 = vmatpush3.msra.mxu0 %v6223_v30  ;;  %1329 = vmatprep.mubr.f32.mxu1 %v7952_v6  ;;  %v6503_v30 = vld [vmem:[#allocation7 + $0x170] sm:$0xff] }
 0x311   :  { %5092 = vmatprep.subr.mxu0 %v7952_v6  ;;  %5122 = vmatprep.mubr.msk.f32.mxu0 %vm5954_vm2, %v7952_v6  ;;  %7961 = vst [vmem:[#allocation20_spill] sm:$0xff] %v6503_v30 }
 0x312   :  { %5093 = vmatpush3.msra.mxu0 %v6227_v32  ;;  %1265 = vmatprep.subr.mxu1 %v6503_v30  ;;  %v6506_v32 = vld [vmem:[#allocation7 + $0x168] sm:$0xff] }
 0x313   :  { %5094 = vmatprep.subr.mxu0 %v7952_v6  ;;  %1266 = vmatpush1.msra.mxu1 %v6506_v32 }
 0x314   :  { %5095 = vmatpush3.msra.mxu0 %v6231_v34  ;;  %v6509_v34 = vld [vmem:[#allocation7 + $0x158] sm:$0xff] }
 0x315   :  { %5096 = vmatprep.subr.mxu0 %v7952_v6  ;;  %1267 = vmatprep.subr.mxu1 %v6509_v34 }
 0x316   :  { %5097 = vmatpush3.msra.mxu0 %v6235_v9  ;;  %v6512_v9 = vld [vmem:[#allocation7 + $0x150] sm:$0xff] }
 0x317   :  { %5098 = vmatprep.subr.mxu0 %v7952_v6  ;;  %1268 = vmatpush1.msra.mxu1 %v6512_v9 }
 0x318   :  { %5099 = vmatpush3.msra.mxu0 %v6239_v36  ;;  %v6515_v36 = vld [vmem:[#allocation7 + $0x140] sm:$0xff] }
 0x319   :  { %5100 = vmatprep.subr.mxu0 %v7952_v6  ;;  %1269 = vmatprep.subr.mxu1 %v6515_v36 }
 0x31a   :  { %5101 = vmatpush3.msra.mxu0 %v6243_v38  ;;  %v6518_v38 = vld [vmem:[#allocation7 + $0x138] sm:$0xff] }
 0x31b   :  { %5102 = vmatprep.subr.mxu0 %v7952_v6  ;;  %1270 = vmatpush1.msra.mxu1 %v6518_v38 }
 0x31c   :  { %5103 = vmatpush3.msra.mxu0 %v6247_v40  ;;  %v6521_v40 = vld [vmem:[#allocation7 + $0x128] sm:$0xff] }
 0x31d   :  { %5104 = vmatprep.subr.mxu0 %v7952_v6  ;;  %1271 = vmatprep.subr.mxu1 %v6521_v40 }
 0x31e   :  { %5105 = vmatpush3.msra.mxu0 %v6251_v42  ;;  %v6524_v42 = vld [vmem:[#allocation7 + $0x120] sm:$0xff] }
 0x31f   :  { %5106 = vmatprep.subr.mxu0 %v7952_v6  ;;  %1272 = vmatpush1.msra.mxu1 %v6524_v42 }
 0x320   :  { %5107 = vmatpush3.msra.mxu0 %v6257_v44  ;;  %v6527_v44 = vld [vmem:[#allocation7 + $0x110] sm:$0xff] }
 0x321   :  { %5108 = vmatprep.subr.mxu0 %v7952_v6  ;;  %1273 = vmatprep.subr.mxu1 %v6527_v44 }
 0x322   :  { %5109 = vmatpush3.msra.mxu0 %v6261_v46  ;;  %v6530_v46 = vld [vmem:[#allocation7 + $0x108] sm:$0xff] }
 0x323   :  { %5110 = vmatprep.subr.mxu0 %v7952_v6  ;;  %1274 = vmatpush1.msra.mxu1 %v6530_v46 }
 0x324   :  { %5111 = vmatpush3.msra.mxu0 %v6265_v48  ;;  %v6533_v48 = vld [vmem:[#allocation7 + $0xf8] sm:$0xff] }
 0x325   :  { %5112 = vmatprep.subr.mxu0 %v7952_v6  ;;  %1275 = vmatprep.subr.mxu1 %v6533_v48 }
 0x326   :  { %5113 = vmatpush3.msra.mxu0 %v6269_v50  ;;  %v6536_v50 = vld [vmem:[#allocation7 + $0xf0] sm:$0xff] }
 0x327   :  { %5114 = vmatprep.subr.mxu0 %v7952_v6  ;;  %1276 = vmatpush1.msra.mxu1 %v6536_v50 }
 0x328   :  { %5115 = vmatpush3.msra.mxu0 %v6273_v52  ;;  %v6539_v52 = vld [vmem:[#allocation7 + $0xe0] sm:$0xff] }
 0x329   :  { %5116 = vmatprep.subr.mxu0 %v7952_v6  ;;  %1277 = vmatprep.subr.mxu1 %v6539_v52 }
 0x32a   :  { %5117 = vmatpush3.msra.mxu0 %v6277_v54  ;;  %v6542_v54 = vld [vmem:[#allocation7 + $0xd8] sm:$0xff] }
 0x32b   :  { %5118 = vmatprep.subr.mxu0 %v7952_v6  ;;  %1278 = vmatpush1.msra.mxu1 %v6542_v54 }
 0x32c   :  { %5119 = vmatpush3.msra.mxu0 %v7954_v14  ;;  %1279 = vmatprep.subr.mxu1 %v6545_v62  ;;  %v6594_v14 = vld [vmem:[#allocation7] sm:$0xff] }
 0x32d   :  { %5120 = vmatprep.subr.mxu0 %v7952_v6  ;;  %1280 = vmatpush1.msra.mxu1 %v6548_v4  ;;  %7963 = vst [vmem:[#allocation19_spill] sm:$0xff] %v6594_v14 }
 0x32e   :  { %5121 = vmatpush3.msra.mxu0 %v7957_v22  ;;  %1281 = vmatprep.subr.mxu1 %v6550_v25  ;;  %v7964_v22 = vld [vmem:[#allocation25_spill] sm:$0xff] }
 0x32f   :  { %5125 = vmatprep.subr.mxu0 %v7952_v6  ;;  %1282 = vmatpush1.msra.mxu1 %v6552_v8 }
 0x330   :  { %1283 = vmatprep.subr.mxu1 %v6555_v28 }
 0x331   :  { %1284 = vmatpush1.msra.mxu1 %v6558_v19 }
 0x332   :  { %1285 = vmatprep.subr.mxu1 %v6561_v11 }
 0x333   :  { %1286 = vmatpush1.msra.mxu1 %v6564_v26 }
 0x334   :  { %1287 = vmatprep.subr.mxu1 %v6567_v58 }
 0x335   :  { %1288 = vmatpush1.msra.mxu1 %v6570_v17 }
 0x336   :  { %1289 = vmatprep.subr.mxu1 %v6573_v2 }
 0x337   :  { %1290 = vmatpush1.msra.mxu1 %v6576_v18 }
 0x338   :  { %1291 = vmatprep.subr.mxu1 %v6579_v23 }
 0x339   :  { %1292 = vmatpush1.msra.mxu1 %v6582_v15 }
 0x33a   :  { %1293 = vmatprep.subr.mxu1 %v6585_v21 }
 0x33b   :  { %1294 = vmatpush1.msra.mxu1 %v6588_v60 }
 0x33c   :  { %1295 = vmatprep.subr.mxu1 %v6591_v12 }
 0x33d   :  { %1296 = vmatpush1.msra.mxu1 %v6594_v14 }
 0x33e   :  { %1480 = vmatprep.subr.mxu1 %v6503_v30 }
 0x3cf   :  { %v1116_v16 = vpop.f32.mrf.mxu1  ;;  %v1187_v20 = vpop.f32.mrf.mxu0 }
 0x3d0   :  { %v1191_v24 = vadd.f32 %v1116_v16, %v7964_v22  ;;  %v1205_v47 = vadd.f32 %v6385_v56, %v1187_v20  ;;  %v6656_v16 = vld [vmem:[#allocation7 + $0x130] sm:$0xff]  ;;  %v6660_v20 = vld [vmem:[#allocation7 + $0x118] sm:$0xff]  ;;  %v6664_v22 = vld [vmem:[#allocation7 + $0x100] sm:$0xff] }
 0x3d1   :  { %v5089_v27 = vpop.f32.mrf.mxu0  ;;  %v1118_v31 = vpop.f32.mrf.mxu1 }
 0x3d2   :  { %v4541_v29 = vmul.f32 -1.442695, %v1191_v24  ;;  %v1198_v35 = vadd.f32 %v1118_v31, %v7965_v33  ;;  %v6668_v24 = vld [vmem:[#allocation7 + $0xe8] sm:$0xff]  ;;  %v6672_v27 = vld [vmem:[#allocation7 + $0xd0] sm:$0xff]  ;;  %v6678_v31 = vld [vmem:[#allocation7 + $0xa0] sm:$0xff] }
 0x3d3   :  { %v6682_v33 = vld [vmem:[#allocation7 + $0x88] sm:$0xff] }
 0x3d4   :  { %5680 = vpow2.f32 %v4541_v29  ;;  %v4542_v37 = vmul.f32 -1.442695, %v1198_v35  ;;  %v6674_v29 = vld [vmem:[#allocation7 + $0xb8] sm:$0xff]  ;;  %v6686_v35 = vld [vmem:[#allocation7 + $0x70] sm:$0xff] }
 0x3d6   :  { %5682 = vpow2.f32 %v4542_v37  ;;  %v6690_v37 = vld [vmem:[#allocation7 + $0x58] sm:$0xff] }
 0x3e1   :  { %v5681_v39 = vpop.eup %5680 }
 0x3e2   :  { %v1195_v41 = vadd.f32 1.0, %v5681_v39  ;;  %v6694_v39 = vld [vmem:[#allocation7 + $0x40] sm:$0xff] }
 0x3e3   :  { %v5683_v43 = vpop.eup %5682 }
 0x3e4   :  { %5684 = vrcp.f32 %v1195_v41  ;;  %v1202_v45 = vadd.f32 1.0, %v5683_v43  ;;  %v6698_v41 = vld [vmem:[#allocation7 + $0x28] sm:$0xff]  ;;  %v6702_v43 = vld [vmem:[#allocation7 + $0x10] sm:$0xff] }
 0x3e5   :  { %7967 = vst [vmem:[#allocation23_spill] sm:$0xff] %v6698_v41  ;;  %7968 = vst [vmem:[#allocation24_spill] sm:$0xff] %v6702_v43 }
 0x3e6   :  { %5686 = vrcp.f32 %v1202_v45 }
 0x3f1   :  { %v5685_v49 = vpop.eup %5684 }
 0x3f2   :  { %v1206_v51 = vmul.f32 %v5685_v49, %v1205_v47  ;;  %v7969_v49 = vld [vmem:[#allocation27_spill] sm:$0xff] }
 0x3f3   :  { %v5687_v55 = vpop.eup %5686 }
 0x3f4   :  { %v1207_v53 = vadd.f32 %v1206_v51, %v6372_v7  ;;  %v1209_v57 = vsub.f32 1.0, %v5687_v55  ;;  %v1211_v63 = vmul.f32 %v5687_v55, %v6464_v13  ;;  %v6644_v7 = vld [vmem:[#allocation7 + $0x178] sm:$0xff] }
 0x3f6   :  { %5688 = vtanh.f32 %v1207_v53 }
 0x403   :  { %v5689_v59 = vpop.eup %5688 }
 0x404   :  { %v1210_v61 = vmul.f32 %v5689_v59, %v1209_v57  ;;  %v7970_v59 = vld [vmem:[#allocation28_spill] sm:$0xff] }
 0x406   :  { %v6605_v1 = vadd.f32 %v1211_v63, %v1210_v61 }
 0x408   :  { %7966 = vst [vmem:[#allocation21_spill] sm:$0xff] %v6605_v1  ;;  %1330 = vmatmul.mubr.f32.vlgmr.msra.gmra.mxu1 %v6605_v1  ;;  %5123 = vmatmul.mubr.f32.vlgmr.msra.gmra.mxu0 %v6605_v1 }
 0x409   :  { %1481 = vmatpush1.msra.mxu1 %v6506_v32  ;;  %1544 = vmatprep.mubr.f32.mxu1 %v7952_v6 }
 0x40a   :  { %1482 = vmatprep.subr.mxu1 %v6509_v34  ;;  %5157 = vmatprep.mubr.msk.f32.mxu0 %vm5954_vm2, %v7952_v6 }
 0x40b   :  { %1483 = vmatpush1.msra.mxu1 %v6512_v9  ;;  %5126 = vmatpush3.msra.mxu0 %v6644_v7 }
 0x40c   :  { %1484 = vmatprep.subr.mxu1 %v6515_v36  ;;  %5127 = vmatprep.subr.mxu0 %v7952_v6 }
 0x40d   :  { %1485 = vmatpush1.msra.mxu1 %v6518_v38  ;;  %5128 = vmatpush3.msra.mxu0 %v6648_v3 }
 0x40e   :  { %1486 = vmatprep.subr.mxu1 %v6521_v40  ;;  %5129 = vmatprep.subr.mxu0 %v7952_v6 }
 0x40f   :  { %1487 = vmatpush1.msra.mxu1 %v6524_v42  ;;  %5130 = vmatpush3.msra.mxu0 %v6652_v5 }
 0x410   :  { %1488 = vmatprep.subr.mxu1 %v6527_v44  ;;  %5131 = vmatprep.subr.mxu0 %v7952_v6 }
 0x411   :  { %1489 = vmatpush1.msra.mxu1 %v6530_v46  ;;  %5132 = vmatpush3.msra.mxu0 %v6656_v16 }
 0x412   :  { %1490 = vmatprep.subr.mxu1 %v6533_v48  ;;  %5133 = vmatprep.subr.mxu0 %v7952_v6 }
 0x413   :  { %1491 = vmatpush1.msra.mxu1 %v6536_v50  ;;  %5134 = vmatpush3.msra.mxu0 %v6660_v20 }
 0x414   :  { %1492 = vmatprep.subr.mxu1 %v6539_v52  ;;  %5135 = vmatprep.subr.mxu0 %v7952_v6 }
 0x415   :  { %1493 = vmatpush1.msra.mxu1 %v6542_v54  ;;  %5136 = vmatpush3.msra.mxu0 %v6664_v22 }
 0x416   :  { %1494 = vmatprep.subr.mxu1 %v6545_v62  ;;  %5137 = vmatprep.subr.mxu0 %v7952_v6 }
 0x417   :  { %1495 = vmatpush1.msra.mxu1 %v6548_v4  ;;  %5138 = vmatpush3.msra.mxu0 %v6668_v24 }
 0x418   :  { %1496 = vmatprep.subr.mxu1 %v6550_v25  ;;  %5139 = vmatprep.subr.mxu0 %v7952_v6 }
 0x419   :  { %1497 = vmatpush1.msra.mxu1 %v6552_v8  ;;  %5140 = vmatpush3.msra.mxu0 %v6672_v27 }
 0x41a   :  { %1498 = vmatprep.subr.mxu1 %v6555_v28  ;;  %5141 = vmatprep.subr.mxu0 %v7952_v6 }
 0x41b   :  { %1499 = vmatpush1.msra.mxu1 %v6558_v19  ;;  %5142 = vmatpush3.msra.mxu0 %v6674_v29 }
 0x41c   :  { %1500 = vmatprep.subr.mxu1 %v6561_v11  ;;  %5143 = vmatprep.subr.mxu0 %v7952_v6 }
 0x41d   :  { %1501 = vmatpush1.msra.mxu1 %v6564_v26  ;;  %5144 = vmatpush3.msra.mxu0 %v6678_v31 }
 0x41e   :  { %1502 = vmatprep.subr.mxu1 %v6567_v58  ;;  %5145 = vmatprep.subr.mxu0 %v7952_v6 }
 0x41f   :  { %1503 = vmatpush1.msra.mxu1 %v6570_v17  ;;  %5146 = vmatpush3.msra.mxu0 %v6682_v33 }
 0x420   :  { %1504 = vmatprep.subr.mxu1 %v6573_v2  ;;  %5147 = vmatprep.subr.mxu0 %v7952_v6 }
 0x421   :  { %1505 = vmatpush1.msra.mxu1 %v6576_v18  ;;  %5148 = vmatpush3.msra.mxu0 %v6686_v35 }
 0x422   :  { %1506 = vmatprep.subr.mxu1 %v6579_v23  ;;  %5149 = vmatprep.subr.mxu0 %v7952_v6 }
 0x423   :  { %1507 = vmatpush1.msra.mxu1 %v6582_v15  ;;  %5150 = vmatpush3.msra.mxu0 %v6690_v37 }
 0x424   :  { %1508 = vmatprep.subr.mxu1 %v6585_v21  ;;  %5151 = vmatprep.subr.mxu0 %v7952_v6 }
 0x425   :  { %1509 = vmatpush1.msra.mxu1 %v6588_v60  ;;  %5152 = vmatpush3.msra.mxu0 %v6694_v39 }
 0x426   :  { %1510 = vmatprep.subr.mxu1 %v6591_v12  ;;  %5153 = vmatprep.subr.mxu0 %v7952_v6 }
 0x427   :  { %1511 = vmatpush1.msra.mxu1 %v6594_v14  ;;  %5154 = vmatpush3.msra.mxu0 %v6698_v41 }
 0x428   :  { %1695 = vmatprep.subr.mxu1 %v6503_v30  ;;  %5155 = vmatprep.subr.mxu0 %v7952_v6 }
 0x429   :  { %5156 = vmatpush3.msra.mxu0 %v6702_v43 }
 0x42a   :  { %5160 = vmatprep.subr.mxu0 %v7952_v6 }
 0x4c8   :  { %v1331_v45 = vpop.f32.mrf.mxu1  ;;  %v1402_v47 = vpop.f32.mrf.mxu0 }
 0x4c9   :  { %v1406_v51 = vadd.f32 %v1331_v45, %v7969_v49  ;;  %v1420_v43 = vadd.f32 %v6385_v56, %v1402_v47 }
 0x4ca   :  { %v5124_v53 = vpop.f32.mrf.mxu0  ;;  %v1333_v57 = vpop.f32.mrf.mxu1 }
 0x4cb   :  { %v4543_v55 = vmul.f32 -1.442695, %v1406_v51  ;;  %v1413_v61 = vadd.f32 %v1333_v57, %v7970_v59 }
 0x4cd   :  { %5690 = vpow2.f32 %v4543_v55  ;;  %v4544_v63 = vmul.f32 -1.442695, %v1413_v61 }
 0x4cf   :  { %5692 = vpow2.f32 %v4544_v63 }
 0x4da   :  { %v5691_v13 = vpop.eup %5690 }
 0x4db   :  { %v1410_v10 = vadd.f32 1.0, %v5691_v13  ;;  %v7973_v13 = vld [vmem:[#allocation19_spill] sm:$0xff] }
 0x4dc   :  { %v5693_v30 = vpop.eup %5692 }
 0x4dd   :  { %5694 = vrcp.f32 %v1410_v10  ;;  %v1417_v14 = vadd.f32 1.0, %v5693_v30  ;;  %v7971_v10 = vld [vmem:[#allocation23_spill] sm:$0xff]  ;;  %v7974_v30 = vld [vmem:[#allocation24_spill] sm:$0xff] }
 0x4df   :  { %5696 = vrcp.f32 %v1417_v14 }
 0x4ea   :  { %v5695_v12 = vpop.eup %5694 }
 0x4eb   :  { %v1421_v41 = vmul.f32 %v5695_v12, %v1420_v43  ;;  %v7975_v12 = vld [vmem:[#allocation20_spill] sm:$0xff]  ;;  %v7976_v43 = vld [vmem:[#allocation29_spill] sm:$0xff] }
 0x4ec   :  { %v5697_v49 = vpop.eup %5696 }
 0x4ed   :  { %v1422_v45 = vadd.f32 %v1421_v41, %v6370_v0  ;;  %v1424_v51 = vsub.f32 1.0, %v5697_v49  ;;  %v1426_v57 = vmul.f32 %v5697_v49, %v6605_v1  ;;  %v7972_v0 = vld [vmem:[#allocation18_spill] sm:$0xff] }
 0x4ee   :  { %v7977_v49 = vld [vmem:[#allocation30_spill] sm:$0xff] }
 0x4ef   :  { %5698 = vtanh.f32 %v1422_v45 }
 0x4fc   :  { %v5699_v53 = vpop.eup %5698 }
 0x4fd   :  { %v1425_v55 = vmul.f32 %v5699_v53, %v1424_v51 }
 0x4ff   :  { %v6713_v59 = vadd.f32 %v1426_v57, %v1425_v55 }
 0x501   :  { %1545 = vmatmul.mubr.f32.vlgmr.msra.gmra.mxu1 %v6713_v59  ;;  %5158 = vmatmul.mubr.f32.vlgmr.msra.gmra.mxu0 %v6713_v59 }
 0x502   :  { %1696 = vmatpush1.msra.mxu1 %v6506_v32  ;;  %5161 = vmatpush3.msra.mxu0 %v6644_v7 }
 0x503   :  { %1697 = vmatprep.subr.mxu1 %v6509_v34  ;;  %5162 = vmatprep.subr.mxu0 %v7952_v6 }
 0x504   :  { %1698 = vmatpush1.msra.mxu1 %v6512_v9  ;;  %5163 = vmatpush3.msra.mxu0 %v6648_v3 }
 0x505   :  { %1699 = vmatprep.subr.mxu1 %v6515_v36  ;;  %5164 = vmatprep.subr.mxu0 %v7952_v6 }
 0x506   :  { %1700 = vmatpush1.msra.mxu1 %v6518_v38  ;;  %5165 = vmatpush3.msra.mxu0 %v6652_v5 }
 0x507   :  { %1701 = vmatprep.subr.mxu1 %v6521_v40  ;;  %5166 = vmatprep.subr.mxu0 %v7952_v6 }
 0x508   :  { %1702 = vmatpush1.msra.mxu1 %v6524_v42  ;;  %5167 = vmatpush3.msra.mxu0 %v6656_v16 }
 0x509   :  { %1703 = vmatprep.subr.mxu1 %v6527_v44  ;;  %5168 = vmatprep.subr.mxu0 %v7952_v6 }
 0x50a   :  { %1704 = vmatpush1.msra.mxu1 %v6530_v46  ;;  %5169 = vmatpush3.msra.mxu0 %v6660_v20 }
 0x50b   :  { %1705 = vmatprep.subr.mxu1 %v6533_v48  ;;  %5170 = vmatprep.subr.mxu0 %v7952_v6 }
 0x50c   :  { %1706 = vmatpush1.msra.mxu1 %v6536_v50  ;;  %5171 = vmatpush3.msra.mxu0 %v6664_v22 }
 0x50d   :  { %1707 = vmatprep.subr.mxu1 %v6539_v52  ;;  %5172 = vmatprep.subr.mxu0 %v7952_v6 }
 0x50e   :  { %1708 = vmatpush1.msra.mxu1 %v6542_v54  ;;  %5173 = vmatpush3.msra.mxu0 %v6668_v24 }
 0x50f   :  { %1709 = vmatprep.subr.mxu1 %v6545_v62  ;;  %5174 = vmatprep.subr.mxu0 %v7952_v6 }
 0x510   :  { %1710 = vmatpush1.msra.mxu1 %v6548_v4  ;;  %5175 = vmatpush3.msra.mxu0 %v6672_v27 }
 0x511   :  { %1711 = vmatprep.subr.mxu1 %v6550_v25  ;;  %5176 = vmatprep.subr.mxu0 %v7952_v6 }
 0x512   :  { %1712 = vmatpush1.msra.mxu1 %v6552_v8  ;;  %5177 = vmatpush3.msra.mxu0 %v6674_v29 }
 0x513   :  { %1713 = vmatprep.subr.mxu1 %v6555_v28  ;;  %5178 = vmatprep.subr.mxu0 %v7952_v6 }
 0x514   :  { %1714 = vmatpush1.msra.mxu1 %v6558_v19  ;;  %5179 = vmatpush3.msra.mxu0 %v6678_v31 }
 0x515   :  { %1715 = vmatprep.subr.mxu1 %v6561_v11  ;;  %5180 = vmatprep.subr.mxu0 %v7952_v6 }
 0x516   :  { %1716 = vmatpush1.msra.mxu1 %v6564_v26  ;;  %5181 = vmatpush3.msra.mxu0 %v6682_v33 }
 0x517   :  { %1717 = vmatprep.subr.mxu1 %v6567_v58  ;;  %5182 = vmatprep.subr.mxu0 %v7952_v6 }
 0x518   :  { %1718 = vmatpush1.msra.mxu1 %v6570_v17  ;;  %5183 = vmatpush3.msra.mxu0 %v6686_v35 }
 0x519   :  { %1719 = vmatprep.subr.mxu1 %v6573_v2  ;;  %5184 = vmatprep.subr.mxu0 %v7952_v6 }
 0x51a   :  { %1720 = vmatpush1.msra.mxu1 %v6576_v18  ;;  %5185 = vmatpush3.msra.mxu0 %v6690_v37 }
 0x51b   :  { %1721 = vmatprep.subr.mxu1 %v6579_v23  ;;  %5186 = vmatprep.subr.mxu0 %v7952_v6 }
 0x51c   :  { %1722 = vmatpush1.msra.mxu1 %v6582_v15  ;;  %5187 = vmatpush3.msra.mxu0 %v6694_v39 }
 0x51d   :  { %1723 = vmatprep.subr.mxu1 %v6585_v21  ;;  %5188 = vmatprep.subr.mxu0 %v7952_v6 }
 0x51e   :  { %1724 = vmatpush1.msra.mxu1 %v6588_v60  ;;  %5189 = vmatpush3.msra.mxu0 %v7971_v10  ;;  %v7978_v10 = vld [vmem:[#allocation38_spill] sm:$0xff] }
 0x51f   :  { %1725 = vmatprep.subr.mxu1 %v7972_v0  ;;  %5190 = vmatprep.subr.mxu0 %v7952_v6 }
 0x520   :  { %1726 = vmatpush1.msra.mxu1 %v7973_v13  ;;  %1759 = vmatprep.mubr.f32.mxu1 %v7952_v6 }
 0x521   :  { %5191 = vmatpush3.msra.mxu0 %v7974_v30  ;;  %5192 = vmatprep.mubr.msk.f32.mxu0 %vm5954_vm2, %v7952_v6 }
 0x522   :  { %1910 = vmatprep.subr.mxu1 %v7975_v12  ;;  %5195 = vmatprep.subr.mxu0 %v7952_v6 }
 0x5c1   :  { %v1546_v14 = vpop.f32.mrf.mxu1  ;;  %v1617_v41 = vpop.f32.mrf.mxu0 }
 0x5c2   :  { %v1621_v47 = vadd.f32 %v1546_v14, %v7976_v43  ;;  %v1635_v12 = vadd.f32 %v6385_v56, %v1617_v41  ;;  %v7979_v56 = vld [vmem:[#allocation23_spill] sm:$0xff]  ;;  %v2095_v41 = vld [vmem:[#allocation7 + $0x90] sm:$0xff] }
 0x5c3   :  { %v5159_v61 = vpop.f32.mrf.mxu0  ;;  %v1548_v45 = vpop.f32.mrf.mxu1 }
 0x5c4   :  { %v4545_v63 = vmul.f32 -1.442695, %v1621_v47  ;;  %v1628_v51 = vadd.f32 %v1548_v45, %v7977_v49 }
 0x5c6   :  { %5700 = vpow2.f32 %v4545_v63  ;;  %v4546_v53 = vmul.f32 -1.442695, %v1628_v51  ;;  %v2093_v51 = vld [vmem:[#allocation7 + $0x80] sm:$0xff] }
 0x5c8   :  { %5702 = vpow2.f32 %v4546_v53  ;;  %v2092_v53 = vld [vmem:[#allocation7 + $0x78] sm:$0xff] }
 0x5d3   :  { %v5701_v55 = vpop.eup %5700 }
 0x5d4   :  { %v1625_v57 = vadd.f32 1.0, %v5701_v55  ;;  %v2090_v55 = vld [vmem:[#allocation7 + $0x68] sm:$0xff] }
 0x5d5   :  { %v5703_v1 = vpop.eup %5702 }
 0x5d6   :  { %5704 = vrcp.f32 %v1625_v57  ;;  %v1632_v30 = vadd.f32 1.0, %v5703_v1  ;;  %v2123_v1 = vld [vmem:[#allocation7 + $0x170] sm:$0xff]  ;;  %v2089_v57 = vld [vmem:[#allocation7 + $0x60] sm:$0xff] }
 0x5d8   :  { %5706 = vrcp.f32 %v1632_v30  ;;  %v2096_v30 = vld [vmem:[#allocation7 + $0x98] sm:$0xff] }
 0x5e3   :  { %v5705_v13 = vpop.eup %5704 }
 0x5e4   :  { %v1636_v0 = vmul.f32 %v5705_v13, %v1635_v12  ;;  %v2098_v13 = vld [vmem:[#allocation7 + $0xa8] sm:$0xff]  ;;  %v2356_v12 = vld [vmem:[#allocation4 + $0x2f8] sm:$0xff] }
 0x5e5   :  { %v5707_v43 = vpop.eup %5706 }
 0x5e6   :  { %v1637_v14 = vadd.f32 %v1636_v0, %v7978_v10  ;;  %v1639_v47 = vsub.f32 1.0, %v5707_v43  ;;  %v1641_v45 = vmul.f32 %v5707_v43, %v6713_v59  ;;  %v2101_v10 = vld [vmem:[#allocation7 + $0xc0] sm:$0xff]  ;;  %v2099_v0 = vld [vmem:[#allocation7 + $0xb0] sm:$0xff]  ;;  %v2086_v43 = vld [vmem:[#allocation7 + $0x48] sm:$0xff] }
 0x5e8   :  { %5708 = vtanh.f32 %v1637_v14  ;;  %v2087_v14 = vld [vmem:[#allocation7 + $0x50] sm:$0xff] }
 0x5f5   :  { %v5709_v61 = vpop.eup %5708 }
 0x5f6   :  { %v1640_v63 = vmul.f32 %v5709_v61, %v1639_v47  ;;  %v2084_v47 = vld [vmem:[#allocation7 + $0x38] sm:$0xff]  ;;  %v2083_v61 = vld [vmem:[#allocation7 + $0x30] sm:$0xff] }
 0x5f8   :  { %v6789_v49 = vadd.f32 %v1641_v45, %v1640_v63  ;;  %v2081_v63 = vld [vmem:[#allocation7 + $0x20] sm:$0xff]  ;;  %v2080_v45 = vld [vmem:[#allocation7 + $0x18] sm:$0xff] }
 0x5fa   :  { %1760 = vmatmul.mubr.f32.vlgmr.msra.gmra.mxu1 %v6789_v49  ;;  %5193 = vmatmul.mubr.f32.vlgmr.msra.gmra.mxu0 %v6789_v49 }
 0x5fb   :  { %1911 = vmatpush1.msra.mxu1 %v6506_v32  ;;  %5196 = vmatpush3.msra.mxu0 %v6644_v7  ;;  %v7980_v32 = vld [vmem:[#allocation18_spill] sm:$0xff] }
 0x5fc   :  { %1912 = vmatprep.subr.mxu1 %v6509_v34  ;;  %5197 = vmatprep.subr.mxu0 %v7952_v6  ;;  %v7981_v34 = vld [vmem:[#allocation19_spill] sm:$0xff] }
 0x5fd   :  { %1913 = vmatpush1.msra.mxu1 %v6512_v9  ;;  %5198 = vmatpush3.msra.mxu0 %v6648_v3  ;;  %v7982_v9 = vld [vmem:[#allocation24_spill] sm:$0xff] }
 0x5fe   :  { %1914 = vmatprep.subr.mxu1 %v6515_v36  ;;  %5199 = vmatprep.subr.mxu0 %v7952_v6 }
 0x5ff   :  { %1915 = vmatpush1.msra.mxu1 %v6518_v38  ;;  %5200 = vmatpush3.msra.mxu0 %v6652_v5 }
 0x600   :  { %1916 = vmatprep.subr.mxu1 %v6521_v40  ;;  %5201 = vmatprep.subr.mxu0 %v7952_v6  ;;  %v7983_v40 = vld [vmem:[#allocation31_spill] sm:$0xff] }
 0x601   :  { %1917 = vmatpush1.msra.mxu1 %v6524_v42  ;;  %5202 = vmatpush3.msra.mxu0 %v6656_v16 }
 0x602   :  { %1918 = vmatprep.subr.mxu1 %v6527_v44  ;;  %5203 = vmatprep.subr.mxu0 %v7952_v6 }
 0x603   :  { %1919 = vmatpush1.msra.mxu1 %v6530_v46  ;;  %5204 = vmatpush3.msra.mxu0 %v6660_v20 }
 0x604   :  { %1920 = vmatprep.subr.mxu1 %v6533_v48  ;;  %5205 = vmatprep.subr.mxu0 %v7952_v6 }
 0x605   :  { %1921 = vmatpush1.msra.mxu1 %v6536_v50  ;;  %5206 = vmatpush3.msra.mxu0 %v6664_v22  ;;  %v7984_v50 = vld [vmem:[#allocation32_spill] sm:$0xff] }
 0x606   :  { %1922 = vmatprep.subr.mxu1 %v6539_v52  ;;  %5207 = vmatprep.subr.mxu0 %v7952_v6 }
 0x607   :  { %1923 = vmatpush1.msra.mxu1 %v6542_v54  ;;  %5208 = vmatpush3.msra.mxu0 %v6668_v24 }
 0x608   :  { %1924 = vmatprep.subr.mxu1 %v6545_v62  ;;  %5209 = vmatprep.subr.mxu0 %v7952_v6 }
 0x609   :  { %1925 = vmatpush1.msra.mxu1 %v6548_v4  ;;  %5210 = vmatpush3.msra.mxu0 %v6672_v27 }
 0x60a   :  { %1926 = vmatprep.subr.mxu1 %v6550_v25  ;;  %5211 = vmatprep.subr.mxu0 %v7952_v6 }
 0x60b   :  { %1927 = vmatpush1.msra.mxu1 %v6552_v8  ;;  %5212 = vmatpush3.msra.mxu0 %v6674_v29 }
 0x60c   :  { %1928 = vmatprep.subr.mxu1 %v6555_v28  ;;  %5213 = vmatprep.subr.mxu0 %v7952_v6  ;;  %v6864_v28 = vld [vmem:[%s7863_s7] ss:$0 sm:$0xff] }
 0x60d   :  { %1929 = vmatpush1.msra.mxu1 %v6558_v19  ;;  %5214 = vmatpush3.msra.mxu0 %v6678_v31 }
 0x60e   :  { %1930 = vmatprep.subr.mxu1 %v6561_v11  ;;  %5215 = vmatprep.subr.mxu0 %v7952_v6 }
 0x60f   :  { %1931 = vmatpush1.msra.mxu1 %v6564_v26  ;;  %5216 = vmatpush3.msra.mxu0 %v6682_v33 }
 0x610   :  { %1932 = vmatprep.subr.mxu1 %v6567_v58  ;;  %5217 = vmatprep.subr.mxu0 %v7952_v6  ;;  %v7985_v58 = vld [vmem:[#allocation37_spill] sm:$0xff] }
 0x611   :  { %1933 = vmatpush1.msra.mxu1 %v6570_v17  ;;  %5218 = vmatpush3.msra.mxu0 %v6686_v35 }
 0x612   :  { %1934 = vmatprep.subr.mxu1 %v6573_v2  ;;  %5219 = vmatprep.subr.mxu0 %v7952_v6 }
 0x613   :  { %1935 = vmatpush1.msra.mxu1 %v6576_v18  ;;  %5220 = vmatpush3.msra.mxu0 %v6690_v37 }
 0x614   :  { %1936 = vmatprep.subr.mxu1 %v6579_v23  ;;  %5221 = vmatprep.subr.mxu0 %v7952_v6 }
 0x615   :  { %1937 = vmatpush1.msra.mxu1 %v6582_v15  ;;  %5222 = vmatpush3.msra.mxu0 %v6694_v39 }
 0x616   :  { %1938 = vmatprep.subr.mxu1 %v6585_v21  ;;  %5223 = vmatprep.subr.mxu0 %v7952_v6 }
 0x617   :  { %1939 = vmatpush1.msra.mxu1 %v6588_v60  ;;  %5224 = vmatpush3.msra.mxu0 %v7979_v56 }
 0x618   :  { %1940 = vmatprep.subr.mxu1 %v7980_v32  ;;  %5225 = vmatprep.subr.mxu0 %v7952_v6  ;;  %v2077_v32 = vld [vmem:[#allocation7] sm:$0xff] }
 0x619   :  { %1941 = vmatpush1.msra.mxu1 %v7981_v34  ;;  %1974 = vmatprep.mubr.f32.mxu1 %v7952_v6  ;;  %v2355_v34 = vld [vmem:[#allocation4 + $0x2f0] sm:$0xff] }
 0x61a   :  { %5226 = vmatpush3.msra.mxu0 %v7982_v9  ;;  %5227 = vmatprep.mubr.msk.f32.mxu0 %vm5954_vm2, %v7952_v6 }
 0x61b   :  { %5230 = vmatprep.subr.mxu0 %v7952_v6  ;;  %2125 = vmatprep.subr.mxu1 %v2123_v1  ;;  %v2354_v1 = vld [vmem:[#allocation4 + $0x2e8] sm:$0xff] }
 0x6ba   :  { %v1761_v36 = vpop.f32.mrf.mxu1  ;;  %v1832_v38 = vpop.f32.mrf.mxu0 }
 0x6bb   :  { %v1836_v42 = vadd.f32 %v1761_v36, %v7983_v40  ;;  %v1850_v19 = vadd.f32 %v6864_v28, %v1832_v38  ;;  %v7986_v38 = vld [vmem:[#allocation33_spill] sm:$0xff] }
 0x6bc   :  { %v5194_v44 = vpop.f32.mrf.mxu0  ;;  %v1763_v48 = vpop.f32.mrf.mxu1 }
 0x6bd   :  { %v4547_v46 = vmul.f32 -1.442695, %v1836_v42  ;;  %v1843_v52 = vadd.f32 %v1763_v48, %v7984_v50  ;;  %v7987_v48 = vld [vmem:[#allocation34_spill] sm:$0xff] }
 0x6bf   :  { %5710 = vpow2.f32 %v4547_v46  ;;  %v4548_v54 = vmul.f32 -1.442695, %v1843_v52 }
 0x6c1   :  { %5712 = vpow2.f32 %v4548_v54 }
 0x6cc   :  { %v5711_v62 = vpop.eup %5710 }
 0x6cd   :  { %v1840_v4 = vadd.f32 1.0, %v5711_v62 }
 0x6ce   :  { %v5713_v25 = vpop.eup %5712 }
 0x6cf   :  { %5714 = vrcp.f32 %v1840_v4  ;;  %v1847_v8 = vadd.f32 1.0, %v5713_v25 }
 0x6d1   :  { %5716 = vrcp.f32 %v1847_v8 }
 0x6dc   :  { %v5715_v11 = vpop.eup %5714 }
 0x6dd   :  { %v1851_v26 = vmul.f32 %v5715_v11, %v1850_v19 }
 0x6de   :  { %v5717_v2 = vpop.eup %5716 }
 0x6df   :  { %v1852_v17 = vadd.f32 %v1851_v26, %v7985_v58  ;;  %v1854_v18 = vsub.f32 1.0, %v5717_v2  ;;  %v1856_v21 = vmul.f32 %v5717_v2, %v6789_v49  ;;  %v7988_v26 = vld [vmem:[#allocation40_spill] sm:$0xff] }
 0x6e1   :  { %5718 = vtanh.f32 %v1852_v17 }
 0x6ee   :  { %v5719_v23 = vpop.eup %5718 }
 0x6ef   :  { %v1855_v15 = vmul.f32 %v5719_v23, %v1854_v18 }
 0x6f1   :  { %v6869_v60 = vadd.f32 %v1856_v21, %v1855_v15 }
 0x6f3   :  { %1975 = vmatmul.mubr.f32.vlgmr.msra.gmra.mxu1 %v6869_v60  ;;  %5228 = vmatmul.mubr.f32.vlgmr.msra.gmra.mxu0 %v6869_v60 }
 0x6f4   :  { %5231 = vmatpush3.msra.mxu0 %v6644_v7  ;;  %2189 = vmatprep.mubr.f32.mxu1 %v7952_v6  ;;  %v2122_v7 = vld [vmem:[#allocation7 + $0x168] sm:$0xff] }
 0x6f5   :  { %5232 = vmatprep.subr.mxu0 %v7952_v6  ;;  %5262 = vmatprep.mubr.msk.f32.mxu0 %vm5954_vm2, %v7952_v6 }
 0x6f6   :  { %5233 = vmatpush3.msra.mxu0 %v6648_v3  ;;  %2126 = vmatpush1.msra.mxu1 %v2122_v7  ;;  %v2120_v3 = vld [vmem:[#allocation7 + $0x158] sm:$0xff] }
 0x6f7   :  { %5234 = vmatprep.subr.mxu0 %v7952_v6  ;;  %2127 = vmatprep.subr.mxu1 %v2120_v3  ;;  %v2352_v7 = vld [vmem:[#allocation4 + $0x2d8] sm:$0xff]  ;;  %v2353_v3 = vld [vmem:[#allocation4 + $0x2e0] sm:$0xff] }
 0x6f8   :  { %5235 = vmatpush3.msra.mxu0 %v6652_v5  ;;  %v2119_v5 = vld [vmem:[#allocation7 + $0x150] sm:$0xff] }
 0x6f9   :  { %5236 = vmatprep.subr.mxu0 %v7952_v6  ;;  %2128 = vmatpush1.msra.mxu1 %v2119_v5  ;;  %v2351_v5 = vld [vmem:[#allocation4 + $0x2d0] sm:$0xff] }
 0x6fa   :  { %5237 = vmatpush3.msra.mxu0 %v6656_v16  ;;  %v2117_v16 = vld [vmem:[#allocation7 + $0x140] sm:$0xff] }
 0x6fb   :  { %5238 = vmatprep.subr.mxu0 %v7952_v6  ;;  %2129 = vmatprep.subr.mxu1 %v2117_v16  ;;  %v2349_v16 = vld [vmem:[#allocation4 + $0x2c0] sm:$0xff] }
 0x6fc   :  { %5239 = vmatpush3.msra.mxu0 %v6660_v20  ;;  %v2116_v20 = vld [vmem:[#allocation7 + $0x138] sm:$0xff] }
 0x6fd   :  { %5240 = vmatprep.subr.mxu0 %v7952_v6  ;;  %2130 = vmatpush1.msra.mxu1 %v2116_v20  ;;  %v2350_v20 = vld [vmem:[#allocation4 + $0x2c8] sm:$0xff] }
 0x6fe   :  { %5241 = vmatpush3.msra.mxu0 %v6664_v22  ;;  %v2114_v22 = vld [vmem:[#allocation7 + $0x128] sm:$0xff] }
 0x6ff   :  { %5242 = vmatprep.subr.mxu0 %v7952_v6  ;;  %2131 = vmatprep.subr.mxu1 %v2114_v22  ;;  %v2348_v22 = vld [vmem:[#allocation4 + $0x2b8] sm:$0xff] }
 0x700   :  { %5243 = vmatpush3.msra.mxu0 %v6668_v24  ;;  %v2113_v24 = vld [vmem:[#allocation7 + $0x120] sm:$0xff] }
 0x701   :  { %5244 = vmatprep.subr.mxu0 %v7952_v6  ;;  %2132 = vmatpush1.msra.mxu1 %v2113_v24  ;;  %v7989_v24 = vld [vmem:[#allocation41_spill] sm:$0xff] }
 0x702   :  { %5245 = vmatpush3.msra.mxu0 %v6672_v27  ;;  %v2111_v27 = vld [vmem:[#allocation7 + $0x110] sm:$0xff] }
 0x703   :  { %5246 = vmatprep.subr.mxu0 %v7952_v6  ;;  %2133 = vmatprep.subr.mxu1 %v2111_v27  ;;  %v2346_v27 = vld [vmem:[#allocation4 + $0x2a8] sm:$0xff] }
 0x704   :  { %5247 = vmatpush3.msra.mxu0 %v6674_v29  ;;  %v2110_v29 = vld [vmem:[#allocation7 + $0x108] sm:$0xff] }
 0x705   :  { %5248 = vmatprep.subr.mxu0 %v7952_v6  ;;  %2134 = vmatpush1.msra.mxu1 %v2110_v29  ;;  %v2347_v29 = vld [vmem:[#allocation4 + $0x2b0] sm:$0xff] }
 0x706   :  { %5249 = vmatpush3.msra.mxu0 %v6678_v31  ;;  %v2108_v31 = vld [vmem:[#allocation7 + $0xf8] sm:$0xff] }
 0x707   :  { %5250 = vmatprep.subr.mxu0 %v7952_v6  ;;  %2135 = vmatprep.subr.mxu1 %v2108_v31  ;;  %v2345_v31 = vld [vmem:[#allocation4 + $0x2a0] sm:$0xff] }
 0x708   :  { %5251 = vmatpush3.msra.mxu0 %v6682_v33  ;;  %v2107_v33 = vld [vmem:[#allocation7 + $0xf0] sm:$0xff] }
 0x709   :  { %5252 = vmatprep.subr.mxu0 %v7952_v6  ;;  %2136 = vmatpush1.msra.mxu1 %v2107_v33  ;;  %v2343_v33 = vld [vmem:[#allocation4 + $0x290] sm:$0xff] }
 0x70a   :  { %5253 = vmatpush3.msra.mxu0 %v6686_v35  ;;  %v2105_v35 = vld [vmem:[#allocation7 + $0xe0] sm:$0xff] }
 0x70b   :  { %5254 = vmatprep.subr.mxu0 %v7952_v6  ;;  %2137 = vmatprep.subr.mxu1 %v2105_v35  ;;  %v2344_v35 = vld [vmem:[#allocation4 + $0x298] sm:$0xff] }
 0x70c   :  { %5255 = vmatpush3.msra.mxu0 %v6690_v37  ;;  %v2104_v37 = vld [vmem:[#allocation7 + $0xd8] sm:$0xff] }
 0x70d   :  { %5256 = vmatprep.subr.mxu0 %v7952_v6  ;;  %2138 = vmatpush1.msra.mxu1 %v2104_v37  ;;  %v2342_v37 = vld [vmem:[#allocation4 + $0x288] sm:$0xff] }
 0x70e   :  { %5257 = vmatpush3.msra.mxu0 %v6694_v39  ;;  %v2102_v39 = vld [vmem:[#allocation7 + $0xc8] sm:$0xff] }
 0x70f   :  { %5258 = vmatprep.subr.mxu0 %v7952_v6  ;;  %2139 = vmatprep.subr.mxu1 %v2102_v39  ;;  %v2340_v39 = vld [vmem:[#allocation4 + $0x278] sm:$0xff] }
 0x710   :  { %5259 = vmatpush3.msra.mxu0 %v7979_v56  ;;  %2140 = vmatpush1.msra.mxu1 %v2101_v10  ;;  %v2078_v56 = vld [vmem:[#allocation7 + $0x8] sm:$0xff]  ;;  %v2341_v10 = vld [vmem:[#allocation4 + $0x280] sm:$0xff] }
 0x711   :  { %5260 = vmatprep.subr.mxu0 %v7952_v6  ;;  %2141 = vmatprep.subr.mxu1 %v2099_v0  ;;  %v2339_v0 = vld [vmem:[#allocation4 + $0x270] sm:$0xff] }
 0x712   :  { %5261 = vmatpush3.msra.mxu0 %v7982_v9  ;;  %2142 = vmatpush1.msra.mxu1 %v2098_v13  ;;  %v2337_v13 = vld [vmem:[#allocation4 + $0x260] sm:$0xff] }
 0x713   :  { %2143 = vmatprep.subr.mxu1 %v2096_v30  ;;  %5265 = vmatprep.subr.mxu0 %v2356_v12  ;;  %v2338_v30 = vld [vmem:[#allocation4 + $0x268] sm:$0xff] }
 0x714   :  { %2144 = vmatpush1.msra.mxu1 %v2095_v41  ;;  %v2336_v41 = vld [vmem:[#allocation4 + $0x258] sm:$0xff] }
 0x715   :  { %2145 = vmatprep.subr.mxu1 %v2093_v51  ;;  %v2334_v51 = vld [vmem:[#allocation4 + $0x248] sm:$0xff] }
 0x716   :  { %2146 = vmatpush1.msra.mxu1 %v2092_v53  ;;  %v2335_v53 = vld [vmem:[#allocation4 + $0x250] sm:$0xff] }
 0x717   :  { %2147 = vmatprep.subr.mxu1 %v2090_v55  ;;  %v2333_v55 = vld [vmem:[#allocation4 + $0x240] sm:$0xff] }
 0x718   :  { %2148 = vmatpush1.msra.mxu1 %v2089_v57  ;;  %v2331_v57 = vld [vmem:[#allocation4 + $0x230] sm:$0xff] }
 0x719   :  { %2149 = vmatprep.subr.mxu1 %v2087_v14  ;;  %v2330_v14 = vld [vmem:[#allocation4 + $0x228] sm:$0xff] }
 0x71a   :  { %2150 = vmatpush1.msra.mxu1 %v2086_v43  ;;  %v2328_v43 = vld [vmem:[#allocation4 + $0x218] sm:$0xff] }
 0x71b   :  { %2151 = vmatprep.subr.mxu1 %v2084_v47  ;;  %v2329_v47 = vld [vmem:[#allocation4 + $0x220] sm:$0xff] }
 0x71c   :  { %2152 = vmatpush1.msra.mxu1 %v2083_v61  ;;  %v2327_v61 = vld [vmem:[#allocation4 + $0x210] sm:$0xff] }
 0x71d   :  { %2153 = vmatprep.subr.mxu1 %v2081_v63  ;;  %v2325_v63 = vld [vmem:[#allocation4 + $0x200] sm:$0xff] }
 0x71e   :  { %2154 = vmatpush1.msra.mxu1 %v2080_v45  ;;  %v2326_v45 = vld [vmem:[#allocation4 + $0x208] sm:$0xff] }
 0x71f   :  { %2155 = vmatprep.subr.mxu1 %v2078_v56  ;;  %v2324_v56 = vld [vmem:[#allocation4 + $0x1f8] sm:$0xff] }
 0x720   :  { %2156 = vmatpush1.msra.mxu1 %v2077_v32  ;;  %v2322_v32 = vld [vmem:[#allocation4 + $0x1e8] sm:$0xff] }
 0x721   :  { %2375 = vmatprep.subr.mxu1 %v2355_v34  ;;  %v2323_v34 = vld [vmem:[#allocation4 + $0x1f0] sm:$0xff] }
 0x7b3   :  { %v1976_v9 = vpop.f32.mrf.mxu1  ;;  %v2047_v36 = vpop.f32.mrf.mxu0 }
 0x7b4   :  { %v2051_v40 = vadd.f32 %v1976_v9, %v7986_v38  ;;  %v2065_v8 = vadd.f32 %v6864_v28, %v2047_v36  ;;  %v2321_v9 = vld [vmem:[#allocation4 + $0x1e0] sm:$0xff]  ;;  %v2319_v36 = vld [vmem:[#allocation4 + $0x1d0] sm:$0xff]  ;;  %v2320_v38 = vld [vmem:[#allocation4 + $0x1d8] sm:$0xff] }
 0x7b5   :  { %v5229_v42 = vpop.f32.mrf.mxu0  ;;  %v1978_v46 = vpop.f32.mrf.mxu1 }
 0x7b6   :  { %v4549_v44 = vmul.f32 -1.442695, %v2051_v40  ;;  %v2058_v50 = vadd.f32 %v1978_v46, %v7987_v48  ;;  %v2318_v40 = vld [vmem:[#allocation4 + $0x1c8] sm:$0xff]  ;;  %v2316_v42 = vld [vmem:[#allocation4 + $0x1b8] sm:$0xff]  ;;  %v2315_v46 = vld [vmem:[#allocation4 + $0x1b0] sm:$0xff] }
 0x7b7   :  { %v2313_v48 = vld [vmem:[#allocation4 + $0x1a0] sm:$0xff] }
 0x7b8   :  { %5720 = vpow2.f32 %v4549_v44  ;;  %v4550_v52 = vmul.f32 -1.442695, %v2058_v50  ;;  %v2317_v44 = vld [vmem:[#allocation4 + $0x1c0] sm:$0xff]  ;;  %v2314_v50 = vld [vmem:[#allocation4 + $0x1a8] sm:$0xff] }
 0x7ba   :  { %5722 = vpow2.f32 %v4550_v52  ;;  %v2312_v52 = vld [vmem:[#allocation4 + $0x198] sm:$0xff] }
 0x7c5   :  { %v5721_v54 = vpop.eup %5720 }
 0x7c6   :  { %v2055_v62 = vadd.f32 1.0, %v5721_v54  ;;  %v2310_v54 = vld [vmem:[#allocation4 + $0x188] sm:$0xff] }
 0x7c7   :  { %v5723_v4 = vpop.eup %5722 }
 0x7c8   :  { %5724 = vrcp.f32 %v2055_v62  ;;  %v2062_v25 = vadd.f32 1.0, %v5723_v4  ;;  %v2311_v62 = vld [vmem:[#allocation4 + $0x190] sm:$0xff]  ;;  %v2309_v4 = vld [vmem:[#allocation4 + $0x180] sm:$0xff] }
 0x7ca   :  { %5726 = vrcp.f32 %v2062_v25  ;;  %v7990_v25 = vld [vmem:[#allocation17_spill] sm:$0xff] }
 0x7d5   :  { %v5725_v19 = vpop.eup %5724 }
 0x7d6   :  { %v2066_v11 = vmul.f32 %v5725_v19, %v2065_v8  ;;  %v7991_v8 = vld [vmem:[#allocation21_spill] sm:$0xff] }
 0x7d7   :  { %v5727_v17 = vpop.eup %5726  ;;  %v6939_v19 = vld [vmem:[#allocation7 + $0x2f0] sm:$0xff] }
 0x7d8   :  { %v2067_v58 = vadd.f32 %v2066_v11, %v7988_v26  ;;  %v2069_v2 = vsub.f32 1.0, %v5727_v17  ;;  %v2071_v15 = vmul.f32 %v5727_v17, %v6869_v60  ;;  %7992 = vst [vmem:[#allocation25_spill] sm:$0xff] %v6939_v19  ;;  %v6942_v11 = vld [vmem:[#allocation7 + $0x2e8] sm:$0xff]  ;;  %v6954_v26 = vld [vmem:[#allocation7 + $0x2b8] sm:$0xff]  ;;  %v6960_v17 = vld [vmem:[#allocation7 + $0x2a0] sm:$0xff] }
 0x7da   :  { %5728 = vtanh.f32 %v2067_v58  ;;  %v6957_v58 = vld [vmem:[#allocation7 + $0x2a8] sm:$0xff] }
 0x7e7   :  { %v5729_v18 = vpop.eup %5728 }
 0x7e8   :  { %v2070_v23 = vmul.f32 %v5729_v18, %v2069_v2  ;;  %v6963_v2 = vld [vmem:[#allocation7 + $0x290] sm:$0xff]  ;;  %v6966_v18 = vld [vmem:[#allocation7 + $0x288] sm:$0xff] }
 0x7ea   :  { %v6912_v21 = vadd.f32 %v2071_v15, %v2070_v23  ;;  %v6969_v23 = vld [vmem:[#allocation7 + $0x278] sm:$0xff]  ;;  %v6972_v15 = vld [vmem:[#allocation7 + $0x270] sm:$0xff] }
 0x7ec   :  { %2190 = vmatmul.mubr.f32.vlgmr.msra.gmra.mxu1 %v6912_v21  ;;  %5263 = vmatmul.mubr.f32.vlgmr.msra.gmra.mxu0 %v6912_v21 }
 0x7ed   :  { %2376 = vmatpush1.msra.mxu1 %v2354_v1  ;;  %5266 = vmatpush3.msra.mxu0 %v2356_v12  ;;  %v2332_v12 = vld [vmem:[#allocation4 + $0x238] sm:$0xff]  ;;  %v6975_v1 = vld [vmem:[#allocation7 + $0x260] sm:$0xff] }
 0x7ee   :  { %2377 = vmatprep.subr.mxu1 %v2352_v7  ;;  %5267 = vmatprep.subr.mxu0 %v2353_v3  ;;  %v6978_v7 = vld [vmem:[#allocation7 + $0x258] sm:$0xff] }
 0x7ef   :  { %5297 = vmatprep.mubr.f32.mxu0 %v7989_v24  ;;  %2378 = vmatpush1.msra.mxu1 %v2351_v5  ;;  %v6984_v5 = vld [vmem:[#allocation7 + $0x240] sm:$0xff] }
 0x7f0   :  { %5268 = vmatpush3.msra.mxu0 %v2353_v3  ;;  %2379 = vmatprep.subr.mxu1 %v2349_v16  ;;  %v6981_v3 = vld [vmem:[#allocation7 + $0x248] sm:$0xff]  ;;  %v6987_v16 = vld [vmem:[#allocation7 + $0x230] sm:$0xff] }
 0x7f1   :  { %5269 = vmatprep.subr.mxu0 %v2350_v20  ;;  %2380 = vmatpush1.msra.mxu1 %v2348_v22  ;;  %v6993_v22 = vld [vmem:[#allocation7 + $0x218] sm:$0xff] }
 0x7f2   :  { %5270 = vmatpush3.msra.mxu0 %v2350_v20  ;;  %2381 = vmatprep.subr.mxu1 %v2346_v27  ;;  %v6990_v20 = vld [vmem:[#allocation7 + $0x228] sm:$0xff]  ;;  %v6999_v27 = vld [vmem:[#allocation7 + $0x200] sm:$0xff] }
 0x7f3   :  { %5271 = vmatprep.subr.mxu0 %v2347_v29  ;;  %2382 = vmatpush1.msra.mxu1 %v2345_v31  ;;  %v7005_v31 = vld [vmem:[#allocation7 + $0x1e8] sm:$0xff] }
 0x7f4   :  { %5272 = vmatpush3.msra.mxu0 %v2347_v29  ;;  %2383 = vmatprep.subr.mxu1 %v2343_v33  ;;  %v7002_v29 = vld [vmem:[#allocation7 + $0x1f8] sm:$0xff]  ;;  %v7008_v33 = vld [vmem:[#allocation7 + $0x1e0] sm:$0xff] }
 0x7f5   :  { %5273 = vmatprep.subr.mxu0 %v2344_v35  ;;  %2384 = vmatpush1.msra.mxu1 %v2342_v37  ;;  %v7014_v37 = vld [vmem:[#allocation7 + $0x1c8] sm:$0xff] }
 0x7f6   :  { %5274 = vmatpush3.msra.mxu0 %v2344_v35  ;;  %2385 = vmatprep.subr.mxu1 %v2340_v39  ;;  %v7011_v35 = vld [vmem:[#allocation7 + $0x1d0] sm:$0xff]  ;;  %v7017_v39 = vld [vmem:[#allocation7 + $0x1b8] sm:$0xff] }
 0x7f7   :  { %5275 = vmatprep.subr.mxu0 %v2341_v10  ;;  %2386 = vmatpush1.msra.mxu1 %v2339_v0  ;;  %v7023_v0 = vld [vmem:[#allocation7 + $0x1a0] sm:$0xff] }
 0x7f8   :  { %5276 = vmatpush3.msra.mxu0 %v2341_v10  ;;  %2387 = vmatprep.subr.mxu1 %v2337_v13  ;;  %v7020_v10 = vld [vmem:[#allocation7 + $0x1b0] sm:$0xff]  ;;  %v7026_v13 = vld [vmem:[#allocation7 + $0x198] sm:$0xff] }
 0x7f9   :  { %5277 = vmatprep.subr.mxu0 %v2338_v30  ;;  %2388 = vmatpush1.msra.mxu1 %v2336_v41  ;;  %7993 = vst [vmem:[#allocation26_spill] sm:$0xff] %v7026_v13  ;;  %v7031_v41 = vld [vmem:[#allocation7 + $0x180] sm:$0xff] }
 0x7fa   :  { %5278 = vmatpush3.msra.mxu0 %v2338_v30  ;;  %2389 = vmatprep.subr.mxu1 %v2334_v51  ;;  %v7029_v30 = vld [vmem:[#allocation7 + $0x188] sm:$0xff]  ;;  %7995 = vst [vmem:[#allocation28_spill] sm:$0xff] %v7031_v41  ;;  %v7033_v51 = vld [vmem:[#allocation7 + $0x2f8] sm:$0xff] }
 0x7fb   :  { %5279 = vmatprep.subr.mxu0 %v2335_v53  ;;  %2390 = vmatpush1.msra.mxu1 %v2333_v55  ;;  %7994 = vst [vmem:[#allocation27_spill] sm:$0xff] %v7029_v30  ;;  %v7041_v55 = vld [vmem:[#allocation7 + $0x2c8] sm:$0xff] }
 0x7fc   :  { %5280 = vmatpush3.msra.mxu0 %v2335_v53  ;;  %2391 = vmatprep.subr.mxu1 %v2331_v57  ;;  %v7037_v53 = vld [vmem:[#allocation7 + $0x2e0] sm:$0xff]  ;;  %v7046_v57 = vld [vmem:[#allocation7 + $0x2b0] sm:$0xff] }
 0x7fd   :  { %5281 = vmatprep.subr.mxu0 %v2332_v12  ;;  %2392 = vmatpush1.msra.mxu1 %v2330_v14  ;;  %v7054_v14 = vld [vmem:[#allocation7 + $0x280] sm:$0xff] }
 0x7fe   :  { %5282 = vmatpush3.msra.mxu0 %v2332_v12  ;;  %2393 = vmatprep.subr.mxu1 %v2328_v43  ;;  %v7050_v12 = vld [vmem:[#allocation7 + $0x298] sm:$0xff]  ;;  %v7058_v43 = vld [vmem:[#allocation7 + $0x268] sm:$0xff] }
 0x7ff   :  { %5283 = vmatprep.subr.mxu0 %v2329_v47  ;;  %2394 = vmatpush1.msra.mxu1 %v2327_v61  ;;  %v7066_v61 = vld [vmem:[#allocation7 + $0x238] sm:$0xff] }
 0x800   :  { %5284 = vmatpush3.msra.mxu0 %v2329_v47  ;;  %2395 = vmatprep.subr.mxu1 %v2325_v63  ;;  %v7062_v47 = vld [vmem:[#allocation7 + $0x250] sm:$0xff]  ;;  %v7070_v63 = vld [vmem:[#allocation7 + $0x220] sm:$0xff] }
 0x801   :  { %5285 = vmatprep.subr.mxu0 %v2326_v45  ;;  %2396 = vmatpush1.msra.mxu1 %v2324_v56  ;;  %v7078_v56 = vld [vmem:[#allocation7 + $0x1f0] sm:$0xff] }
 0x802   :  { %5286 = vmatpush3.msra.mxu0 %v2326_v45  ;;  %2397 = vmatprep.subr.mxu1 %v2322_v32  ;;  %v7074_v45 = vld [vmem:[#allocation7 + $0x208] sm:$0xff]  ;;  %v7082_v32 = vld [vmem:[#allocation7 + $0x1d8] sm:$0xff] }
 0x803   :  { %5287 = vmatprep.subr.mxu0 %v2323_v34  ;;  %2398 = vmatpush1.msra.mxu1 %v2321_v9  ;;  %v7090_v9 = vld [vmem:[#allocation7 + $0x1a8] sm:$0xff] }
 0x804   :  { %5288 = vmatpush3.msra.mxu0 %v2323_v34  ;;  %2399 = vmatprep.subr.mxu1 %v2319_v36  ;;  %v7086_v34 = vld [vmem:[#allocation7 + $0x1c0] sm:$0xff]  ;;  %7996 = vst [vmem:[#allocation20_spill] sm:$0xff] %v7090_v9  ;;  %v7094_v36 = vld [vmem:[#allocation7 + $0x190] sm:$0xff] }
 0x805   :  { %5289 = vmatprep.subr.mxu0 %v2320_v38  ;;  %2400 = vmatpush1.msra.mxu1 %v2318_v40  ;;  %7997 = vst [vmem:[#allocation29_spill] sm:$0xff] %v7094_v36 }
 0x806   :  { %5290 = vmatpush3.msra.mxu0 %v2320_v38  ;;  %2401 = vmatprep.subr.mxu1 %v2316_v42  ;;  %v7998_v42 = vld [vmem:[#allocation35_spill] sm:$0xff] }
 0x807   :  { %5291 = vmatprep.subr.mxu0 %v2317_v44  ;;  %2402 = vmatpush1.msra.mxu1 %v2315_v46 }
 0x808   :  { %5292 = vmatpush3.msra.mxu0 %v2317_v44  ;;  %2403 = vmatprep.subr.mxu1 %v2313_v48 }
 0x809   :  { %5293 = vmatprep.subr.mxu0 %v2314_v50  ;;  %2404 = vmatpush1.msra.mxu1 %v2312_v52  ;;  %v7999_v52 = vld [vmem:[#allocation36_spill] sm:$0xff] }
 0x80a   :  { %5294 = vmatpush3.msra.mxu0 %v2314_v50  ;;  %2405 = vmatprep.subr.mxu1 %v2310_v54 }
 0x80b   :  { %5295 = vmatprep.subr.mxu0 %v2311_v62  ;;  %2406 = vmatpush1.msra.mxu1 %v2309_v4 }
 0x80c   :  { %2439 = vmatprep.mubr.f32.mxu1 %v7952_v6  ;;  %5296 = vmatpush3.msra.mxu0 %v2311_v62 }
 0x80d   :  { %2440 = vmatmul.mubr.f32.vlgmr.msra.gmra.mxu1 %v7989_v24  ;;  %5298 = vmatmul.mubr.f32.vlgmr.msra.gmra.mxu0 %v7990_v25  ;;  %v6996_v24 = vld [vmem:[#allocation7 + $0x210] sm:$0xff] }
 0x80e   :  { %5300 = vmatprep.mubr.f32.mxu0 %v7991_v8  ;;  %2445 = vmatprep.mubr.f32.mxu1 %v7952_v6 }
 0x80f   :  { %5309 = vmatprep.subr.mxu0 %v7952_v6  ;;  %2669 = vmatprep.subr.mxu1 %v6939_v19 }
 0x810   :  { %2670 = vmatpush1.msra.mxu1 %v6942_v11  ;;  %5310 = vmatpush3.msra.mxu0 %v7033_v51 }
 0x811   :  { %2446 = vmatmul.mubr.f32.gmra.mxu1 %v7990_v25  ;;  %5301 = vmatmul.mubr.f32.gmra.mxu0 %v6713_v59 }
 0x812   :  { %5303 = vmatprep.mubr.f32.mxu0 %v6789_v49  ;;  %2451 = vmatprep.mubr.f32.mxu1 %v7952_v6 }
 0x813   :  { %5311 = vmatprep.subr.mxu0 %v7952_v6 }
 0x814   :  { %5312 = vmatpush3.msra.mxu0 %v7037_v53 }
 0x815   :  { %2452 = vmatmul.mubr.f32.gmra.mxu1 %v7991_v8  ;;  %5304 = vmatmul.mubr.f32.gmra.mxu0 %v6869_v60 }
 0x816   :  { %5306 = vmatprep.mubr.f32.mxu0 %v6912_v21  ;;  %2457 = vmatprep.mubr.f32.mxu1 %v7952_v6 }
 0x817   :  { %5313 = vmatprep.subr.mxu0 %v7952_v6 }
 0x818   :  { %5314 = vmatpush3.msra.mxu0 %v7041_v55 }
 0x819   :  { %2458 = vmatmul.mubr.f32.gmra.mxu1 %v6713_v59  ;;  %v6945_v59 = vld [vmem:[#allocation7 + $0x2d8] sm:$0xff]  ;;  %5315 = vmatprep.subr.mxu0 %v7952_v6 }
 0x81a   :  { %2463 = vmatprep.mubr.f32.mxu1 %v7952_v6  ;;  %2671 = vmatprep.subr.mxu1 %v6945_v59 }
 0x81b   :  { %5316 = vmatpush3.msra.mxu0 %v7046_v57 }
 0x81c   :  { %5317 = vmatprep.subr.mxu0 %v7952_v6 }
 0x81d   :  { %2464 = vmatmul.mubr.f32.gmra.mxu1 %v6789_v49  ;;  %v6948_v49 = vld [vmem:[#allocation7 + $0x2d0] sm:$0xff]  ;;  %5318 = vmatpush3.msra.mxu0 %v7050_v12 }
 0x81e   :  { %2469 = vmatprep.mubr.f32.mxu1 %v7952_v6  ;;  %2672 = vmatpush1.msra.mxu1 %v6948_v49 }
 0x81f   :  { %5319 = vmatprep.subr.mxu0 %v7952_v6 }
 0x820   :  { %5320 = vmatpush3.msra.mxu0 %v7054_v14 }
 0x821   :  { %2470 = vmatmul.mubr.f32.gmra.mxu1 %v6869_v60  ;;  %v6951_v60 = vld [vmem:[#allocation7 + $0x2c0] sm:$0xff]  ;;  %5321 = vmatprep.subr.mxu0 %v7952_v6 }
 0x822   :  { %2475 = vmatprep.mubr.f32.mxu1 %v7952_v6  ;;  %2673 = vmatprep.subr.mxu1 %v6951_v60 }
 0x823   :  { %2674 = vmatpush1.msra.mxu1 %v6954_v26  ;;  %5322 = vmatpush3.msra.mxu0 %v7058_v43 }
 0x824   :  { %2675 = vmatprep.subr.mxu1 %v6957_v58  ;;  %5323 = vmatprep.subr.mxu0 %v7952_v6 }
 0x825   :  { %2476 = vmatmul.mubr.f32.gmra.mxu1 %v6912_v21  ;;  %5324 = vmatpush3.msra.mxu0 %v7062_v47 }
 0x826   :  { %2481 = vmatprep.mubr.f32.mxu1 %v7952_v6  ;;  %2676 = vmatpush1.msra.mxu1 %v6960_v17 }
 0x827   :  { %2677 = vmatprep.subr.mxu1 %v6963_v2  ;;  %5325 = vmatprep.subr.mxu0 %v7952_v6 }
 0x828   :  { %2678 = vmatpush1.msra.mxu1 %v6966_v18  ;;  %5326 = vmatpush3.msra.mxu0 %v7066_v61 }
 0x829   :  { %2679 = vmatprep.subr.mxu1 %v6969_v23  ;;  %5327 = vmatprep.subr.mxu0 %v7952_v6 }
 0x82a   :  { %2680 = vmatpush1.msra.mxu1 %v6972_v15  ;;  %5328 = vmatpush3.msra.mxu0 %v7070_v63 }
 0x82b   :  { %2681 = vmatprep.subr.mxu1 %v6975_v1  ;;  %5329 = vmatprep.subr.mxu0 %v7952_v6 }
 0x82c   :  { %2682 = vmatpush1.msra.mxu1 %v6978_v7  ;;  %5330 = vmatpush3.msra.mxu0 %v7074_v45 }
 0x82d   :  { %2683 = vmatprep.subr.mxu1 %v6981_v3  ;;  %5331 = vmatprep.subr.mxu0 %v7952_v6 }
 0x82e   :  { %2684 = vmatpush1.msra.mxu1 %v6984_v5  ;;  %5332 = vmatpush3.msra.mxu0 %v7078_v56 }
 0x82f   :  { %2685 = vmatprep.subr.mxu1 %v6987_v16  ;;  %5333 = vmatprep.subr.mxu0 %v7952_v6 }
 0x830   :  { %2686 = vmatpush1.msra.mxu1 %v6990_v20  ;;  %5334 = vmatpush3.msra.mxu0 %v7082_v32 }
 0x831   :  { %2687 = vmatprep.subr.mxu1 %v6993_v22  ;;  %5335 = vmatprep.subr.mxu0 %v7952_v6 }
 0x832   :  { %2688 = vmatpush1.msra.mxu1 %v6996_v24  ;;  %5336 = vmatpush3.msra.mxu0 %v7086_v34 }
 0x833   :  { %2689 = vmatprep.subr.mxu1 %v6999_v27  ;;  %5337 = vmatprep.subr.mxu0 %v7952_v6 }
 0x834   :  { %2690 = vmatpush1.msra.mxu1 %v7002_v29  ;;  %5338 = vmatpush3.msra.mxu0 %v7090_v9  ;;  %v8000_v9 = vld [vmem:[#allocation39_spill] sm:$0xff] }
 0x835   :  { %2691 = vmatprep.subr.mxu1 %v7005_v31  ;;  %5339 = vmatprep.subr.mxu0 %v7952_v6 }
 0x836   :  { %2692 = vmatpush1.msra.mxu1 %v7008_v33  ;;  %5340 = vmatpush3.msra.mxu0 %v7094_v36 }
 0x837   :  { %2693 = vmatprep.subr.mxu1 %v7011_v35  ;;  %5344 = vmatprep.subr.mxu0 %v7952_v6 }
 0x838   :  { %2694 = vmatpush1.msra.mxu1 %v7014_v37 }
 0x839   :  { %2695 = vmatprep.subr.mxu1 %v7017_v39 }
 0x83a   :  { %2696 = vmatpush1.msra.mxu1 %v7020_v10 }
 0x83b   :  { %2697 = vmatprep.subr.mxu1 %v7023_v0 }
 0x83c   :  { %2698 = vmatpush1.msra.mxu1 %v7026_v13 }
 0x83d   :  { %2699 = vmatprep.subr.mxu1 %v7029_v30 }
 0x83e   :  { %2700 = vmatpush1.msra.mxu1 %v7031_v41 }
 0x83f   :  { %2884 = vmatprep.subr.mxu1 %v6939_v19 }
 0x8ac   :  { %v2191_v38 = vpop.f32.mrf.mxu1  ;;  %v2262_v40 = vpop.f32.mrf.mxu0 }
 0x8ad   :  { %v2266_v44 = vadd.f32 %v2191_v38, %v7998_v42  ;;  %v2280_v36 = vadd.f32 %v6864_v28, %v2262_v40  ;;  %v7109_v28 = vld [vmem:[%s7857_s1 + $0x8] sm:$0xff] }
 0x8ae   :  { %v5264_v46 = vpop.f32.mrf.mxu0  ;;  %v2193_v50 = vpop.f32.mrf.mxu1 }
 0x8af   :  { %v4551_v48 = vmul.f32 -1.442695, %v2266_v44  ;;  %v2273_v54 = vadd.f32 %v2193_v50, %v7999_v52 }
 0x8b1   :  { %5730 = vpow2.f32 %v4551_v48  ;;  %v4552_v62 = vmul.f32 -1.442695, %v2273_v54 }
 0x8b3   :  { %5732 = vpow2.f32 %v4552_v62 }
 0x8be   :  { %v5731_v4 = vpop.eup %5730 }
 0x8bf   :  { %v2270_v25 = vadd.f32 1.0, %v5731_v4 }
 0x8c0   :  { %v5733_v8 = vpop.eup %5732 }
 0x8c1   :  { %5734 = vrcp.f32 %v2270_v25  ;;  %v2277_v19 = vadd.f32 1.0, %v5733_v8 }
 0x8c3   :  { %5736 = vrcp.f32 %v2277_v19  ;;  %v8002_v19 = vld [vmem:[#allocation27_spill] sm:$0xff] }
 0x8ce   :  { %v5735_v41 = vpop.eup %5734 }
 0x8cf   :  { %v2281_v30 = vmul.f32 %v5735_v41, %v2280_v36  ;;  %v8004_v41 = vld [vmem:[#allocation29_spill] sm:$0xff]  ;;  %v2441_v36 = vpop.f32.mrf.mxu1 }
 0x8d0   :  { %v5737_v42 = vpop.eup %5736 }
 0x8d1   :  { %v2282_v38 = vadd.f32 %v2281_v30, %v8000_v9  ;;  %v2284_v44 = vsub.f32 1.0, %v5737_v42  ;;  %v2286_v50 = vmul.f32 %v5737_v42, %v6912_v21  ;;  %v8001_v21 = vld [vmem:[#allocation20_spill] sm:$0xff]  ;;  %v8005_v9 = vld [vmem:[#allocation25_spill] sm:$0xff]  ;;  %v2443_v40 = vpop.f32.mrf.mxu1  ;;  %v7194_v42 = vpop.f32.mrf.mxu0 }
 0x8d2   :  { %v8003_v30 = vld [vmem:[#allocation28_spill] sm:$0xff]  ;;  %8012 = vst [vmem:[#allocation31_spill] sm:$0xff] %v7194_v42 }
 0x8d3   :  { %5738 = vtanh.f32 %v2282_v38  ;;  %v7182_v54 = vpop.f32.mrf.mxu1 }
 0x8d4   :  { %8006 = vst [vmem:[#allocation30_spill] sm:$0xff] %v7182_v54 }
 0x8d5   :  { %v7184_v62 = vpop.f32.mrf.mxu1 }
 0x8d6   :  { %8007 = vst [vmem:[#allocation38_spill] sm:$0xff] %v7184_v62 }
 0x8d7   :  { %v7186_v4 = vpop.f32.mrf.mxu1 }
 0x8d8   :  { %8008 = vst [vmem:[#allocation23_spill] sm:$0xff] %v7186_v4 }
 0x8d9   :  { %v7188_v25 = vpop.f32.mrf.mxu1 }
 0x8da   :  { %8009 = vst [vmem:[#allocation18_spill] sm:$0xff] %v7188_v25 }
 0x8db   :  { %v7190_v8 = vpop.f32.mrf.mxu1 }
 0x8dc   :  { %8010 = vst [vmem:[#allocation19_spill] sm:$0xff] %v7190_v8 }
 0x8dd   :  { %v7192_v38 = vpop.f32.mrf.mxu1 }
 0x8de   :  { %8011 = vst [vmem:[#allocation24_spill] sm:$0xff] %v7192_v38  ;;  %v4556_v38 = vld [vmem:[%s7862_s6 + $0x3] sm:$0x7] }
 0x8e0   :  { %v5739_v46 = vpop.eup %5738 }
 0x8e1   :  { %v2285_v48 = vmul.f32 %v5739_v46, %v2284_v44  ;;  %v7196_v44 = vpop.f32.mrf.mxu1  ;;  %v2554_v46 = vpop.f32.mrf.mxu0 }
 0x8e2   :  { %8013 = vst [vmem:[#allocation32_spill] sm:$0xff] %v7196_v44 }
 0x8e3   :  { %v2287_v52 = vadd.f32 %v2286_v50, %v2285_v48  ;;  %v7198_v48 = vpop.f32.mrf.mxu1  ;;  %v7200_v50 = vpop.f32.mrf.mxu0 }
 0x8e4   :  { %8014 = vst [vmem:[#allocation37_spill] sm:$0xff] %v7198_v48  ;;  %8015 = vst [vmem:[#allocation33_spill] sm:$0xff] %v7200_v50  ;;  %v8023_v48 = vld [vmem:[#allocation22_spill] sm:$0xff] }
 0x8e5   :  { %2482 = vmatmul.mubr.f32.gmra.mxu1 %v2287_v52  ;;  %2289 = vst [vmem:[#allocation11] sm:$0xff] %v2287_v52  ;;  %5307 = vmatmul.mubr.f32.gmra.mxu0 %v2287_v52  ;;  %v7202_v52 = vpop.f32.mrf.mxu1  ;;  %v7204_v62 = vpop.f32.mrf.mxu0  ;;  %v8024_v50 = vsub.s32 0, %v8023_v48 }
 0x8e6   :  { %2733 = vmatprep.mubr.f32.mxu1 %v7952_v6  ;;  %5341 = vmatprep.mubr.msk.f32.mxu0 %vm5954_vm2, %v7952_v6  ;;  %8016 = vst [vmem:[#allocation34_spill] sm:$0xff] %v7202_v52  ;;  %8017 = vst [vmem:[#allocation40_spill] sm:$0xff] %v7204_v62 }
 0x8e7   :  { %v7206_v4 = vpop.f32.mrf.mxu1  ;;  %v7208_v25 = vpop.f32.mrf.mxu0  ;;  %v7221_v54 = vrot.slane %v4556_v38, %v8024_v50 }
 0x8e8   :  { %8018 = vst [vmem:[#allocation41_spill] sm:$0xff] %v7206_v4  ;;  %8019 = vst [vmem:[#allocation17_spill] sm:$0xff] %v7208_v25 }
 0x8e9   :  { %2734 = vmatmul.mubr.f32.vlgmr.msra.gmra.mxu1 %v7109_v28  ;;  %5342 = vmatmul.mubr.f32.vlgmr.msra.gmra.mxu0 %v7109_v28  ;;  %v7210_v8 = vpop.f32.mrf.mxu1  ;;  %v7215_v44 = vpop.f32.mrf.mxu0  ;;  %8025 = vst [vmem:[#allocation39_spill] sm:$0xff] %v7221_v54 }
 0x8ea   :  { %2885 = vmatpush1.msra.mxu1 %v6942_v11  ;;  %5345 = vmatpush3.msra.mxu0 %v7033_v51  ;;  %8020 = vst [vmem:[#allocation21_spill] sm:$0xff] %v7210_v8  ;;  %8021 = vst [vmem:[#allocation35_spill] sm:$0xff] %v7215_v44  ;;  %v2442_v8 = vadd.f32 %v2441_v36, %v7221_v54  ;;  %v8030_v44 = vsub.s32 1, %v8023_v48  ;;  %v7240_v54 = vld [vmem:[%s7863_s7 + $0x1] ss:$0 sm:$0xff] }
 0x8eb   :  { %2886 = vmatprep.subr.mxu1 %v6945_v59  ;;  %5346 = vmatprep.subr.mxu0 %v7952_v6  ;;  %v7217_v42 = vpop.f32.mrf.mxu1 }
 0x8ec   :  { %2887 = vmatpush1.msra.mxu1 %v6948_v49  ;;  %5347 = vmatpush3.msra.mxu0 %v7037_v53  ;;  %8022 = vst [vmem:[#allocation36_spill] sm:$0xff] %v7217_v42 }
 0x8ed   :  { %2888 = vmatprep.subr.mxu1 %v6951_v60  ;;  %5348 = vmatprep.subr.mxu0 %v7952_v6 }
 0x8ee   :  { %2889 = vmatpush1.msra.mxu1 %v6954_v26  ;;  %5349 = vmatpush3.msra.mxu0 %v7041_v55 }
 0x8ef   :  { %2890 = vmatprep.subr.mxu1 %v6957_v58  ;;  %5350 = vmatprep.subr.mxu0 %v7952_v6 }
 0x8f0   :  { %2891 = vmatpush1.msra.mxu1 %v6960_v17  ;;  %5351 = vmatpush3.msra.mxu0 %v7046_v57 }
 0x8f1   :  { %2892 = vmatprep.subr.mxu1 %v6963_v2  ;;  %5352 = vmatprep.subr.mxu0 %v7952_v6 }
 0x8f2   :  { %2893 = vmatpush1.msra.mxu1 %v6966_v18  ;;  %5353 = vmatpush3.msra.mxu0 %v7050_v12 }
 0x8f3   :  { %2894 = vmatprep.subr.mxu1 %v6969_v23  ;;  %5354 = vmatprep.subr.mxu0 %v7952_v6 }
 0x8f4   :  { %2895 = vmatpush1.msra.mxu1 %v6972_v15  ;;  %5355 = vmatpush3.msra.mxu0 %v7054_v14 }
 0x8f5   :  { %2896 = vmatprep.subr.mxu1 %v6975_v1  ;;  %5356 = vmatprep.subr.mxu0 %v7952_v6 }
 0x8f6   :  { %2897 = vmatpush1.msra.mxu1 %v6978_v7  ;;  %5357 = vmatpush3.msra.mxu0 %v7058_v43 }
 0x8f7   :  { %2898 = vmatprep.subr.mxu1 %v6981_v3  ;;  %5358 = vmatprep.subr.mxu0 %v7952_v6 }
 0x8f8   :  { %2899 = vmatpush1.msra.mxu1 %v6984_v5  ;;  %5359 = vmatpush3.msra.mxu0 %v7062_v47 }
 0x8f9   :  { %2900 = vmatprep.subr.mxu1 %v6987_v16  ;;  %5360 = vmatprep.subr.mxu0 %v7952_v6 }
 0x8fa   :  { %2901 = vmatpush1.msra.mxu1 %v6990_v20  ;;  %5361 = vmatpush3.msra.mxu0 %v7066_v61 }
 0x8fb   :  { %2902 = vmatprep.subr.mxu1 %v6993_v22  ;;  %5362 = vmatprep.subr.mxu0 %v7952_v6 }
 0x8fc   :  { %2903 = vmatpush1.msra.mxu1 %v6996_v24  ;;  %5363 = vmatpush3.msra.mxu0 %v7070_v63 }
 0x8fd   :  { %2904 = vmatprep.subr.mxu1 %v6999_v27  ;;  %5364 = vmatprep.subr.mxu0 %v7952_v6 }
 0x8fe   :  { %2905 = vmatpush1.msra.mxu1 %v7002_v29  ;;  %5365 = vmatpush3.msra.mxu0 %v7074_v45 }
 0x8ff   :  { %2906 = vmatprep.subr.mxu1 %v7005_v31  ;;  %5366 = vmatprep.subr.mxu0 %v7952_v6 }
 0x900   :  { %2907 = vmatpush1.msra.mxu1 %v7008_v33  ;;  %5367 = vmatpush3.msra.mxu0 %v7078_v56 }
 0x901   :  { %2908 = vmatprep.subr.mxu1 %v7011_v35  ;;  %5368 = vmatprep.subr.mxu0 %v7952_v6 }
 0x902   :  { %2909 = vmatpush1.msra.mxu1 %v7014_v37  ;;  %5369 = vmatpush3.msra.mxu0 %v7082_v32 }
 0x903   :  { %2910 = vmatprep.subr.mxu1 %v7017_v39  ;;  %5370 = vmatprep.subr.mxu0 %v7952_v6 }
 0x904   :  { %2911 = vmatpush1.msra.mxu1 %v7020_v10  ;;  %5371 = vmatpush3.msra.mxu0 %v7086_v34 }
 0x905   :  { %2912 = vmatprep.subr.mxu1 %v7023_v0  ;;  %5372 = vmatprep.subr.mxu0 %v7952_v6 }
 0x906   :  { %2913 = vmatpush1.msra.mxu1 %v7026_v13  ;;  %5373 = vmatpush3.msra.mxu0 %v8001_v21 }
 0x907   :  { %2914 = vmatprep.subr.mxu1 %v8002_v19  ;;  %5374 = vmatprep.subr.mxu0 %v7952_v6 }
 0x908   :  { %2915 = vmatpush1.msra.mxu1 %v8003_v30  ;;  %2948 = vmatprep.mubr.f32.mxu1 %v7952_v6  ;;  %v7234_v30 = vrot.slane %v4556_v38, %v8030_v44 }
 0x909   :  { %5375 = vmatpush3.msra.mxu0 %v8004_v41  ;;  %5376 = vmatprep.mubr.msk.f32.mxu0 %vm5954_vm2, %v7952_v6 }
 0x90a   :  { %3099 = vmatprep.subr.mxu1 %v8005_v9  ;;  %5379 = vmatprep.subr.mxu0 %v7952_v6 }
 0x9a5   :  { %v7223_v52 = vpop.f32.mrf.mxu1  ;;  %v7225_v62 = vpop.f32.mrf.mxu0 }
 0x9a6   :  { %8026 = vst [vmem:[#allocation22_spill] sm:$0xff] %v7223_v52  ;;  %8027 = vst [vmem:[#allocation42_spill] sm:$0xff] %v7225_v62  ;;  %v2444_v52 = vadd.f32 %v2443_v40, %v7234_v30 }
 0x9a7   :  { %v7227_v4 = vpop.f32.mrf.mxu1  ;;  %v7229_v25 = vpop.f32.mrf.mxu0 }
 0x9a8   :  { %8028 = vst [vmem:[#allocation43_spill] sm:$0xff] %v7227_v4  ;;  %8029 = vst [vmem:[#allocation44_spill] sm:$0xff] %v7229_v25 }
 0x9a9   :  { %v2735_v9 = vpop.f32.mrf.mxu1  ;;  %v2806_v41 = vpop.f32.mrf.mxu0 }
 0x9aa   :  { %v2810_v42 = vadd.f32 %v2735_v9, %v2442_v8  ;;  %v8031_v9 = vsub.s32 2, %v8023_v48  ;;  %v8037_v48 = vld [vmem:[#allocation29_spill] sm:$0xff] }
 0x9ab   :  { %v5343_v19 = vpop.f32.mrf.mxu0  ;;  %v2737_v21 = vpop.f32.mrf.mxu1 }
 0x9ac   :  { %v4557_v50 = vmul.f32 -1.442695, %v2810_v42  ;;  %v2817_v62 = vadd.f32 %v2737_v21, %v2444_v52  ;;  %v2824_v19 = vadd.f32 %v7240_v54, %v2806_v41  ;;  %v7245_v8 = vrot.slane %v4556_v38, %v8031_v9  ;;  %v8034_v41 = vld [vmem:[#allocation20_spill] sm:$0xff]  ;;  %v8035_v38 = vld [vmem:[#allocation27_spill] sm:$0xff]  ;;  %v8040_v9 = vld [vmem:[#allocation30_spill] sm:$0xff] }
 0x9ae   :  { %5740 = vpow2.f32 %v4557_v50  ;;  %v4558_v13 = vmul.f32 -1.442695, %v2817_v62  ;;  %v2555_v21 = vadd.f32 %v2554_v46, %v7245_v8  ;;  %v8036_v46 = vld [vmem:[#allocation28_spill] sm:$0xff] }
 0x9b0   :  { %5742 = vpow2.f32 %v4558_v13 }
 0x9bb   :  { %v5741_v4 = vpop.eup %5740 }
 0x9bc   :  { %v2814_v25 = vadd.f32 1.0, %v5741_v4 }
 0x9bd   :  { %v5743_v36 = vpop.eup %5742 }
 0x9be   :  { %5744 = vrcp.f32 %v2814_v25  ;;  %v2821_v44 = vadd.f32 1.0, %v5743_v36 }
 0x9c0   :  { %5746 = vrcp.f32 %v2821_v44  ;;  %v8038_v44 = vld [vmem:[#allocation25_spill] sm:$0xff] }
 0x9cb   :  { %v5745_v40 = vpop.eup %5744 }
 0x9cc   :  { %v2825_v13 = vmul.f32 %v5745_v40, %v2824_v19  ;;  %v8039_v19 = vld [vmem:[#allocation39_spill] sm:$0xff] }
 0x9cd   :  { %v5747_v4 = vpop.eup %5746  ;;  %v2448_v40 = vadd.f32 %v8040_v9, %v8039_v19 }
 0x9ce   :  { %v2826_v62 = vadd.f32 %v2825_v13, %v2555_v21  ;;  %v2828_v25 = vsub.f32 1.0, %v5747_v4  ;;  %v2830_v50 = vmul.f32 %v5747_v4, %v7109_v28  ;;  %v8033_v28 = vld [vmem:[#allocation26_spill] sm:$0xff] }
 0x9d0   :  { %5748 = vtanh.f32 %v2826_v62 }
 0x9dd   :  { %v5749_v42 = vpop.eup %5748 }
 0x9de   :  { %v2829_v52 = vmul.f32 %v5749_v42, %v2828_v25 }
 0x9e0   :  { %v7249_v36 = vadd.f32 %v2830_v50, %v2829_v52  ;;  %v8041_v52 = vld [vmem:[#allocation38_spill] sm:$0xff] }
 0x9e1   :  { %v2450_v50 = vadd.f32 %v8041_v52, %v7234_v30 }
 0x9e2   :  { %8032 = vst [vmem:[#allocation45_spill] sm:$0xff] %v7249_v36  ;;  %2949 = vmatmul.mubr.f32.vlgmr.msra.gmra.mxu1 %v7249_v36  ;;  %5377 = vmatmul.mubr.f32.vlgmr.msra.gmra.mxu0 %v7249_v36 }
 0x9e3   :  { %3100 = vmatpush1.msra.mxu1 %v6942_v11  ;;  %5380 = vmatpush3.msra.mxu0 %v7033_v51 }
 0x9e4   :  { %3101 = vmatprep.subr.mxu1 %v6945_v59  ;;  %5381 = vmatprep.subr.mxu0 %v7952_v6 }
 0x9e5   :  { %3102 = vmatpush1.msra.mxu1 %v6948_v49  ;;  %5382 = vmatpush3.msra.mxu0 %v7037_v53 }
 0x9e6   :  { %3103 = vmatprep.subr.mxu1 %v6951_v60  ;;  %5383 = vmatprep.subr.mxu0 %v7952_v6 }
 0x9e7   :  { %3104 = vmatpush1.msra.mxu1 %v6954_v26  ;;  %5384 = vmatpush3.msra.mxu0 %v7041_v55 }
 0x9e8   :  { %3105 = vmatprep.subr.mxu1 %v6957_v58  ;;  %5385 = vmatprep.subr.mxu0 %v7952_v6 }
 0x9e9   :  { %3106 = vmatpush1.msra.mxu1 %v6960_v17  ;;  %5386 = vmatpush3.msra.mxu0 %v7046_v57 }
 0x9ea   :  { %3107 = vmatprep.subr.mxu1 %v6963_v2  ;;  %5387 = vmatprep.subr.mxu0 %v7952_v6 }
 0x9eb   :  { %3108 = vmatpush1.msra.mxu1 %v6966_v18  ;;  %5388 = vmatpush3.msra.mxu0 %v7050_v12 }
 0x9ec   :  { %3109 = vmatprep.subr.mxu1 %v6969_v23  ;;  %5389 = vmatprep.subr.mxu0 %v7952_v6 }
 0x9ed   :  { %3110 = vmatpush1.msra.mxu1 %v6972_v15  ;;  %5390 = vmatpush3.msra.mxu0 %v7054_v14 }
 0x9ee   :  { %3111 = vmatprep.subr.mxu1 %v6975_v1  ;;  %5391 = vmatprep.subr.mxu0 %v7952_v6 }
 0x9ef   :  { %3112 = vmatpush1.msra.mxu1 %v6978_v7  ;;  %5392 = vmatpush3.msra.mxu0 %v7058_v43 }
 0x9f0   :  { %3113 = vmatprep.subr.mxu1 %v6981_v3  ;;  %5393 = vmatprep.subr.mxu0 %v7952_v6 }
 0x9f1   :  { %3114 = vmatpush1.msra.mxu1 %v6984_v5  ;;  %5394 = vmatpush3.msra.mxu0 %v7062_v47 }
 0x9f2   :  { %3115 = vmatprep.subr.mxu1 %v6987_v16  ;;  %5395 = vmatprep.subr.mxu0 %v7952_v6 }
 0x9f3   :  { %3116 = vmatpush1.msra.mxu1 %v6990_v20  ;;  %5396 = vmatpush3.msra.mxu0 %v7066_v61 }
 0x9f4   :  { %3117 = vmatprep.subr.mxu1 %v6993_v22  ;;  %5397 = vmatprep.subr.mxu0 %v7952_v6 }
 0x9f5   :  { %3118 = vmatpush1.msra.mxu1 %v6996_v24  ;;  %5398 = vmatpush3.msra.mxu0 %v7070_v63 }
 0x9f6   :  { %3119 = vmatprep.subr.mxu1 %v6999_v27  ;;  %5399 = vmatprep.subr.mxu0 %v7952_v6 }
 0x9f7   :  { %3120 = vmatpush1.msra.mxu1 %v7002_v29  ;;  %5400 = vmatpush3.msra.mxu0 %v7074_v45 }
 0x9f8   :  { %3121 = vmatprep.subr.mxu1 %v7005_v31  ;;  %5401 = vmatprep.subr.mxu0 %v7952_v6 }
 0x9f9   :  { %3122 = vmatpush1.msra.mxu1 %v7008_v33  ;;  %5402 = vmatpush3.msra.mxu0 %v7078_v56 }
 0x9fa   :  { %3123 = vmatprep.subr.mxu1 %v7011_v35  ;;  %5403 = vmatprep.subr.mxu0 %v7952_v6 }
 0x9fb   :  { %3124 = vmatpush1.msra.mxu1 %v7014_v37  ;;  %5404 = vmatpush3.msra.mxu0 %v7082_v32 }
 0x9fc   :  { %3125 = vmatprep.subr.mxu1 %v7017_v39  ;;  %5405 = vmatprep.subr.mxu0 %v7952_v6 }
 0x9fd   :  { %3126 = vmatpush1.msra.mxu1 %v7020_v10  ;;  %5406 = vmatpush3.msra.mxu0 %v7086_v34 }
 0x9fe   :  { %3127 = vmatprep.subr.mxu1 %v7023_v0  ;;  %5407 = vmatprep.subr.mxu0 %v7952_v6 }
 0x9ff   :  { %3128 = vmatpush1.msra.mxu1 %v8033_v28  ;;  %5408 = vmatpush3.msra.mxu0 %v8034_v41 }
 0xa00   :  { %3129 = vmatprep.subr.mxu1 %v8035_v38  ;;  %5409 = vmatprep.subr.mxu0 %v7952_v6 }
 0xa01   :  { %3130 = vmatpush1.msra.mxu1 %v8036_v46  ;;  %3163 = vmatprep.mubr.f32.mxu1 %v7952_v6 }
 0xa02   :  { %5410 = vmatpush3.msra.mxu0 %v8037_v48  ;;  %5411 = vmatprep.mubr.msk.f32.mxu0 %vm5954_vm2, %v7952_v6 }
 0xa03   :  { %3314 = vmatprep.subr.mxu1 %v8038_v44  ;;  %5414 = vmatprep.subr.mxu0 %v7952_v6 }
 0xaa2   :  { %v2950_v21 = vpop.f32.mrf.mxu1  ;;  %v3021_v13 = vpop.f32.mrf.mxu0 }
 0xaa3   :  { %v3025_v62 = vadd.f32 %v2950_v21, %v2448_v40  ;;  %v3039_v9 = vadd.f32 %v7240_v54, %v3021_v13  ;;  %v8042_v40 = vld [vmem:[#allocation31_spill] sm:$0xff]  ;;  %v7456_v13 = vld [vmem:[#allocation7 + $0x270] sm:$0xff] }
 0xaa4   :  { %v5378_v4 = vpop.f32.mrf.mxu0  ;;  %v2952_v42 = vpop.f32.mrf.mxu1  ;;  %v2560_v21 = vadd.f32 %v8042_v40, %v7245_v8  ;;  %v7468_v40 = vld [vmem:[#allocation7 + $0x268] sm:$0xff] }
 0xaa5   :  { %v4559_v25 = vmul.f32 -1.442695, %v3025_v62  ;;  %v3032_v48 = vadd.f32 %v2952_v42, %v2450_v50  ;;  %v7458_v50 = vld [vmem:[#allocation7 + $0x280] sm:$0xff] }
 0xaa7   :  { %5750 = vpow2.f32 %v4559_v25  ;;  %v4560_v46 = vmul.f32 -1.442695, %v3032_v48 }
 0xaa9   :  { %5752 = vpow2.f32 %v4560_v46 }
 0xab4   :  { %v5751_v38 = vpop.eup %5750 }
 0xab5   :  { %v3029_v44 = vadd.f32 1.0, %v5751_v38 }
 0xab6   :  { %v5753_v41 = vpop.eup %5752 }
 0xab7   :  { %5754 = vrcp.f32 %v3029_v44  ;;  %v3036_v28 = vadd.f32 1.0, %v5753_v41  ;;  %v7450_v41 = vld [vmem:[#allocation7 + $0x288] sm:$0xff]  ;;  %v7462_v44 = vld [vmem:[#allocation7 + $0x260] sm:$0xff] }
 0xab9   :  { %5756 = vrcp.f32 %v3036_v28  ;;  %v7447_v28 = vld [vmem:[#allocation7 + $0x290] sm:$0xff] }
 0xac4   :  { %v5755_v19 = vpop.eup %5754 }
 0xac5   :  { %v3040_v62 = vmul.f32 %v5755_v19, %v3039_v9  ;;  %v7453_v19 = vld [vmem:[#allocation7 + $0x278] sm:$0xff] }
 0xac6   :  { %v5757_v52 = vpop.eup %5756  ;;  %v7466_v9 = vld [vmem:[#allocation7 + $0x258] sm:$0xff] }
 0xac7   :  { %v3041_v4 = vadd.f32 %v3040_v62, %v2560_v21  ;;  %v3043_v25 = vsub.f32 1.0, %v5757_v52  ;;  %v3045_v46 = vmul.f32 %v5757_v52, %v7249_v36  ;;  %v7470_v21 = vld [vmem:[#allocation7 + $0x248] sm:$0xff]  ;;  %v7474_v62 = vld [vmem:[#allocation7 + $0x240] sm:$0xff]  ;;  %v7478_v52 = vld [vmem:[#allocation7 + $0x230] sm:$0xff] }
 0xac9   :  { %5758 = vtanh.f32 %v3041_v4  ;;  %v7476_v4 = vld [vmem:[#allocation7 + $0x250] sm:$0xff] }
 0xad6   :  { %v5759_v42 = vpop.eup %5758 }
 0xad7   :  { %v3044_v48 = vmul.f32 %v5759_v42, %v3043_v25  ;;  %v7482_v25 = vld [vmem:[#allocation7 + $0x228] sm:$0xff]  ;;  %v7484_v42 = vld [vmem:[#allocation7 + $0x238] sm:$0xff] }
 0xad9   :  { %v7328_v38 = vadd.f32 %v3045_v46, %v3044_v48  ;;  %v7488_v48 = vld [vmem:[#allocation7 + $0x218] sm:$0xff]  ;;  %v7492_v46 = vld [vmem:[#allocation7 + $0x210] sm:$0xff] }
 0xadb   :  { %8043 = vst [vmem:[#allocation25_spill] sm:$0xff] %v7328_v38  ;;  %3164 = vmatmul.mubr.f32.vlgmr.msra.gmra.mxu1 %v7328_v38  ;;  %5412 = vmatmul.mubr.f32.vlgmr.msra.gmra.mxu0 %v7328_v38 }
 0xadc   :  { %3315 = vmatpush1.msra.mxu1 %v6942_v11  ;;  %5415 = vmatpush3.msra.mxu0 %v7033_v51  ;;  %v8044_v11 = vld [vmem:[#allocation26_spill] sm:$0xff] }
 0xadd   :  { %3316 = vmatprep.subr.mxu1 %v6945_v59  ;;  %5416 = vmatprep.subr.mxu0 %v7952_v6  ;;  %v8045_v59 = vld [vmem:[#allocation20_spill] sm:$0xff] }
 0xade   :  { %3317 = vmatpush1.msra.mxu1 %v6948_v49  ;;  %5417 = vmatpush3.msra.mxu0 %v7037_v53  ;;  %v8046_v49 = vld [vmem:[#allocation27_spill] sm:$0xff] }
 0xadf   :  { %3318 = vmatprep.subr.mxu1 %v6951_v60  ;;  %5418 = vmatprep.subr.mxu0 %v7952_v6  ;;  %v8047_v60 = vld [vmem:[#allocation28_spill] sm:$0xff] }
 0xae0   :  { %3319 = vmatpush1.msra.mxu1 %v6954_v26  ;;  %5419 = vmatpush3.msra.mxu0 %v7041_v55  ;;  %v8048_v26 = vld [vmem:[#allocation29_spill] sm:$0xff] }
 0xae1   :  { %3320 = vmatprep.subr.mxu1 %v6957_v58  ;;  %5420 = vmatprep.subr.mxu0 %v7952_v6  ;;  %v8049_v58 = vld [vmem:[#allocation39_spill] sm:$0xff] }
 0xae2   :  { %3321 = vmatpush1.msra.mxu1 %v6960_v17  ;;  %5421 = vmatpush3.msra.mxu0 %v7046_v57  ;;  %v8050_v17 = vld [vmem:[#allocation23_spill] sm:$0xff] }
 0xae3   :  { %3322 = vmatprep.subr.mxu1 %v6963_v2  ;;  %5422 = vmatprep.subr.mxu0 %v7952_v6  ;;  %v2454_v2 = vadd.f32 %v8050_v17, %v8049_v58  ;;  %v7512_v17 = vld [vmem:[#allocation7 + $0x1e0] sm:$0xff] }
 0xae4   :  { %3323 = vmatpush1.msra.mxu1 %v6966_v18  ;;  %5423 = vmatpush3.msra.mxu0 %v7050_v12 }
 0xae5   :  { %3324 = vmatprep.subr.mxu1 %v6969_v23  ;;  %5424 = vmatprep.subr.mxu0 %v7952_v6 }
 0xae6   :  { %3325 = vmatpush1.msra.mxu1 %v6972_v15  ;;  %5425 = vmatpush3.msra.mxu0 %v7054_v14 }
 0xae7   :  { %3326 = vmatprep.subr.mxu1 %v6975_v1  ;;  %5426 = vmatprep.subr.mxu0 %v7952_v6 }
 0xae8   :  { %3327 = vmatpush1.msra.mxu1 %v6978_v7  ;;  %5427 = vmatpush3.msra.mxu0 %v7058_v43 }
 0xae9   :  { %3328 = vmatprep.subr.mxu1 %v6981_v3  ;;  %5428 = vmatprep.subr.mxu0 %v7952_v6 }
 0xaea   :  { %3329 = vmatpush1.msra.mxu1 %v6984_v5  ;;  %5429 = vmatpush3.msra.mxu0 %v7062_v47  ;;  %v8051_v5 = vld [vmem:[#allocation18_spill] sm:$0xff] }
 0xaeb   :  { %3330 = vmatprep.subr.mxu1 %v6987_v16  ;;  %5430 = vmatprep.subr.mxu0 %v7952_v6  ;;  %v2456_v16 = vadd.f32 %v8051_v5, %v7234_v30  ;;  %v7538_v5 = vld [vmem:[#allocation7 + $0x1a0] sm:$0xff] }
 0xaec   :  { %3331 = vmatpush1.msra.mxu1 %v6990_v20  ;;  %5431 = vmatpush3.msra.mxu0 %v7066_v61 }
 0xaed   :  { %3332 = vmatprep.subr.mxu1 %v6993_v22  ;;  %5432 = vmatprep.subr.mxu0 %v7952_v6 }
 0xaee   :  { %3333 = vmatpush1.msra.mxu1 %v6996_v24  ;;  %5433 = vmatpush3.msra.mxu0 %v7070_v63 }
 0xaef   :  { %3334 = vmatprep.subr.mxu1 %v6999_v27  ;;  %5434 = vmatprep.subr.mxu0 %v7952_v6 }
 0xaf0   :  { %3335 = vmatpush1.msra.mxu1 %v7002_v29  ;;  %5435 = vmatpush3.msra.mxu0 %v7074_v45 }
 0xaf1   :  { %3336 = vmatprep.subr.mxu1 %v7005_v31  ;;  %5436 = vmatprep.subr.mxu0 %v7952_v6 }
 0xaf2   :  { %3337 = vmatpush1.msra.mxu1 %v7008_v33  ;;  %5437 = vmatpush3.msra.mxu0 %v7078_v56  ;;  %v7426_v56 = vld [vmem:[#allocation7 + $0x2e8] sm:$0xff] }
 0xaf3   :  { %3338 = vmatprep.subr.mxu1 %v7011_v35  ;;  %5438 = vmatprep.subr.mxu0 %v7952_v6 }
 0xaf4   :  { %3339 = vmatpush1.msra.mxu1 %v7014_v37  ;;  %5439 = vmatpush3.msra.mxu0 %v7082_v32  ;;  %v8052_v37 = vld [vmem:[#allocation40_spill] sm:$0xff] }
 0xaf5   :  { %3340 = vmatprep.subr.mxu1 %v7017_v39  ;;  %5440 = vmatprep.subr.mxu0 %v7952_v6  ;;  %v2565_v39 = vadd.f32 %v8052_v37, %v7245_v8  ;;  %v7441_v32 = vld [vmem:[#allocation7 + $0x2a8] sm:$0xff] }
 0xaf6   :  { %3341 = vmatpush1.msra.mxu1 %v7020_v10  ;;  %5441 = vmatpush3.msra.mxu0 %v7086_v34  ;;  %v7444_v34 = vld [vmem:[#allocation7 + $0x2a0] sm:$0xff] }
 0xaf7   :  { %3342 = vmatprep.subr.mxu1 %v7023_v0  ;;  %5442 = vmatprep.subr.mxu0 %v7952_v6 }
 0xaf8   :  { %3343 = vmatpush1.msra.mxu1 %v8044_v11  ;;  %5443 = vmatpush3.msra.mxu0 %v8045_v59  ;;  %v7494_v11 = vld [vmem:[#allocation7 + $0x220] sm:$0xff] }
 0xaf9   :  { %3344 = vmatprep.subr.mxu1 %v8046_v49  ;;  %5444 = vmatprep.subr.mxu0 %v7952_v6  ;;  %v7498_v59 = vld [vmem:[#allocation7 + $0x200] sm:$0xff]  ;;  %v7502_v49 = vld [vmem:[#allocation7 + $0x1f8] sm:$0xff] }
 0xafa   :  { %3345 = vmatpush1.msra.mxu1 %v8047_v60  ;;  %3378 = vmatprep.mubr.f32.mxu1 %v7952_v6  ;;  %v7504_v60 = vld [vmem:[#allocation7 + $0x208] sm:$0xff] }
 0xafb   :  { %5445 = vmatpush3.msra.mxu0 %v8048_v26  ;;  %5446 = vmatprep.mubr.msk.f32.mxu0 %vm5954_vm2, %v7952_v6  ;;  %v7508_v26 = vld [vmem:[#allocation7 + $0x1e8] sm:$0xff] }
 0xafc   :  { %5449 = vmatprep.subr.mxu0 %v7952_v6 }
 0xb9b   :  { %v3165_v18 = vpop.f32.mrf.mxu1  ;;  %v3236_v23 = vpop.f32.mrf.mxu0 }
 0xb9c   :  { %v3240_v15 = vadd.f32 %v3165_v18, %v2454_v2  ;;  %v3254_v33 = vadd.f32 %v7240_v54, %v3236_v23  ;;  %v7514_v2 = vld [vmem:[#allocation7 + $0x1f0] sm:$0xff]  ;;  %v7522_v23 = vld [vmem:[#allocation7 + $0x1c8] sm:$0xff] }
 0xb9d   :  { %v5413_v1 = vpop.f32.mrf.mxu0  ;;  %v3167_v3 = vpop.f32.mrf.mxu1  ;;  %v7518_v18 = vld [vmem:[#allocation7 + $0x1d0] sm:$0xff] }
 0xb9e   :  { %v4561_v7 = vmul.f32 -1.442695, %v3240_v15  ;;  %v3247_v20 = vadd.f32 %v3167_v3, %v2456_v16  ;;  %v7524_v15 = vld [vmem:[#allocation7 + $0x1d8] sm:$0xff]  ;;  %v7534_v3 = vld [vmem:[#allocation7 + $0x1c0] sm:$0xff] }
 0xb9f   :  { %v7528_v1 = vld [vmem:[#allocation7 + $0x1b8] sm:$0xff] }
 0xba0   :  { %5760 = vpow2.f32 %v4561_v7  ;;  %v4562_v22 = vmul.f32 -1.442695, %v3247_v20  ;;  %v7532_v7 = vld [vmem:[#allocation7 + $0x1b0] sm:$0xff]  ;;  %v7542_v16 = vld [vmem:[#allocation7 + $0x198] sm:$0xff]  ;;  %v7544_v20 = vld [vmem:[#allocation7 + $0x1a8] sm:$0xff] }
 0xba1   :  { %8055 = vst [vmem:[#allocation31_spill] sm:$0xff] %v7542_v16  ;;  %8056 = vst [vmem:[#allocation26_spill] sm:$0xff] %v7544_v20 }
 0xba2   :  { %5762 = vpow2.f32 %v4562_v22  ;;  %v7548_v22 = vld [vmem:[#allocation7 + $0x188] sm:$0xff] }
 0xba3   :  { %8057 = vst [vmem:[#allocation20_spill] sm:$0xff] %v7548_v22 }
 0xbad   :  { %v5761_v24 = vpop.eup %5760 }
 0xbae   :  { %v3244_v27 = vadd.f32 1.0, %v5761_v24  ;;  %v7552_v24 = vld [vmem:[#allocation7 + $0x180] sm:$0xff] }
 0xbaf   :  { %v5763_v29 = vpop.eup %5762  ;;  %8058 = vst [vmem:[#allocation27_spill] sm:$0xff] %v7552_v24 }
 0xbb0   :  { %5764 = vrcp.f32 %v3244_v27  ;;  %v3251_v31 = vadd.f32 1.0, %v5763_v29  ;;  %v7554_v27 = vld [vmem:[#allocation7 + $0x190] sm:$0xff]  ;;  %v8060_v29 = vld [vmem:[#allocation19_spill] sm:$0xff] }
 0xbb1   :  { %8059 = vst [vmem:[#allocation28_spill] sm:$0xff] %v7554_v27 }
 0xbb2   :  { %5766 = vrcp.f32 %v3251_v31  ;;  %v2460_v31 = vadd.f32 %v8060_v29, %v8049_v58 }
 0xbbd   :  { %v5765_v35 = vpop.eup %5764 }
 0xbbe   :  { %v3255_v10 = vmul.f32 %v5765_v35, %v3254_v33 }
 0xbbf   :  { %v5767_v14 = vpop.eup %5766 }
 0xbc0   :  { %v3256_v0 = vadd.f32 %v3255_v10, %v2565_v39  ;;  %v3258_v43 = vsub.f32 1.0, %v5767_v14  ;;  %v3260_v63 = vmul.f32 %v5767_v14, %v7328_v38  ;;  %v8061_v14 = vld [vmem:[#allocation24_spill] sm:$0xff] }
 0xbc2   :  { %5768 = vtanh.f32 %v3256_v0 }
 0xbcf   :  { %v5769_v47 = vpop.eup %5768 }
 0xbd0   :  { %v3259_v61 = vmul.f32 %v5769_v47, %v3258_v43  ;;  %v2462_v43 = vadd.f32 %v8061_v14, %v7234_v30 }
 0xbd2   :  { %v7406_v45 = vadd.f32 %v3260_v63, %v3259_v61 }
 0xbd4   :  { %8053 = vst [vmem:[#allocation30_spill] sm:$0xff] %v7406_v45  ;;  %3379 = vmatmul.mubr.f32.vlgmr.msra.gmra.mxu1 %v7406_v45  ;;  %5447 = vmatmul.mubr.f32.vlgmr.msra.gmra.mxu0 %v7406_v45 }
 0xbd5   :  { %5450 = vmatpush3.msra.mxu0 %v7033_v51  ;;  %3593 = vmatprep.mubr.f32.mxu1 %v7952_v6  ;;  %v7423_v51 = vld [vmem:[#allocation7 + $0x2f0] sm:$0xff] }
 0xbd6   :  { %5451 = vmatprep.subr.mxu0 %v7952_v6  ;;  %5481 = vmatprep.mubr.msk.f32.mxu0 %vm5954_vm2, %v7952_v6  ;;  %8054 = vst [vmem:[#allocation38_spill] sm:$0xff] %v7423_v51 }
 0xbd7   :  { %5452 = vmatpush3.msra.mxu0 %v7037_v53  ;;  %3529 = vmatprep.subr.mxu1 %v7423_v51  ;;  %v7429_v53 = vld [vmem:[#allocation7 + $0x2d8] sm:$0xff] }
 0xbd8   :  { %5453 = vmatprep.subr.mxu0 %v7952_v6  ;;  %3530 = vmatpush1.msra.mxu1 %v7426_v56 }
 0xbd9   :  { %5454 = vmatpush3.msra.mxu0 %v7041_v55  ;;  %3531 = vmatprep.subr.mxu1 %v7429_v53  ;;  %v7432_v55 = vld [vmem:[#allocation7 + $0x2d0] sm:$0xff] }
 0xbda   :  { %5455 = vmatprep.subr.mxu0 %v7952_v6  ;;  %3532 = vmatpush1.msra.mxu1 %v7432_v55 }
 0xbdb   :  { %5456 = vmatpush3.msra.mxu0 %v7046_v57  ;;  %v7435_v57 = vld [vmem:[#allocation7 + $0x2c0] sm:$0xff] }
 0xbdc   :  { %5457 = vmatprep.subr.mxu0 %v7952_v6  ;;  %3533 = vmatprep.subr.mxu1 %v7435_v57 }
 0xbdd   :  { %5458 = vmatpush3.msra.mxu0 %v7050_v12  ;;  %v7438_v12 = vld [vmem:[#allocation7 + $0x2b8] sm:$0xff] }
 0xbde   :  { %5459 = vmatprep.subr.mxu0 %v7952_v6  ;;  %3534 = vmatpush1.msra.mxu1 %v7438_v12 }
 0xbdf   :  { %3535 = vmatprep.subr.mxu1 %v7441_v32  ;;  %5460 = vmatpush3.msra.mxu0 %v7458_v50 }
 0xbe0   :  { %3536 = vmatpush1.msra.mxu1 %v7444_v34  ;;  %5461 = vmatprep.subr.mxu0 %v7952_v6 }
 0xbe1   :  { %3537 = vmatprep.subr.mxu1 %v7447_v28  ;;  %5462 = vmatpush3.msra.mxu0 %v7468_v40 }
 0xbe2   :  { %3538 = vmatpush1.msra.mxu1 %v7450_v41  ;;  %5463 = vmatprep.subr.mxu0 %v7952_v6 }
 0xbe3   :  { %3539 = vmatprep.subr.mxu1 %v7453_v19  ;;  %5464 = vmatpush3.msra.mxu0 %v7476_v4 }
 0xbe4   :  { %3540 = vmatpush1.msra.mxu1 %v7456_v13  ;;  %5465 = vmatprep.subr.mxu0 %v7952_v6 }
 0xbe5   :  { %3541 = vmatprep.subr.mxu1 %v7462_v44  ;;  %5466 = vmatpush3.msra.mxu0 %v7484_v42 }
 0xbe6   :  { %3542 = vmatpush1.msra.mxu1 %v7466_v9  ;;  %5467 = vmatprep.subr.mxu0 %v7952_v6 }
 0xbe7   :  { %3543 = vmatprep.subr.mxu1 %v7470_v21  ;;  %5468 = vmatpush3.msra.mxu0 %v7494_v11 }
 0xbe8   :  { %3544 = vmatpush1.msra.mxu1 %v7474_v62  ;;  %5469 = vmatprep.subr.mxu0 %v7952_v6 }
 0xbe9   :  { %3545 = vmatprep.subr.mxu1 %v7478_v52  ;;  %5470 = vmatpush3.msra.mxu0 %v7504_v60 }
 0xbea   :  { %3546 = vmatpush1.msra.mxu1 %v7482_v25  ;;  %5471 = vmatprep.subr.mxu0 %v7952_v6 }
 0xbeb   :  { %3547 = vmatprep.subr.mxu1 %v7488_v48  ;;  %5472 = vmatpush3.msra.mxu0 %v7514_v2 }
 0xbec   :  { %3548 = vmatpush1.msra.mxu1 %v7492_v46  ;;  %5473 = vmatprep.subr.mxu0 %v7952_v6 }
 0xbed   :  { %3549 = vmatprep.subr.mxu1 %v7498_v59  ;;  %5474 = vmatpush3.msra.mxu0 %v7524_v15 }
 0xbee   :  { %3550 = vmatpush1.msra.mxu1 %v7502_v49  ;;  %5475 = vmatprep.subr.mxu0 %v7952_v6 }
 0xbef   :  { %3551 = vmatprep.subr.mxu1 %v7508_v26  ;;  %5476 = vmatpush3.msra.mxu0 %v7534_v3 }
 0xbf0   :  { %3552 = vmatpush1.msra.mxu1 %v7512_v17  ;;  %5477 = vmatprep.subr.mxu0 %v7952_v6 }
 0xbf1   :  { %3553 = vmatprep.subr.mxu1 %v7518_v18  ;;  %5478 = vmatpush3.msra.mxu0 %v7544_v20 }
 0xbf2   :  { %3554 = vmatpush1.msra.mxu1 %v7522_v23  ;;  %5479 = vmatprep.subr.mxu0 %v7952_v6 }
 0xbf3   :  { %3555 = vmatprep.subr.mxu1 %v7528_v1  ;;  %5480 = vmatpush3.msra.mxu0 %v7554_v27 }
 0xbf4   :  { %3556 = vmatpush1.msra.mxu1 %v7532_v7  ;;  %5484 = vmatprep.subr.mxu0 %v7952_v6 }
 0xbf5   :  { %3557 = vmatprep.subr.mxu1 %v7538_v5 }
 0xbf6   :  { %3558 = vmatpush1.msra.mxu1 %v7542_v16 }
 0xbf7   :  { %3559 = vmatprep.subr.mxu1 %v7548_v22 }
 0xbf8   :  { %3560 = vmatpush1.msra.mxu1 %v7552_v24 }
 0xbf9   :  { %3744 = vmatprep.subr.mxu1 %v7423_v51 }
 0xc94   :  { %v3380_v33 = vpop.f32.mrf.mxu1  ;;  %v3451_v35 = vpop.f32.mrf.mxu0 }
 0xc95   :  { %v3455_v37 = vadd.f32 %v3380_v33, %v2460_v31  ;;  %v3469_v29 = vadd.f32 %v7240_v54, %v3451_v35  ;;  %v8062_v31 = vld [vmem:[#allocation33_spill] sm:$0xff]  ;;  %v7627_v35 = vld [vmem:[#allocation7 + $0x298] sm:$0xff] }
 0xc96   :  { %v5448_v39 = vpop.f32.mrf.mxu0  ;;  %v3382_v0 = vpop.f32.mrf.mxu1  ;;  %v2570_v33 = vadd.f32 %v8062_v31, %v7245_v8  ;;  %v8066_v31 = vld [vmem:[#allocation32_spill] sm:$0xff] }
 0xc97   :  { %v4563_v10 = vmul.f32 -1.442695, %v3455_v37  ;;  %v3462_v47 = vadd.f32 %v3382_v0, %v2462_v43 }
 0xc99   :  { %5770 = vpow2.f32 %v4563_v10  ;;  %v4564_v61 = vmul.f32 -1.442695, %v3462_v47 }
 0xc9b   :  { %5772 = vpow2.f32 %v4564_v61 }
 0xca6   :  { %v5771_v63 = vpop.eup %5770 }
 0xca7   :  { %v3459_v38 = vadd.f32 1.0, %v5771_v63  ;;  %v8064_v63 = vld [vmem:[#allocation28_spill] sm:$0xff] }
 0xca8   :  { %v5773_v36 = vpop.eup %5772 }
 0xca9   :  { %5774 = vrcp.f32 %v3459_v38  ;;  %v3466_v27 = vadd.f32 1.0, %v5773_v36  ;;  %v7611_v36 = vld [vmem:[#allocation7 + $0x2f8] sm:$0xff]  ;;  %v7615_v38 = vld [vmem:[#allocation7 + $0x2e0] sm:$0xff] }
 0xcab   :  { %5776 = vrcp.f32 %v3466_v27  ;;  %v7623_v27 = vld [vmem:[#allocation7 + $0x2b0] sm:$0xff] }
 0xcb6   :  { %v5775_v58 = vpop.eup %5774 }
 0xcb7   :  { %v3470_v37 = vmul.f32 %v5775_v58, %v3469_v29  ;;  %v7619_v58 = vld [vmem:[#allocation7 + $0x2c8] sm:$0xff]  ;;  %v8065_v29 = vld [vmem:[#allocation39_spill] sm:$0xff] }
 0xcb8   :  { %v5777_v14 = vpop.eup %5776 }
 0xcb9   :  { %v3471_v39 = vadd.f32 %v3470_v37, %v2570_v33  ;;  %v3473_v10 = vsub.f32 1.0, %v5777_v14  ;;  %v3475_v47 = vmul.f32 %v5777_v14, %v7406_v45  ;;  %v2466_v33 = vadd.f32 %v8066_v31, %v8065_v29 }
 0xcbb   :  { %5778 = vtanh.f32 %v3471_v39 }
 0xcc8   :  { %v5779_v0 = vpop.eup %5778 }
 0xcc9   :  { %v3474_v43 = vmul.f32 %v5779_v0, %v3473_v10 }
 0xccb   :  { %v7572_v61 = vadd.f32 %v3475_v47, %v3474_v43  ;;  %v8067_v47 = vld [vmem:[#allocation37_spill] sm:$0xff] }
 0xccc   :  { %v2468_v45 = vadd.f32 %v8067_v47, %v7234_v30 }
 0xccd   :  { %8063 = vst [vmem:[#allocation29_spill] sm:$0xff] %v7572_v61  ;;  %3594 = vmatmul.mubr.f32.vlgmr.msra.gmra.mxu1 %v7572_v61  ;;  %5482 = vmatmul.mubr.f32.vlgmr.msra.gmra.mxu0 %v7572_v61 }
 0xcce   :  { %3745 = vmatpush1.msra.mxu1 %v7426_v56  ;;  %3808 = vmatprep.mubr.f32.mxu1 %v7952_v6 }
 0xccf   :  { %3746 = vmatprep.subr.mxu1 %v7429_v53  ;;  %5516 = vmatprep.mubr.msk.f32.mxu0 %vm5954_vm2, %v7952_v6 }
 0xcd0   :  { %3747 = vmatpush1.msra.mxu1 %v7432_v55  ;;  %5485 = vmatpush3.msra.mxu0 %v7611_v36 }
 0xcd1   :  { %3748 = vmatprep.subr.mxu1 %v7435_v57  ;;  %5486 = vmatprep.subr.mxu0 %v7952_v6 }
 0xcd2   :  { %3749 = vmatpush1.msra.mxu1 %v7438_v12  ;;  %5487 = vmatpush3.msra.mxu0 %v7615_v38 }
 0xcd3   :  { %3750 = vmatprep.subr.mxu1 %v7441_v32  ;;  %5488 = vmatprep.subr.mxu0 %v7952_v6 }
 0xcd4   :  { %3751 = vmatpush1.msra.mxu1 %v7444_v34  ;;  %5489 = vmatpush3.msra.mxu0 %v7619_v58 }
 0xcd5   :  { %3752 = vmatprep.subr.mxu1 %v7447_v28  ;;  %5490 = vmatprep.subr.mxu0 %v7952_v6 }
 0xcd6   :  { %3753 = vmatpush1.msra.mxu1 %v7450_v41  ;;  %5491 = vmatpush3.msra.mxu0 %v7623_v27 }
 0xcd7   :  { %3754 = vmatprep.subr.mxu1 %v7453_v19  ;;  %5492 = vmatprep.subr.mxu0 %v7952_v6 }
 0xcd8   :  { %3755 = vmatpush1.msra.mxu1 %v7456_v13  ;;  %5493 = vmatpush3.msra.mxu0 %v7627_v35 }
 0xcd9   :  { %3756 = vmatprep.subr.mxu1 %v7462_v44  ;;  %5494 = vmatprep.subr.mxu0 %v7952_v6 }
 0xcda   :  { %3757 = vmatpush1.msra.mxu1 %v7466_v9  ;;  %5495 = vmatpush3.msra.mxu0 %v7458_v50 }
 0xcdb   :  { %3758 = vmatprep.subr.mxu1 %v7470_v21  ;;  %5496 = vmatprep.subr.mxu0 %v7952_v6 }
 0xcdc   :  { %3759 = vmatpush1.msra.mxu1 %v7474_v62  ;;  %5497 = vmatpush3.msra.mxu0 %v7468_v40 }
 0xcdd   :  { %3760 = vmatprep.subr.mxu1 %v7478_v52  ;;  %5498 = vmatprep.subr.mxu0 %v7952_v6 }
 0xcde   :  { %3761 = vmatpush1.msra.mxu1 %v7482_v25  ;;  %5499 = vmatpush3.msra.mxu0 %v7476_v4 }
 0xcdf   :  { %3762 = vmatprep.subr.mxu1 %v7488_v48  ;;  %5500 = vmatprep.subr.mxu0 %v7952_v6 }
 0xce0   :  { %3763 = vmatpush1.msra.mxu1 %v7492_v46  ;;  %5501 = vmatpush3.msra.mxu0 %v7484_v42 }
 0xce1   :  { %3764 = vmatprep.subr.mxu1 %v7498_v59  ;;  %5502 = vmatprep.subr.mxu0 %v7952_v6 }
 0xce2   :  { %3765 = vmatpush1.msra.mxu1 %v7502_v49  ;;  %5503 = vmatpush3.msra.mxu0 %v7494_v11 }
 0xce3   :  { %3766 = vmatprep.subr.mxu1 %v7508_v26  ;;  %5504 = vmatprep.subr.mxu0 %v7952_v6 }
 0xce4   :  { %3767 = vmatpush1.msra.mxu1 %v7512_v17  ;;  %5505 = vmatpush3.msra.mxu0 %v7504_v60 }
 0xce5   :  { %3768 = vmatprep.subr.mxu1 %v7518_v18  ;;  %5506 = vmatprep.subr.mxu0 %v7952_v6 }
 0xce6   :  { %3769 = vmatpush1.msra.mxu1 %v7522_v23  ;;  %5507 = vmatpush3.msra.mxu0 %v7514_v2 }
 0xce7   :  { %3770 = vmatprep.subr.mxu1 %v7528_v1  ;;  %5508 = vmatprep.subr.mxu0 %v7952_v6 }
 0xce8   :  { %3771 = vmatpush1.msra.mxu1 %v7532_v7  ;;  %5509 = vmatpush3.msra.mxu0 %v7524_v15 }
 0xce9   :  { %3772 = vmatprep.subr.mxu1 %v7538_v5  ;;  %5510 = vmatprep.subr.mxu0 %v7952_v6 }
 0xcea   :  { %3773 = vmatpush1.msra.mxu1 %v7542_v16  ;;  %5511 = vmatpush3.msra.mxu0 %v7534_v3 }
 0xceb   :  { %3774 = vmatprep.subr.mxu1 %v7548_v22  ;;  %5512 = vmatprep.subr.mxu0 %v7952_v6 }
 0xcec   :  { %3775 = vmatpush1.msra.mxu1 %v7552_v24  ;;  %5513 = vmatpush3.msra.mxu0 %v7544_v20 }
 0xced   :  { %3959 = vmatprep.subr.mxu1 %v7423_v51  ;;  %5514 = vmatprep.subr.mxu0 %v7952_v6 }
 0xcee   :  { %5515 = vmatpush3.msra.mxu0 %v8064_v63 }
 0xcef   :  { %5519 = vmatprep.subr.mxu0 %v7952_v6 }
 0xd8d   :  { %v3595_v37 = vpop.f32.mrf.mxu1  ;;  %v3666_v39 = vpop.f32.mrf.mxu0 }
 0xd8e   :  { %v3670_v14 = vadd.f32 %v3595_v37, %v2466_v33  ;;  %v3684_v31 = vadd.f32 %v7240_v54, %v3666_v39  ;;  %v8068_v33 = vld [vmem:[#allocation35_spill] sm:$0xff]  ;;  %v8074_v39 = vld [vmem:[#allocation38_spill] sm:$0xff] }
 0xd8f   :  { %v5483_v10 = vpop.f32.mrf.mxu0  ;;  %v3597_v43 = vpop.f32.mrf.mxu1  ;;  %v2575_v37 = vadd.f32 %v8068_v33, %v7245_v8  ;;  %v8069_v54 = vld [vmem:[#allocation31_spill] sm:$0xff] }
 0xd90   :  { %v4565_v0 = vmul.f32 -1.442695, %v3670_v14  ;;  %v3677_v51 = vadd.f32 %v3597_v43, %v2468_v45  ;;  %v8075_v43 = vld [vmem:[#allocation39_spill] sm:$0xff] }
 0xd92   :  { %5780 = vpow2.f32 %v4565_v0  ;;  %v4566_v24 = vmul.f32 -1.442695, %v3677_v51 }
 0xd94   :  { %5782 = vpow2.f32 %v4566_v24 }
 0xd9f   :  { %v5781_v22 = vpop.eup %5780 }
 0xda0   :  { %v3674_v63 = vadd.f32 1.0, %v5781_v22 }
 0xda1   :  { %v5783_v20 = vpop.eup %5782 }
 0xda2   :  { %5784 = vrcp.f32 %v3674_v63  ;;  %v3681_v16 = vadd.f32 1.0, %v5783_v20  ;;  %v8071_v20 = vld [vmem:[#allocation20_spill] sm:$0xff]  ;;  %v8072_v63 = vld [vmem:[#allocation27_spill] sm:$0xff] }
 0xda4   :  { %5786 = vrcp.f32 %v3681_v16  ;;  %v8070_v16 = vld [vmem:[#allocation26_spill] sm:$0xff] }
 0xdaf   :  { %v5785_v29 = vpop.eup %5784 }
 0xdb0   :  { %v3685_v14 = vmul.f32 %v5785_v29, %v3684_v31  ;;  %v8073_v29 = vld [vmem:[#allocation28_spill] sm:$0xff]  ;;  %v8076_v31 = vld [vmem:[#allocation34_spill] sm:$0xff] }
 0xdb1   :  { %v5787_v47 = vpop.eup %5786  ;;  %v2472_v33 = vadd.f32 %v8076_v31, %v8075_v43  ;;  %v7739_v31 = vld [vmem:[%s7863_s7 + $0x1] ss:$0 sm:$0xff] }
 0xdb2   :  { %v3686_v10 = vadd.f32 %v3685_v14, %v2575_v37  ;;  %v3688_v0 = vsub.f32 1.0, %v5787_v47  ;;  %v3690_v24 = vmul.f32 %v5787_v47, %v7572_v61 }
 0xdb4   :  { %5788 = vtanh.f32 %v3686_v10 }
 0xdc1   :  { %v5789_v45 = vpop.eup %5788 }
 0xdc2   :  { %v3689_v51 = vmul.f32 %v5789_v45, %v3688_v0 }
 0xdc4   :  { %v7661_v22 = vadd.f32 %v3690_v24, %v3689_v51  ;;  %v8077_v51 = vld [vmem:[#allocation41_spill] sm:$0xff] }
 0xdc5   :  { %v2474_v24 = vadd.f32 %v8077_v51, %v7234_v30 }
 0xdc6   :  { %3809 = vmatmul.mubr.f32.vlgmr.msra.gmra.mxu1 %v7661_v22  ;;  %5517 = vmatmul.mubr.f32.vlgmr.msra.gmra.mxu0 %v7661_v22 }
 0xdc7   :  { %3960 = vmatpush1.msra.mxu1 %v7426_v56  ;;  %5520 = vmatpush3.msra.mxu0 %v7611_v36 }
 0xdc8   :  { %3961 = vmatprep.subr.mxu1 %v7429_v53  ;;  %5521 = vmatprep.subr.mxu0 %v7952_v6 }
 0xdc9   :  { %3962 = vmatpush1.msra.mxu1 %v7432_v55  ;;  %5522 = vmatpush3.msra.mxu0 %v7615_v38 }
 0xdca   :  { %3963 = vmatprep.subr.mxu1 %v7435_v57  ;;  %5523 = vmatprep.subr.mxu0 %v7952_v6 }
 0xdcb   :  { %3964 = vmatpush1.msra.mxu1 %v7438_v12  ;;  %5524 = vmatpush3.msra.mxu0 %v7619_v58 }
 0xdcc   :  { %3965 = vmatprep.subr.mxu1 %v7441_v32  ;;  %5525 = vmatprep.subr.mxu0 %v7952_v6 }
 0xdcd   :  { %3966 = vmatpush1.msra.mxu1 %v7444_v34  ;;  %5526 = vmatpush3.msra.mxu0 %v7623_v27 }
 0xdce   :  { %3967 = vmatprep.subr.mxu1 %v7447_v28  ;;  %5527 = vmatprep.subr.mxu0 %v7952_v6 }
 0xdcf   :  { %3968 = vmatpush1.msra.mxu1 %v7450_v41  ;;  %5528 = vmatpush3.msra.mxu0 %v7627_v35 }
 0xdd0   :  { %3969 = vmatprep.subr.mxu1 %v7453_v19  ;;  %5529 = vmatprep.subr.mxu0 %v7952_v6 }
 0xdd1   :  { %3970 = vmatpush1.msra.mxu1 %v7456_v13  ;;  %5530 = vmatpush3.msra.mxu0 %v7458_v50 }
 0xdd2   :  { %3971 = vmatprep.subr.mxu1 %v7462_v44  ;;  %5531 = vmatprep.subr.mxu0 %v7952_v6 }
 0xdd3   :  { %3972 = vmatpush1.msra.mxu1 %v7466_v9  ;;  %5532 = vmatpush3.msra.mxu0 %v7468_v40 }
 0xdd4   :  { %3973 = vmatprep.subr.mxu1 %v7470_v21  ;;  %5533 = vmatprep.subr.mxu0 %v7952_v6 }
 0xdd5   :  { %3974 = vmatpush1.msra.mxu1 %v7474_v62  ;;  %5534 = vmatpush3.msra.mxu0 %v7476_v4 }
 0xdd6   :  { %3975 = vmatprep.subr.mxu1 %v7478_v52  ;;  %5535 = vmatprep.subr.mxu0 %v7952_v6 }
 0xdd7   :  { %3976 = vmatpush1.msra.mxu1 %v7482_v25  ;;  %5536 = vmatpush3.msra.mxu0 %v7484_v42 }
 0xdd8   :  { %3977 = vmatprep.subr.mxu1 %v7488_v48  ;;  %5537 = vmatprep.subr.mxu0 %v7952_v6 }
 0xdd9   :  { %3978 = vmatpush1.msra.mxu1 %v7492_v46  ;;  %5538 = vmatpush3.msra.mxu0 %v7494_v11 }
 0xdda   :  { %3979 = vmatprep.subr.mxu1 %v7498_v59  ;;  %5539 = vmatprep.subr.mxu0 %v7952_v6 }
 0xddb   :  { %3980 = vmatpush1.msra.mxu1 %v7502_v49  ;;  %5540 = vmatpush3.msra.mxu0 %v7504_v60 }
 0xddc   :  { %3981 = vmatprep.subr.mxu1 %v7508_v26  ;;  %5541 = vmatprep.subr.mxu0 %v7952_v6 }
 0xddd   :  { %3982 = vmatpush1.msra.mxu1 %v7512_v17  ;;  %5542 = vmatpush3.msra.mxu0 %v7514_v2 }
 0xdde   :  { %3983 = vmatprep.subr.mxu1 %v7518_v18  ;;  %5543 = vmatprep.subr.mxu0 %v7952_v6 }
 0xddf   :  { %3984 = vmatpush1.msra.mxu1 %v7522_v23  ;;  %5544 = vmatpush3.msra.mxu0 %v7524_v15 }
 0xde0   :  { %3985 = vmatprep.subr.mxu1 %v7528_v1  ;;  %5545 = vmatprep.subr.mxu0 %v7952_v6 }
 0xde1   :  { %3986 = vmatpush1.msra.mxu1 %v7532_v7  ;;  %5546 = vmatpush3.msra.mxu0 %v7534_v3 }
 0xde2   :  { %3987 = vmatprep.subr.mxu1 %v7538_v5  ;;  %5547 = vmatprep.subr.mxu0 %v7952_v6 }
 0xde3   :  { %3988 = vmatpush1.msra.mxu1 %v8069_v54  ;;  %5548 = vmatpush3.msra.mxu0 %v8070_v16 }
 0xde4   :  { %3989 = vmatprep.subr.mxu1 %v8071_v20  ;;  %5549 = vmatprep.subr.mxu0 %v7952_v6 }
 0xde5   :  { %3990 = vmatpush1.msra.mxu1 %v8072_v63  ;;  %4023 = vmatprep.mubr.f32.mxu1 %v7952_v6 }
 0xde6   :  { %5550 = vmatpush3.msra.mxu0 %v8073_v29  ;;  %5551 = vmatprep.mubr.msk.f32.mxu0 %vm5954_vm2, %v7952_v6 }
 0xde7   :  { %4174 = vmatprep.subr.mxu1 %v8074_v39  ;;  %5554 = vmatprep.subr.mxu0 %v7952_v6 }
 0xe86   :  { %v3810_v37 = vpop.f32.mrf.mxu1  ;;  %v3881_v14 = vpop.f32.mrf.mxu0 }
 0xe87   :  { %v3885_v10 = vadd.f32 %v3810_v37, %v2472_v33  ;;  %v3899_v33 = vadd.f32 %v7739_v31, %v3881_v14  ;;  %v4351_v14 = vld [vmem:[#allocation9 + $0x18] sm:$0xff] }
 0xe88   :  { %v5518_v47 = vpop.f32.mrf.mxu0  ;;  %v3812_v45 = vpop.f32.mrf.mxu1 }
 0xe89   :  { %v4567_v0 = vmul.f32 -1.442695, %v3885_v10  ;;  %v3892_v61 = vadd.f32 %v3812_v45, %v2474_v24  ;;  %v8078_v10 = vld [vmem:[#allocation17_spill] sm:$0xff] }
 0xe8a   :  { %v2580_v47 = vadd.f32 %v8078_v10, %v7245_v8  ;;  %v8087_v10 = vld [vmem:[#allocation25_spill] sm:$0xff] }
 0xe8b   :  { %5790 = vpow2.f32 %v4567_v0  ;;  %v4568_v29 = vmul.f32 -1.442695, %v3892_v61 }
 0xe8d   :  { %5792 = vpow2.f32 %v4568_v29 }
 0xe98   :  { %v5791_v63 = vpop.eup %5790 }
 0xe99   :  { %v3889_v39 = vadd.f32 1.0, %v5791_v63 }
 0xe9a   :  { %v5793_v20 = vpop.eup %5792 }
 0xe9b   :  { %5794 = vrcp.f32 %v3889_v39  ;;  %v3896_v16 = vadd.f32 1.0, %v5793_v20  ;;  %v4350_v39 = vld [vmem:[#allocation9 + $0x10] sm:$0xff] }
 0xe9d   :  { %5796 = vrcp.f32 %v3896_v16  ;;  %v4352_v16 = vld [vmem:[#allocation9 + $0x20] sm:$0xff] }
 0xea8   :  { %v5795_v37 = vpop.eup %5794 }
 0xea9   :  { %v3900_v0 = vmul.f32 %v5795_v37, %v3899_v33  ;;  %v4349_v33 = vld [vmem:[#allocation9 + $0x8] sm:$0xff]  ;;  %v4348_v37 = vld [vmem:[#allocation9] sm:$0xff] }
 0xeaa   :  { %v5797_v29 = vpop.eup %5796 }
 0xeab   :  { %v3901_v61 = vadd.f32 %v3900_v0, %v2580_v47  ;;  %v3903_v63 = vsub.f32 1.0, %v5797_v29  ;;  %v3905_v20 = vmul.f32 %v5797_v29, %v7661_v22  ;;  %v8088_v47 = vld [vmem:[#allocation30_spill] sm:$0xff]  ;;  %v8089_v0 = vld [vmem:[#allocation29_spill] sm:$0xff] }
 0xead   :  { %5798 = vtanh.f32 %v3901_v61  ;;  %v8090_v61 = vld [vmem:[#allocation22_spill] sm:$0xff] }
 0xeae   :  { %v2484_v29 = vadd.f32 %v8090_v61, %v8075_v43 }
 0xeba   :  { %v5799_v45 = vpop.eup %5798 }
 0xebb   :  { %v3904_v51 = vmul.f32 %v5799_v45, %v3903_v63 }
 0xebd   :  { %v7745_v24 = vadd.f32 %v3905_v20, %v3904_v51 }
 0xebf   :  { %4024 = vmatmul.mubr.f32.vlgmr.msra.gmra.mxu1 %v7745_v24  ;;  %5552 = vmatmul.mubr.f32.vlgmr.msra.gmra.mxu0 %v7745_v24 }
 0xec0   :  { %4175 = vmatpush1.msra.mxu1 %v7426_v56  ;;  %5555 = vmatpush3.msra.mxu0 %v7611_v36  ;;  %v8079_v56 = vld [vmem:[#allocation26_spill] sm:$0xff]  ;;  %v4358_v36 = vld [vmem:[#allocation9 + $0x50] sm:$0xff] }
 0xec1   :  { %4176 = vmatprep.subr.mxu1 %v7429_v53  ;;  %5556 = vmatprep.subr.mxu0 %v7952_v6  ;;  %v8080_v53 = vld [vmem:[#allocation20_spill] sm:$0xff] }
 0xec2   :  { %4177 = vmatpush1.msra.mxu1 %v7432_v55  ;;  %5557 = vmatpush3.msra.mxu0 %v7615_v38  ;;  %v8081_v55 = vld [vmem:[#allocation27_spill] sm:$0xff]  ;;  %v4357_v38 = vld [vmem:[#allocation9 + $0x48] sm:$0xff] }
 0xec3   :  { %4178 = vmatprep.subr.mxu1 %v7435_v57  ;;  %5558 = vmatprep.subr.mxu0 %v7952_v6  ;;  %v8082_v57 = vld [vmem:[#allocation28_spill] sm:$0xff] }
 0xec4   :  { %4179 = vmatpush1.msra.mxu1 %v7438_v12  ;;  %5559 = vmatpush3.msra.mxu0 %v7619_v58  ;;  %v4363_v12 = vld [vmem:[#allocation9 + $0x78] sm:$0xff]  ;;  %v4356_v58 = vld [vmem:[#allocation9 + $0x40] sm:$0xff] }
 0xec5   :  { %4180 = vmatprep.subr.mxu1 %v7441_v32  ;;  %5560 = vmatprep.subr.mxu0 %v7952_v6  ;;  %v8083_v32 = vld [vmem:[#allocation21_spill] sm:$0xff] }
 0xec6   :  { %4181 = vmatpush1.msra.mxu1 %v7444_v34  ;;  %5561 = vmatpush3.msra.mxu0 %v7623_v27  ;;  %v2478_v34 = vadd.f32 %v8083_v32, %v8075_v43  ;;  %v4355_v27 = vld [vmem:[#allocation9 + $0x38] sm:$0xff]  ;;  %v4573_v43 = vld [vmem:[%s7865_s9] ss:$0 sm:$0xff]  ;;  %s5955_s9 = smov [#allocation11]  }
 0xec7   :  { %4182 = vmatprep.subr.mxu1 %v7447_v28  ;;  %5562 = vmatprep.subr.mxu0 %v7952_v6  ;;  %s4509_s25 = sshll.u32 %s5955_s9, 4  ;;  %s4510_s25 = int_to_ptr.vmem [resolvable:$true] %s4509_s25 }
 0xec8   :  { %4183 = vmatpush1.msra.mxu1 %v7450_v41  ;;  %5563 = vmatpush3.msra.mxu0 %v7627_v35  ;;  %v4354_v35 = vld [vmem:[#allocation9 + $0x30] sm:$0xff]  ;;  %s5898_s26 = scalar_lea.vmem %s4510_s25, 256  ;;  %p5903_p2 = scmp.lt.s32.totalorder %s4510_s25, %s4510_s25 }
 0xec9   :  { %4184 = vmatprep.subr.mxu1 %v7453_v19  ;;  %5564 = vmatprep.subr.mxu0 %v7952_v6  ;;  %p5899_p1 = scmp.ne.s32.totalorder %s4510_s25, %s5898_s26  ;;  %p5904_p3 = scmp.lt.s32.totalorder %s5898_s26, %s5898_s26 }
 0xeca   :  { %4185 = vmatpush1.msra.mxu1 %v7456_v13  ;;  %5565 = vmatpush3.msra.mxu0 %v7458_v50 }
 0xecb   :  { %4186 = vmatprep.subr.mxu1 %v7462_v44  ;;  %5566 = vmatprep.subr.mxu0 %v7952_v6  ;;  %p5905_p4 = por %p5904_p3, %p5903_p2 }
 0xecc   :  { %4187 = vmatpush1.msra.mxu1 %v7466_v9  ;;  %5567 = vmatpush3.msra.mxu0 %v7468_v40  ;;  %v8084_v9 = vld [vmem:[#allocation36_spill] sm:$0xff] }
 0xecd   :  { %4188 = vmatprep.subr.mxu1 %v7470_v21  ;;  %5568 = vmatprep.subr.mxu0 %v7952_v6  ;;  %v2480_v40 = vadd.f32 %v8084_v9, %v7234_v30  ;;  %p5906_p5 = pnand %p5905_p4, %p5899_p1 }
 0xece   :  { %4189 = vmatpush1.msra.mxu1 %v7474_v62  ;;  %5569 = vmatpush3.msra.mxu0 %v7476_v4 }
 0xecf   :  { %4190 = vmatprep.subr.mxu1 %v7478_v52  ;;  %5570 = vmatprep.subr.mxu0 %v7952_v6 }
 0xed0   :  { %4191 = vmatpush1.msra.mxu1 %v7482_v25  ;;  %5571 = vmatpush3.msra.mxu0 %v7484_v42 }
 0xed1   :  { %4192 = vmatprep.subr.mxu1 %v7488_v48  ;;  %5572 = vmatprep.subr.mxu0 %v7952_v6 }
 0xed2   :  { %4193 = vmatpush1.msra.mxu1 %v7492_v46  ;;  %5573 = vmatpush3.msra.mxu0 %v7494_v11  ;;  %v8085_v46 = vld [vmem:[#allocation44_spill] sm:$0xff] }
 0xed3   :  { %4194 = vmatprep.subr.mxu1 %v7498_v59  ;;  %5574 = vmatprep.subr.mxu0 %v7952_v6  ;;  %v2585_v11 = vadd.f32 %v8085_v46, %v7245_v8 }
 0xed4   :  { %4195 = vmatpush1.msra.mxu1 %v7502_v49  ;;  %5575 = vmatpush3.msra.mxu0 %v7504_v60 }
 0xed5   :  { %4196 = vmatprep.subr.mxu1 %v7508_v26  ;;  %5576 = vmatprep.subr.mxu0 %v7952_v6 }
 0xed6   :  { %4197 = vmatpush1.msra.mxu1 %v7512_v17  ;;  %5577 = vmatpush3.msra.mxu0 %v7514_v2 }
 0xed7   :  { %4198 = vmatprep.subr.mxu1 %v7518_v18  ;;  %5578 = vmatprep.subr.mxu0 %v7952_v6 }
 0xed8   :  { %4199 = vmatpush1.msra.mxu1 %v7522_v23  ;;  %5579 = vmatpush3.msra.mxu0 %v7524_v15  ;;  %v4362_v15 = vld [vmem:[#allocation9 + $0x70] sm:$0xff] }
 0xed9   :  { %4200 = vmatprep.subr.mxu1 %v7528_v1  ;;  %5580 = vmatprep.subr.mxu0 %v7952_v6  ;;  %v8086_v1 = vld [vmem:[#allocation45_spill] sm:$0xff] }
 0xeda   :  { %4201 = vmatpush1.msra.mxu1 %v7532_v7  ;;  %5581 = vmatpush3.msra.mxu0 %v7534_v3  ;;  %v4361_v7 = vld [vmem:[#allocation9 + $0x68] sm:$0xff]  ;;  %v4360_v3 = vld [vmem:[#allocation9 + $0x60] sm:$0xff] }
 0xedb   :  { %4202 = vmatprep.subr.mxu1 %v7538_v5  ;;  %5582 = vmatprep.subr.mxu0 %v7952_v6  ;;  %v4359_v5 = vld [vmem:[#allocation9 + $0x58] sm:$0xff] }
 0xedc   :  { %4203 = vmatpush1.msra.mxu1 %v8069_v54  ;;  %5583 = vmatpush3.msra.mxu0 %v8079_v56  ;;  %v4353_v54 = vld [vmem:[#allocation9 + $0x28] sm:$0xff] }
 0xedd   :  { %4204 = vmatprep.subr.mxu1 %v8080_v53  ;;  %5584 = vmatprep.subr.mxu0 %v7952_v6 }
 0xede   :  { %4205 = vmatpush1.msra.mxu1 %v8081_v55  ;;  %4238 = vmatprep.mubr.f32.mxu1 %v7952_v6  ;;  %v8091_v55 = vld [vmem:[#allocation43_spill] sm:$0xff] }
 0xedf   :  { %5585 = vmatpush3.msra.mxu0 %v8082_v57  ;;  %5586 = vmatprep.mubr.msk.f32.mxu0 %vm5954_vm2, %v7952_v6  ;;  %v2486_v57 = vadd.f32 %v8091_v55, %v7234_v30 }
 0xee0   :  { %5589 = vmatprep.subr.mxu1 %v4363_v12 }
 0xf7f   :  { %v4025_v28 = vpop.f32.mrf.mxu1  ;;  %v4096_v41 = vpop.f32.mrf.mxu0 }
 0xf80   :  { %v4100_v19 = vadd.f32 %v4025_v28, %v2478_v34  ;;  %v4114_v42 = vadd.f32 %v7739_v31, %v4096_v41 }
 0xf81   :  { %v5553_v13 = vpop.f32.mrf.mxu0  ;;  %v4027_v44 = vpop.f32.mrf.mxu1 }
 0xf82   :  { %v4569_v50 = vmul.f32 -1.442695, %v4100_v19  ;;  %v4107_v21 = vadd.f32 %v4027_v44, %v2480_v40  ;;  %v8092_v44 = vld [vmem:[#allocation42_spill] sm:$0xff] }
 0xf83   :  { %v2590_v9 = vadd.f32 %v8092_v44, %v7245_v8 }
 0xf84   :  { %5800 = vpow2.f32 %v4569_v50  ;;  %v4570_v62 = vmul.f32 -1.442695, %v4107_v21 }
 0xf86   :  { %5802 = vpow2.f32 %v4570_v62 }
 0xf91   :  { %v5801_v4 = vpop.eup %5800 }
 0xf92   :  { %v4104_v6 = vadd.f32 1.0, %v5801_v4 }
 0xf93   :  { %v5803_v52 = vpop.eup %5802 }
 0xf94   :  { %5804 = vrcp.f32 %v4104_v6  ;;  %v4111_v25 = vadd.f32 1.0, %v5803_v52 }
 0xf96   :  { %5806 = vrcp.f32 %v4111_v25 }
 0xfa1   :  { %v5805_v48 = vpop.eup %5804 }
 0xfa2   :  { %v4115_v59 = vmul.f32 %v5805_v48, %v4114_v42 }
 0xfa3   :  { %v5807_v60 = vpop.eup %5806 }
 0xfa4   :  { %v4116_v49 = vadd.f32 %v4115_v59, %v2585_v11  ;;  %v4118_v26 = vsub.f32 1.0, %v5807_v60  ;;  %v4120_v18 = vmul.f32 %v5807_v60, %v7745_v24 }
 0xfa6   :  { %5808 = vtanh.f32 %v4116_v49 }
 0xfb3   :  { %v5809_v17 = vpop.eup %5808 }
 0xfb4   :  { %v4119_v2 = vmul.f32 %v5809_v17, %v4118_v26 }
 0xfb6   :  { %v7822_v23 = vadd.f32 %v4120_v18, %v4119_v2 }
 0xfb8   :  { %4239 = vmatmul.mubr.f32.vlgmr.msra.gmra.mxu1 %v7822_v23  ;;  %5587 = vmatmul.mubr.f32.vlgmr.msra.gmra.mxu0 %v7822_v23 }
 0xfb9   :  { %5590 = vmatpush3.msra.mxu1 %v4363_v12  ;;  %5621 = vmatprep.mubr.f32.mxu1 %v8086_v1 }
 0xfba   :  { %5591 = vmatprep.subr.mxu1 %v4362_v15 }
 0xfbb   :  { %5592 = vmatpush3.msra.mxu1 %v4362_v15 }
 0xfbc   :  { %5593 = vmatprep.subr.mxu1 %v4361_v7 }
 0xfbd   :  { %5594 = vmatpush3.msra.mxu1 %v4361_v7 }
 0xfbe   :  { %5595 = vmatprep.subr.mxu1 %v4360_v3 }
 0xfbf   :  { %5596 = vmatpush3.msra.mxu1 %v4360_v3 }
 0xfc0   :  { %5597 = vmatprep.subr.mxu1 %v4359_v5 }
 0xfc1   :  { %5598 = vmatpush3.msra.mxu1 %v4359_v5 }
 0xfc2   :  { %5599 = vmatprep.subr.mxu1 %v4358_v36 }
 0xfc3   :  { %5600 = vmatpush3.msra.mxu1 %v4358_v36 }
 0xfc4   :  { %5601 = vmatprep.subr.mxu1 %v4357_v38 }
 0xfc5   :  { %5602 = vmatpush3.msra.mxu1 %v4357_v38 }
 0xfc6   :  { %5603 = vmatprep.subr.mxu1 %v4356_v58 }
 0xfc7   :  { %5604 = vmatpush3.msra.mxu1 %v4356_v58 }
 0xfc8   :  { %5605 = vmatprep.subr.mxu1 %v4355_v27 }
 0xfc9   :  { %5606 = vmatpush3.msra.mxu1 %v4355_v27 }
 0xfca   :  { %5607 = vmatprep.subr.mxu1 %v4354_v35 }
 0xfcb   :  { %5608 = vmatpush3.msra.mxu1 %v4354_v35 }
 0xfcc   :  { %5609 = vmatprep.subr.mxu1 %v4353_v54 }
 0xfcd   :  { %5610 = vmatpush3.msra.mxu1 %v4353_v54 }
 0xfce   :  { %5611 = vmatprep.subr.mxu1 %v4352_v16 }
 0xfcf   :  { %5612 = vmatpush3.msra.mxu1 %v4352_v16 }
 0xfd0   :  { %5613 = vmatprep.subr.mxu1 %v4351_v14 }
 0xfd1   :  { %5614 = vmatpush3.msra.mxu1 %v4351_v14 }
 0xfd2   :  { %5615 = vmatprep.subr.mxu1 %v4350_v39 }
 0xfd3   :  { %5616 = vmatpush3.msra.mxu1 %v4350_v39 }
 0xfd4   :  { %5617 = vmatprep.subr.mxu1 %v4349_v33 }
 0xfd5   :  { %5618 = vmatpush3.msra.mxu1 %v4349_v33 }
 0xfd6   :  { %5619 = vmatprep.subr.mxu1 %v4348_v37 }
 0xfd7   :  { %5620 = vmatpush3.msra.mxu1 %v4348_v37 }
 0xfd8   :  { %5622 = vmatmul.mubr.f32.vlgmr.msra.gmra.mxu1 %v8087_v10 }
 0xfd9   :  { %5624 = vmatprep.mubr.f32.mxu1 %v8088_v47 }
 0xfdc   :  { %5625 = vmatmul.mubr.f32.gmra.mxu1 %v8089_v0 }
 0xfdd   :  { %5627 = vmatprep.mubr.f32.mxu1 %v7661_v22 }
 0xfe0   :  { %5628 = vmatmul.mubr.f32.gmra.mxu1 %v7745_v24 }
 0xfe1   :  { %5630 = vmatprep.mubr.f32.mxu1 %v7822_v23 }
0x1078   :  { %v4240_v63 = vpop.f32.mrf.mxu1  ;;  %v4311_v45 = vpop.f32.mrf.mxu0 }
0x1079   :  { %v4315_v51 = vadd.f32 %v4240_v63, %v2484_v29  ;;  %v4329_v19 = vadd.f32 %v7739_v31, %v4311_v45 }
0x107a   :  { %v5588_v20 = vpop.f32.mrf.mxu0  ;;  %v4242_v53 = vpop.f32.mrf.mxu1 }
0x107b   :  { %v4571_v56 = vmul.f32 -1.442695, %v4315_v51  ;;  %v4322_v12 = vadd.f32 %v4242_v53, %v2486_v57 }
0x107d   :  { %5810 = vpow2.f32 %v4571_v56  ;;  %v4572_v32 = vmul.f32 -1.442695, %v4322_v12 }
0x107f   :  { %5812 = vpow2.f32 %v4572_v32 }
0x108a   :  { %v5811_v22 = vpop.eup %5810 }
0x108b   :  { %v4319_v24 = vadd.f32 1.0, %v5811_v22 }
0x108c   :  { %v5813_v34 = vpop.eup %5812 }
0x108d   :  { %5814 = vrcp.f32 %v4319_v24  ;;  %v4326_v28 = vadd.f32 1.0, %v5813_v34 }
0x108f   :  { %5816 = vrcp.f32 %v4326_v28 }
0x1098   :  { %v5623_v41 = vpop.f32.mrf.mxu1 }
0x1099   :  { %v4443_v13 = vadd.f32 %v5623_v41, %v4573_v43 }
0x109a   :  { %v5815_v50 = vpop.eup %5814  ;;  %v4437_v30 = vpop.f32.mrf.mxu1 }
0x109b   :  { %v4330_v40 = vmul.f32 %v5815_v50, %v4329_v19  ;;  %5818 = vtanh.f32 %v4443_v13  ;;  %v4438_v21 = vadd.f32 %v4573_v43, %v4437_v30 }
0x109c   :  { %v5626_v62 = vpop.f32.mrf.mxu1  ;;  %v5817_v11 = vpop.eup %5816 }
0x109d   :  { %v4331_v4 = vadd.f32 %v4330_v40, %v2590_v9  ;;  %5820 = vtanh.f32 %v4438_v21  ;;  %v4453_v6 = vadd.f32 %v5626_v62, %v4573_v43  ;;  %v4333_v49 = vsub.f32 1.0, %v5817_v11 }
0x109e   :  { %v4447_v52 = vpop.f32.mrf.mxu1  ;;  %v4335_v2 = vmul.f32 %v5817_v11, %v7822_v23 }
0x109f   :  { %5822 = vtanh.f32 %v4331_v4  ;;  %v4448_v25 = vadd.f32 %v4573_v43, %v4447_v52 }
0x10a0   :  { %5824 = vtanh.f32 %v4453_v6  ;;  %v5629_v42 = vpop.f32.mrf.mxu1 }
0x10a1   :  { %5826 = vtanh.f32 %v4448_v25  ;;  %v4463_v31 = vadd.f32 %v5629_v42, %v4573_v43 }
0x10a2   :  { %v4457_v48 = vpop.f32.mrf.mxu1 }
0x10a3   :  { %5828 = vtanh.f32 %v4463_v31  ;;  %v4458_v46 = vadd.f32 %v4573_v43, %v4457_v48 }
0x10a5   :  { %5830 = vtanh.f32 %v4458_v46 }
0x10a8   :  { %v5819_v8 = vpop.eup %5818 }
0x10a9   :  { %4485 = vst [vmem:[#allocation10 + $0x8] sm:$0xff] %v5819_v8 }
0x10aa   :  { %v5821_v59 = vpop.eup %5820 }
0x10ab   :  { %4484 = vst [vmem:[#allocation10] sm:$0xff] %v5821_v59 }
0x10ac   :  { %v5823_v60 = vpop.eup %5822 }
0x10ad   :  { %v5825_v26 = vpop.eup %5824  ;;  %v4334_v17 = vmul.f32 %v5823_v60, %v4333_v49 }
0x10ae   :  { %v5827_v18 = vpop.eup %5826  ;;  %4487 = vst [vmem:[#allocation10 + $0x18] sm:$0xff] %v5825_v26 }
0x10af   :  { %4486 = vst [vmem:[#allocation10 + $0x10] sm:$0xff] %v5827_v18  ;;  %v4336_v15 = vadd.f32 %v4335_v2, %v4334_v17 }
0x10b0   :  { %v5829_v1 = vpop.eup %5828 }
0x10b1   :  { %4489 = vst [vmem:[#allocation10 + $0x28] sm:$0xff] %v5829_v1  ;;  %5631 = vmatmul.mubr.f32.gmra.mxu1 %v4336_v15  ;;  %4339 = vst [vmem:[#allocation11 + $0x8] sm:$0xff] %v4336_v15 }
0x10b2   :  { %v5831_v7 = vpop.eup %5830 }
0x10b3   :  { %4488 = vst [vmem:[#allocation10 + $0x20] sm:$0xff] %v5831_v7 }
0x10b4   :  { %5909 = shalt.err (!%p5906_p5)
}
0x10b5   :  { %4515 = dma.vmem_to_hbm [thread:$0]  %s4510_s25, 256, %s7867_s11, [#allocation12], %s5951_s5, %s5951_s5, %s5952_s13  }
0x10b6   :  { %s5956_s29 = smov [#allocation10]  }
0x10b7   :  { %s4497_s30 = sshll.u32 %s5956_s29, 4  ;;  %s4498_s30 = int_to_ptr.vmem [resolvable:$true] %s4497_s30 }
0x10b8   :  { %s5918_s0 = scalar_lea.vmem %s4498_s30, 1024  ;;  %p5923_p7 = scmp.lt.s32.totalorder %s4498_s30, %s4498_s30 }
0x10b9   :  { %p5919_p6 = scmp.ne.s32.totalorder %s4498_s30, %s5918_s0  ;;  %p5924_p8 = scmp.lt.s32.totalorder %s5918_s0, %s5918_s0 }
0x10bb   :  { %p5925_p9 = por %p5924_p8, %p5923_p7 }
0x10bd   :  { %p5926_p10 = pnand %p5925_p9, %p5919_p6 }
0x1171   :  { %v5632_v23 = vpop.f32.mrf.mxu1 }
0x1172   :  { %v4473_v3 = vadd.f32 %v5632_v23, %v4573_v43 }
0x1173   :  { %v4467_v5 = vpop.f32.mrf.mxu1 }
0x1174   :  { %5832 = vtanh.f32 %v4473_v3  ;;  %v4468_v36 = vadd.f32 %v4573_v43, %v4467_v5 }
0x1176   :  { %5834 = vtanh.f32 %v4468_v36 }
0x1181   :  { %v5833_v38 = vpop.eup %5832 }
0x1182   :  { %4491 = vst [vmem:[#allocation10 + $0x38] sm:$0xff] %v5833_v38 }
0x1183   :  { %v5835_v58 = vpop.eup %5834 }
0x1184   :  { %4490 = vst [vmem:[#allocation10 + $0x30] sm:$0xff] %v5835_v58 }
0x1185   :  { %5929 = shalt.err (!%p5926_p10)
}
0x1186   :  { %4503 = dma.vmem_to_hbm [thread:$0]  %s4498_s30, 1024, %s7866_s10, [#allocation6], %s5951_s5, %s5951_s5, %s5952_s13  }
0x1187   :  { %5942 = dma.done.wait [#allocation6], 1024  }
0x1188   :  { %5943 = vsyncadd [#allocation6], 4294966272 }
0x1189   :  { %5944 = dma.done.wait [#allocation12], 256  }
0x118a   :  { %5945 = vsyncadd [#allocation12], 4294967040 }
0x118b   :  { %4522 = vsyncpa [#allocation5], 1 }
0x118c   :  { %4523 = vsyncpa [#allocation8], 1 }
0x118d   :  { %4524 = vsyncpa [#allocation6], 1 }
0x118e   :  { %4525 = vsyncpa [#allocation12], 1 }

</bundles_post_ra>
